<compile_context>
chip_gen: v7x
topology: tpu7x:2x2x1
jax: 0.10.0
libtpu: 0.0.40
codegen_flags: <defaults>
</compile_context>

<pallas_src>
import functools

import jax
import jax.numpy as jnp
from jax.experimental import pallas as pl
from jax.experimental.pallas import tpu as pltpu

# ----------------------------- model config ---------------------------------
PATCH = 4
EMBED_DIM = 128          # lane-aligned stand-in for convnet.out_dim (768 real)
NUM_HEADS = 4
HEAD_DIM = EMBED_DIM // NUM_HEADS
DEPTH = 2
MLP_DIM = 4 * EMBED_DIM
HEAD_CLASSES = (5, 5)    # SimpleContinualLinear heads (two incremental tasks)
NUM_CLASSES_TOTAL = sum(HEAD_CLASSES)
NC_PAD = 128             # lane-dense padded logits width


def _round_up(x, m):
    return (x + m - 1) // m * m


# --------------------------- in-kernel helpers --------------------------------
def _ln(x, g, b, eps=1e-6):
    mean = jnp.mean(x, axis=-1, keepdims=True)
    var = jnp.mean(jnp.square(x - mean), axis=-1, keepdims=True)
    return (x - mean) * jax.lax.rsqrt(var + eps) * g + b


def _mm(x, w_bf16, b):
    # bf16 MXU operands, f32 accumulation; elementwise math stays f32.
    return jnp.dot(x.astype(jnp.bfloat16), w_bf16,
                   preferred_element_type=jnp.float32) + b


def _attention(x_ln, qkv_w, qkv_b, add_mask, *, num_heads, head_dim, d):
    """All heads in one shot; per-head split done via static lane slices."""
    qkv = _mm(x_ln, qkv_w, qkv_b)                             # (T_PAD, 3D) f32
    scale = 1.0 / float(head_dim) ** 0.5
    outs = []
    for h in range(num_heads):
        q = qkv[:, h * head_dim:(h + 1) * head_dim]
        k = qkv[:, d + h * head_dim:d + (h + 1) * head_dim]
        v = qkv[:, 2 * d + h * head_dim:2 * d + (h + 1) * head_dim]
        s = jax.lax.dot_general(
            q.astype(jnp.bfloat16), k.astype(jnp.bfloat16),
            (((1,), (1,)), ((), ())),
            preferred_element_type=jnp.float32) * scale + add_mask
        m = jnp.max(s, axis=-1, keepdims=True)
        p = jnp.exp(s - m)
        inv = pl.reciprocal(jnp.sum(p, axis=-1, keepdims=True), approx=True)
        p = p * inv
        outs.append(jnp.dot(p.astype(jnp.bfloat16), v.astype(jnp.bfloat16),
                            preferred_element_type=jnp.float32))
    return jnp.concatenate(outs, axis=-1)                     # (T_PAD, D)


# ----------------------- fused backbone + fc kernel ---------------------------
def _backbone_fc_kernel(xp_ref, cls_ref, pos_ref, patch_w_ref, patch_b_ref,
                        ln1_g_ref, ln1_b_ref, qkv_w_ref, qkv_b_ref,
                        proj_w_ref, proj_b_ref, ln2_g_ref, ln2_b_ref,
                        fc1_w_ref, fc1_b_ref, fc2_w_ref, fc2_b_ref,
                        lnf_g_ref, lnf_b_ref, fcw_ref, fcb_ref,
                        feat_ref, logit_ref,
                        *, num_tokens, t_pad, num_heads, head_dim, depth):
    d = cls_ref.shape[-1]

    # ---- patch embed + CLS + positional embedding (padded to t_pad rows) ----
    emb = _mm(xp_ref[0], patch_w_ref[...], patch_b_ref[...])  # (NP, D)
    pieces = [cls_ref[...], emb]
    if t_pad > num_tokens:
        pieces.append(jnp.zeros((t_pad - num_tokens, d), jnp.float32))
    x = jnp.concatenate(pieces, axis=0) + pos_ref[...]        # (T_PAD, D)

    # additive key mask: padded tokens never contribute as attention keys
    col = jax.lax.broadcasted_iota(jnp.int32, (1, t_pad), 1)
    add_mask = jnp.where(col < num_tokens, 0.0, -1e30).astype(jnp.float32)

    # ---- pre-norm transformer blocks, fully resident in VMEM/vregs ----
    for l in range(depth):
        h = _ln(x, ln1_g_ref[l], ln1_b_ref[l])
        a = _attention(h, qkv_w_ref[l], qkv_b_ref[l], add_mask,
                       num_heads=num_heads, head_dim=head_dim, d=d)
        x = x + _mm(a, proj_w_ref[l], proj_b_ref[l])
        h = _ln(x, ln2_g_ref[l], ln2_b_ref[l])
        h = _mm(h, fc1_w_ref[l], fc1_b_ref[l])
        # TODO(synk): timm ViT uses exact erf GELU; tanh approximation used here.
        h = jax.nn.gelu(h, approximate=True)
        x = x + _mm(h, fc2_w_ref[l], fc2_b_ref[l])

    x = _ln(x, lnf_g_ref[...], lnf_b_ref[...])
    feats = x[0:1, :]                                         # CLS features (1, D)
    feat_ref[0] = feats
    # fused SimpleContinualLinear: all heads as one lane-dense padded matmul
    logit_ref[0] = _mm(feats, fcw_ref[...], fcb_ref[...])     # (1, NC_PAD)


@jax.jit
def backbone_and_fc(params, x):
    """ViT backbone + continual fc in ONE pallas_call.

    Returns (features (B, D), logits (B, NUM_CLASSES_TOTAL))."""
    B, C, H, W = x.shape
    gh, gw = H // PATCH, W // PATCH
    num_patches = gh * gw
    num_tokens = num_patches + 1
    t_pad = _round_up(num_tokens, 8)
    kp = C * PATCH * PATCH

    # patchify (conv-equivalent im2col): (B, NP, C*P*P)
    xp = x.reshape(B, C, gh, PATCH, gw, PATCH)
    xp = jnp.transpose(xp, (0, 2, 4, 1, 3, 5)).reshape(B, num_patches, kp)

    bp, fcp = params["backbone"], params["fc"]
    weights = [bp["cls"], bp["pos"], bp["patch_w"], bp["patch_b"],
               bp["ln1_g"], bp["ln1_b"], bp["qkv_w"], bp["qkv_b"],
               bp["proj_w"], bp["proj_b"], bp["ln2_g"], bp["ln2_b"],
               bp["fc1_w"], bp["fc1_b"], bp["fc2_w"], bp["fc2_b"],
               bp["lnf_g"], bp["lnf_b"], fcp["w_cat"], fcp["b_cat"]]

    def full_spec(a):
        # whole array resident in VMEM; constant index map -> fetched once
        return pl.BlockSpec(a.shape, lambda b, _nd=a.ndim: (0,) * _nd)

    kernel = functools.partial(
        _backbone_fc_kernel, num_tokens=num_tokens, t_pad=t_pad,
        num_heads=NUM_HEADS, head_dim=HEAD_DIM, depth=DEPTH)

    feats, logits = pl.pallas_call(
        kernel,
        grid=(B,),
        in_specs=[pl.BlockSpec((1, num_patches, kp), lambda b: (b, 0, 0))]
                 + [full_spec(a) for a in weights],
        out_specs=[pl.BlockSpec((1, 1, EMBED_DIM), lambda b: (b, 0, 0)),
                   pl.BlockSpec((1, 1, NC_PAD), lambda b: (b, 0, 0))],
        out_shape=(jax.ShapeDtypeStruct((B, 1, EMBED_DIM), jnp.float32),
                   jax.ShapeDtypeStruct((B, 1, NC_PAD), jnp.float32)),
        compiler_params=pltpu.CompilerParams(
            dimension_semantics=("parallel",)),   # batch across TCs on v7x
    )(xp, *weights)
    return feats[:, 0, :], logits[:, 0, :NUM_CLASSES_TOTAL]


# ----------------------- SimpleContinualLinear (fc_only) ----------------------
def _fc_kernel(x_ref, w_ref, b_ref, o_ref):
    o_ref[...] = jnp.dot(x_ref[...].astype(jnp.bfloat16), w_ref[...],
                         preferred_element_type=jnp.float32) + b_ref[...]


@jax.jit
def _fc_logits(fc_params, feats):
    B = feats.shape[0]
    vmem = pl.BlockSpec(memory_space=pltpu.MemorySpace.VMEM)
    logits = pl.pallas_call(
        _fc_kernel,
        in_specs=[vmem, vmem, vmem],
        out_specs=vmem,
        out_shape=jax.ShapeDtypeStruct((B, NC_PAD), jnp.float32),
    )(feats, fc_params["w_cat"], fc_params["b_cat"])
    return logits[:, :NUM_CLASSES_TOTAL]


def continual_fc(fc_params, feats):
    # fc_with_ln=False: each head is a plain Linear; heads are fused into one
    # lane-dense (D, NC_PAD) matmul, per-head logits are contiguous slices.
    return {"logits": _fc_logits(fc_params, feats)}


# ----------------------------- FinetuneIncrementalNet.forward ----------------
def forward(params, x, bcb_no_grad=False, fc_only=False):
    if fc_only:
        out = continual_fc(params["fc"], x)
        # TODO(synk): old_fc ('old_logits') branch omitted — old_fc is None at construction.
        return out
    feats, logits = backbone_and_fc(params, x)
    if bcb_no_grad:
        # matches `with torch.no_grad(): x = self.convnet(x)` followed by fc(x)
        feats = jax.lax.stop_gradient(feats)
        logits = continual_fc(params["fc"], feats)["logits"]
    return {"logits": logits, "features": feats}


# ----------------------------- deterministic init ----------------------------
def _init(key, shape, scale=0.02):
    return scale * jax.random.normal(key, shape, jnp.float32)


def init_params(key, img_size=16, in_chans=3):
    num_patches = (img_size // PATCH) ** 2
    num_tokens = num_patches + 1
    t_pad = _round_up(num_tokens, 8)
    keys = iter(jax.random.split(key, 8 + 4 * DEPTH + len(HEAD_CLASSES)))

    qkv_w, proj_w, fc1_w, fc2_w = [], [], [], []
    for _ in range(DEPTH):
        qkv_w.append(_init(next(keys), (EMBED_DIM, 3 * EMBED_DIM)))
        proj_w.append(_init(next(keys), (EMBED_DIM, EMBED_DIM)))
        fc1_w.append(_init(next(keys), (EMBED_DIM, MLP_DIM)))
        fc2_w.append(_init(next(keys), (MLP_DIM, EMBED_DIM)))

    pos = _init(next(keys), (num_tokens, EMBED_DIM))
    pos = jnp.pad(pos, ((0, t_pad - num_tokens), (0, 0)))

    backbone = dict(
        patch_w=_init(next(keys), (in_chans * PATCH * PATCH,
                                   EMBED_DIM)).astype(jnp.bfloat16),
        patch_b=jnp.zeros((1, EMBED_DIM), jnp.float32),
        cls=_init(next(keys), (1, EMBED_DIM)),
        pos=pos,
        ln1_g=jnp.ones((DEPTH, 1, EMBED_DIM), jnp.float32),
        ln1_b=jnp.zeros((DEPTH, 1, EMBED_DIM), jnp.float32),
        qkv_w=jnp.stack(qkv_w).astype(jnp.bfloat16),
        qkv_b=jnp.zeros((DEPTH, 1, 3 * EMBED_DIM), jnp.float32),
        proj_w=jnp.stack(proj_w).astype(jnp.bfloat16),
        proj_b=jnp.zeros((DEPTH, 1, EMBED_DIM), jnp.float32),
        ln2_g=jnp.ones((DEPTH, 1, EMBED_DIM), jnp.float32),
        ln2_b=jnp.zeros((DEPTH, 1, EMBED_DIM), jnp.float32),
        fc1_w=jnp.stack(fc1_w).astype(jnp.bfloat16),
        fc1_b=jnp.zeros((DEPTH, 1, MLP_DIM), jnp.float32),
        fc2_w=jnp.stack(fc2_w).astype(jnp.bfloat16),
        fc2_b=jnp.zeros((DEPTH, 1, EMBED_DIM), jnp.float32),
        lnf_g=jnp.ones((1, EMBED_DIM), jnp.float32),
        lnf_b=jnp.zeros((1, EMBED_DIM), jnp.float32),
    )

    # SimpleContinualLinear heads fused into one padded, lane-dense matrix.
    head_ws, head_bs = [], []
    for nc in HEAD_CLASSES:
        head_ws.append(_init(next(keys), (EMBED_DIM, nc)))
        head_bs.append(jnp.zeros((nc,), jnp.float32))
    w_cat = jnp.concatenate(head_ws, axis=1)
    b_cat = jnp.concatenate(head_bs)
    w_cat = jnp.pad(w_cat, ((0, 0), (0, NC_PAD - NUM_CLASSES_TOTAL)))
    b_cat = jnp.pad(b_cat, (0, NC_PAD - NUM_CLASSES_TOTAL)).reshape(1, NC_PAD)
    fc = dict(w_cat=w_cat.astype(jnp.bfloat16), b_cat=b_cat)

    # TODO(synk): no custom VJP is defined; kernels are forward-only.
    return {"backbone": backbone, "fc": fc}


# ----------------------------- main -------------------------------------------
if __name__ == "__main__":
    B, C, H, W = 2, 3, 16, 16
    x = jax.random.normal(jax.random.PRNGKey(0), (B, C, H, W), jnp.float32)
    params = init_params(jax.random.PRNGKey(1), img_size=H, in_chans=C)

    out = forward(params, x)
    jax.block_until_ready(out["logits"])
    jax.block_until_ready(out["features"])

    assert out["logits"].shape == (B, NUM_CLASSES_TOTAL)
    assert out["features"].shape == (B, EMBED_DIM)
    assert bool(jnp.all(jnp.isfinite(out["logits"])))
    assert bool(jnp.all(jnp.isfinite(out["features"])))

    # bcb_no_grad path (backbone under stop_gradient, fc re-applied outside)
    out_ng = forward(params, x, bcb_no_grad=True)
    jax.block_until_ready(out_ng["logits"])
    assert out_ng["logits"].shape == (B, NUM_CLASSES_TOTAL)

    # fc_only path on raw features
    fc_out = forward(params, out["features"], fc_only=True)
    jax.block_until_ready(fc_out["logits"])
    assert fc_out["logits"].shape == (B, NUM_CLASSES_TOTAL)

    print("KERNEL_OK")
</pallas_src>

<mosaic_0001>
module attributes {stable_mosaic.version = 11 : i64} {
  func.func @_backbone_fc_kernel(%arg0: i32, %arg1: memref<1x16x48xf32, #tpu.memory_space<vmem>>, %arg2: memref<1x128xf32, #tpu.memory_space<vmem>>, %arg3: memref<24x128xf32, #tpu.memory_space<vmem>>, %arg4: memref<48x128xbf16, #tpu.memory_space<vmem>>, %arg5: memref<1x128xf32, #tpu.memory_space<vmem>>, %arg6: memref<2x1x128xf32, #tpu.memory_space<vmem>>, %arg7: memref<2x1x128xf32, #tpu.memory_space<vmem>>, %arg8: memref<2x128x384xbf16, #tpu.memory_space<vmem>>, %arg9: memref<2x1x384xf32, #tpu.memory_space<vmem>>, %arg10: memref<2x128x128xbf16, #tpu.memory_space<vmem>>, %arg11: memref<2x1x128xf32, #tpu.memory_space<vmem>>, %arg12: memref<2x1x128xf32, #tpu.memory_space<vmem>>, %arg13: memref<2x1x128xf32, #tpu.memory_space<vmem>>, %arg14: memref<2x128x512xbf16, #tpu.memory_space<vmem>>, %arg15: memref<2x1x512xf32, #tpu.memory_space<vmem>>, %arg16: memref<2x512x128xbf16, #tpu.memory_space<vmem>>, %arg17: memref<2x1x128xf32, #tpu.memory_space<vmem>>, %arg18: memref<1x128xf32, #tpu.memory_space<vmem>>, %arg19: memref<1x128xf32, #tpu.memory_space<vmem>>, %arg20: memref<128x128xbf16, #tpu.memory_space<vmem>>, %arg21: memref<1x128xf32, #tpu.memory_space<vmem>>, %arg22: memref<1x1x128xf32, #tpu.memory_space<vmem>>, %arg23: memref<1x1x128xf32, #tpu.memory_space<vmem>>) attributes {dimension_semantics = [#tpu.dimension_semantics<parallel>], iteration_bounds = array<i64: 2>, scalar_prefetch = 0 : i64, scratch_operands = 0 : i64, tpu.core_type = #tpu.core_type<tc>, window_params = [{transform_indices = @transform_0, window_bounds = array<i64: 1, 16, 48>}, {pipeline_mode = #tpu.pipeline_mode<synchronous>, transform_indices = @transform_1, window_bounds = array<i64: 1, 128>}, {pipeline_mode = #tpu.pipeline_mode<synchronous>, transform_indices = @transform_2, window_bounds = array<i64: 24, 128>}, {pipeline_mode = #tpu.pipeline_mode<synchronous>, transform_indices = @transform_3, window_bounds = array<i64: 48, 128>}, {pipeline_mode = #tpu.pipeline_mode<synchronous>, transform_indices = @transform_4, window_bounds = array<i64: 1, 128>}, {pipeline_mode = #tpu.pipeline_mode<synchronous>, transform_indices = @transform_5, window_bounds = array<i64: 2, 1, 128>}, {pipeline_mode = #tpu.pipeline_mode<synchronous>, transform_indices = @transform_6, window_bounds = array<i64: 2, 1, 128>}, {pipeline_mode = #tpu.pipeline_mode<synchronous>, transform_indices = @transform_7, window_bounds = array<i64: 2, 128, 384>}, {pipeline_mode = #tpu.pipeline_mode<synchronous>, transform_indices = @transform_8, window_bounds = array<i64: 2, 1, 384>}, {pipeline_mode = #tpu.pipeline_mode<synchronous>, transform_indices = @transform_9, window_bounds = array<i64: 2, 128, 128>}, {pipeline_mode = #tpu.pipeline_mode<synchronous>, transform_indices = @transform_10, window_bounds = array<i64: 2, 1, 128>}, {pipeline_mode = #tpu.pipeline_mode<synchronous>, transform_indices = @transform_11, window_bounds = array<i64: 2, 1, 128>}, {pipeline_mode = #tpu.pipeline_mode<synchronous>, transform_indices = @transform_12, window_bounds = array<i64: 2, 1, 128>}, {pipeline_mode = #tpu.pipeline_mode<synchronous>, transform_indices = @transform_13, window_bounds = array<i64: 2, 128, 512>}, {pipeline_mode = #tpu.pipeline_mode<synchronous>, transform_indices = @transform_14, window_bounds = array<i64: 2, 1, 512>}, {pipeline_mode = #tpu.pipeline_mode<synchronous>, transform_indices = @transform_15, window_bounds = array<i64: 2, 512, 128>}, {pipeline_mode = #tpu.pipeline_mode<synchronous>, transform_indices = @transform_16, window_bounds = array<i64: 2, 1, 128>}, {pipeline_mode = #tpu.pipeline_mode<synchronous>, transform_indices = @transform_17, window_bounds = array<i64: 1, 128>}, {pipeline_mode = #tpu.pipeline_mode<synchronous>, transform_indices = @transform_18, window_bounds = array<i64: 1, 128>}, {pipeline_mode = #tpu.pipeline_mode<synchronous>, transform_indices = @transform_19, window_bounds = array<i64: 128, 128>}, {pipeline_mode = #tpu.pipeline_mode<synchronous>, transform_indices = @transform_20, window_bounds = array<i64: 1, 128>}, {transform_indices = @transform_21, window_bounds = array<i64: 1, 1, 128>}, {transform_indices = @transform_22, window_bounds = array<i64: 1, 1, 128>}]} {
    %c0 = arith.constant 0 : index
    %c0_0 = arith.constant 0 : index
    %c0_1 = arith.constant 0 : index
    %0 = vector.load %arg1[%c0, %c0_0, %c0_1] : memref<1x16x48xf32, #tpu.memory_space<vmem>>, vector<1x16x48xf32>
    %1 = vector.shape_cast %0 : vector<1x16x48xf32> to vector<16x48xf32>
    %c0_2 = arith.constant 0 : index
    %c0_3 = arith.constant 0 : index
    %2 = vector.load %arg4[%c0_2, %c0_3] : memref<48x128xbf16, #tpu.memory_space<vmem>>, vector<48x128xbf16>
    %c0_4 = arith.constant 0 : index
    %c0_5 = arith.constant 0 : index
    %3 = vector.load %arg5[%c0_4, %c0_5] : memref<1x128xf32, #tpu.memory_space<vmem>>, vector<1x128xf32>
    %4 = arith.truncf %1 : vector<16x48xf32> to vector<16x48xbf16>
    %cst = arith.constant dense<0.000000e+00> : vector<16x128xf32>
    %5 = tpu.matmul %4, %2, %cst {dimension_numbers = #tpu.dot_dimension_numbers<[1], [0], [0], [1], [0, 0, 1, 1], [], []>} : vector<16x48xbf16>, vector<48x128xbf16>, vector<16x128xf32> -> vector<16x128xf32>
    %6 = vector.broadcast %3 : vector<1x128xf32> to vector<16x128xf32>
    %7 = arith.addf %5, %6 : vector<16x128xf32>
    %c0_6 = arith.constant 0 : index
    %c0_7 = arith.constant 0 : index
    %8 = vector.load %arg2[%c0_6, %c0_7] : memref<1x128xf32, #tpu.memory_space<vmem>>, vector<1x128xf32>
    %cst_8 = arith.constant 0.000000e+00 : f32
    %9 = vector.broadcast %cst_8 : f32 to vector<7x128xf32>
    %10 = tpu.concatenate %8, %7, %9 in 0 : vector<1x128xf32>, vector<16x128xf32>, vector<7x128xf32> -> vector<24x128xf32>
    %c0_9 = arith.constant 0 : index
    %c0_10 = arith.constant 0 : index
    %11 = vector.load %arg3[%c0_9, %c0_10] : memref<24x128xf32, #tpu.memory_space<vmem>>, vector<24x128xf32>
    %12 = arith.addf %10, %11 : vector<24x128xf32>
    %13 = tpu.iota {dimensions = array<i32: 1>} : vector<1x24xi32>
    %c17_i32 = arith.constant 17 : i32
    %14 = vector.broadcast %c17_i32 : i32 to vector<1x24xi32>
    %15 = arith.cmpi slt, %13, %14 : vector<1x24xi32>
    %cst_11 = arith.constant 0.000000e+00 : f32
    %cst_12 = arith.constant -1.000000e+30 : f32
    %16 = vector.broadcast %cst_11 : f32 to vector<1x24xf32>
    %17 = vector.broadcast %cst_12 : f32 to vector<1x24xf32>
    %18 = arith.select %15, %16, %17 : vector<1x24xi1>, vector<1x24xf32>
    %c0_13 = arith.constant 0 : index
    %c0_14 = arith.constant 0 : index
    %c0_15 = arith.constant 0 : index
    %19 = vector.load %arg6[%c0_13, %c0_14, %c0_15] : memref<2x1x128xf32, #tpu.memory_space<vmem>>, vector<1x1x128xf32>
    %20 = vector.shape_cast %19 : vector<1x1x128xf32> to vector<1x128xf32>
    %c0_16 = arith.constant 0 : index
    %c0_17 = arith.constant 0 : index
    %c0_18 = arith.constant 0 : index
    %21 = vector.load %arg7[%c0_16, %c0_17, %c0_18] : memref<2x1x128xf32, #tpu.memory_space<vmem>>, vector<1x1x128xf32>
    %22 = vector.shape_cast %21 : vector<1x1x128xf32> to vector<1x128xf32>
    %cst_19 = arith.constant dense<0.000000e+00> : vector<24xf32>
    %23 = vector.multi_reduction <add>, %12, %cst_19 [1] : vector<24x128xf32> to vector<24xf32>
    %24 = vector.shape_cast %23 : vector<24xf32> to vector<24x1xf32>
    %cst_20 = arith.constant 1.280000e+02 : f32
    %25 = vector.broadcast %cst_20 : f32 to vector<24x1xf32>
    %26 = arith.divf %24, %25 : vector<24x1xf32>
    %27 = vector.broadcast %26 : vector<24x1xf32> to vector<24x128xf32>
    %28 = arith.subf %12, %27 : vector<24x128xf32>
    %29 = arith.mulf %28, %28 : vector<24x128xf32>
    %cst_21 = arith.constant dense<0.000000e+00> : vector<24xf32>
    %30 = vector.multi_reduction <add>, %29, %cst_21 [1] : vector<24x128xf32> to vector<24xf32>
    %31 = vector.shape_cast %30 : vector<24xf32> to vector<24x1xf32>
    %cst_22 = arith.constant 1.280000e+02 : f32
    %32 = vector.broadcast %cst_22 : f32 to vector<24x1xf32>
    %33 = arith.divf %31, %32 : vector<24x1xf32>
    %34 = vector.broadcast %26 : vector<24x1xf32> to vector<24x128xf32>
    %35 = arith.subf %12, %34 : vector<24x128xf32>
    %cst_23 = arith.constant 9.99999997E-7 : f32
    %36 = vector.broadcast %cst_23 : f32 to vector<24x1xf32>
    %37 = arith.addf %33, %36 : vector<24x1xf32>
    %38 = math.rsqrt %37 : vector<24x1xf32>
    %39 = vector.broadcast %38 : vector<24x1xf32> to vector<24x128xf32>
    %40 = arith.mulf %35, %39 : vector<24x128xf32>
    %41 = vector.broadcast %20 : vector<1x128xf32> to vector<24x128xf32>
    %42 = arith.mulf %40, %41 : vector<24x128xf32>
    %43 = vector.broadcast %22 : vector<1x128xf32> to vector<24x128xf32>
    %44 = arith.addf %42, %43 : vector<24x128xf32>
    %c0_24 = arith.constant 0 : index
    %c0_25 = arith.constant 0 : index
    %c0_26 = arith.constant 0 : index
    %45 = vector.load %arg8[%c0_24, %c0_25, %c0_26] : memref<2x128x384xbf16, #tpu.memory_space<vmem>>, vector<1x128x384xbf16>
    %46 = vector.shape_cast %45 : vector<1x128x384xbf16> to vector<128x384xbf16>
    %c0_27 = arith.constant 0 : index
    %c0_28 = arith.constant 0 : index
    %c0_29 = arith.constant 0 : index
    %47 = vector.load %arg9[%c0_27, %c0_28, %c0_29] : memref<2x1x384xf32, #tpu.memory_space<vmem>>, vector<1x1x384xf32>
    %48 = vector.shape_cast %47 : vector<1x1x384xf32> to vector<1x384xf32>
    %49 = arith.truncf %44 : vector<24x128xf32> to vector<24x128xbf16>
    %cst_30 = arith.constant dense<0.000000e+00> : vector<24x384xf32>
    %50 = tpu.matmul %49, %46, %cst_30 {dimension_numbers = #tpu.dot_dimension_numbers<[1], [0], [0], [1], [0, 0, 1, 1], [], []>} : vector<24x128xbf16>, vector<128x384xbf16>, vector<24x384xf32> -> vector<24x384xf32>
    %51 = vector.broadcast %48 : vector<1x384xf32> to vector<24x384xf32>
    %52 = arith.addf %50, %51 : vector<24x384xf32>
    %53 = vector.extract_strided_slice %52 {offsets = [0, 0], sizes = [24, 32], strides = [1, 1]} : vector<24x384xf32> to vector<24x32xf32>
    %54 = vector.extract_strided_slice %52 {offsets = [0, 128], sizes = [24, 32], strides = [1, 1]} : vector<24x384xf32> to vector<24x32xf32>
    %55 = vector.extract_strided_slice %52 {offsets = [0, 256], sizes = [24, 32], strides = [1, 1]} : vector<24x384xf32> to vector<24x32xf32>
    %56 = arith.truncf %53 : vector<24x32xf32> to vector<24x32xbf16>
    %57 = arith.truncf %54 : vector<24x32xf32> to vector<24x32xbf16>
    %cst_31 = arith.constant dense<0.000000e+00> : vector<24x24xf32>
    %58 = tpu.matmul %56, %57, %cst_31 {dimension_numbers = #tpu.dot_dimension_numbers<[1], [1], [0], [0], [0, 0, 1, 0], [], []>} : vector<24x32xbf16>, vector<24x32xbf16>, vector<24x24xf32> -> vector<24x24xf32>
    %cst_32 = arith.constant 0.176776692 : f32
    %59 = vector.broadcast %cst_32 : f32 to vector<24x24xf32>
    %60 = arith.mulf %58, %59 : vector<24x24xf32>
    %61 = vector.broadcast %18 : vector<1x24xf32> to vector<24x24xf32>
    %62 = arith.addf %60, %61 : vector<24x24xf32>
    %cst_33 = arith.constant dense<0xFF800000> : vector<24xf32>
    %63 = vector.multi_reduction <maximumf>, %62, %cst_33 [1] : vector<24x24xf32> to vector<24xf32>
    %64 = vector.shape_cast %63 : vector<24xf32> to vector<24x1xf32>
    %65 = vector.broadcast %64 : vector<24x1xf32> to vector<24x24xf32>
    %66 = arith.subf %62, %65 : vector<24x24xf32>
    %67 = math.exp %66 : vector<24x24xf32>
    %cst_34 = arith.constant dense<0.000000e+00> : vector<24xf32>
    %68 = vector.multi_reduction <add>, %67, %cst_34 [1] : vector<24x24xf32> to vector<24xf32>
    %69 = vector.shape_cast %68 : vector<24xf32> to vector<24x1xf32>
    %70 = tpu.reciprocal %69 {approx = true} : vector<24x1xf32> -> vector<24x1xf32>
    %71 = vector.broadcast %70 : vector<24x1xf32> to vector<24x24xf32>
    %72 = arith.mulf %67, %71 : vector<24x24xf32>
    %73 = arith.truncf %72 : vector<24x24xf32> to vector<24x24xbf16>
    %74 = arith.truncf %55 : vector<24x32xf32> to vector<24x32xbf16>
    %cst_35 = arith.constant dense<0.000000e+00> : vector<24x32xf32>
    %75 = tpu.matmul %73, %74, %cst_35 {dimension_numbers = #tpu.dot_dimension_numbers<[1], [0], [0], [1], [0, 0, 1, 1], [], []>} : vector<24x24xbf16>, vector<24x32xbf16>, vector<24x32xf32> -> vector<24x32xf32>
    %76 = vector.extract_strided_slice %52 {offsets = [0, 32], sizes = [24, 32], strides = [1, 1]} : vector<24x384xf32> to vector<24x32xf32>
    %77 = vector.extract_strided_slice %52 {offsets = [0, 160], sizes = [24, 32], strides = [1, 1]} : vector<24x384xf32> to vector<24x32xf32>
    %78 = vector.extract_strided_slice %52 {offsets = [0, 288], sizes = [24, 32], strides = [1, 1]} : vector<24x384xf32> to vector<24x32xf32>
    %79 = arith.truncf %76 : vector<24x32xf32> to vector<24x32xbf16>
    %80 = arith.truncf %77 : vector<24x32xf32> to vector<24x32xbf16>
    %cst_36 = arith.constant dense<0.000000e+00> : vector<24x24xf32>
    %81 = tpu.matmul %79, %80, %cst_36 {dimension_numbers = #tpu.dot_dimension_numbers<[1], [1], [0], [0], [0, 0, 1, 0], [], []>} : vector<24x32xbf16>, vector<24x32xbf16>, vector<24x24xf32> -> vector<24x24xf32>
    %cst_37 = arith.constant 0.176776692 : f32
    %82 = vector.broadcast %cst_37 : f32 to vector<24x24xf32>
    %83 = arith.mulf %81, %82 : vector<24x24xf32>
    %84 = vector.broadcast %18 : vector<1x24xf32> to vector<24x24xf32>
    %85 = arith.addf %83, %84 : vector<24x24xf32>
    %cst_38 = arith.constant dense<0xFF800000> : vector<24xf32>
    %86 = vector.multi_reduction <maximumf>, %85, %cst_38 [1] : vector<24x24xf32> to vector<24xf32>
    %87 = vector.shape_cast %86 : vector<24xf32> to vector<24x1xf32>
    %88 = vector.broadcast %87 : vector<24x1xf32> to vector<24x24xf32>
    %89 = arith.subf %85, %88 : vector<24x24xf32>
    %90 = math.exp %89 : vector<24x24xf32>
    %cst_39 = arith.constant dense<0.000000e+00> : vector<24xf32>
    %91 = vector.multi_reduction <add>, %90, %cst_39 [1] : vector<24x24xf32> to vector<24xf32>
    %92 = vector.shape_cast %91 : vector<24xf32> to vector<24x1xf32>
    %93 = tpu.reciprocal %92 {approx = true} : vector<24x1xf32> -> vector<24x1xf32>
    %94 = vector.broadcast %93 : vector<24x1xf32> to vector<24x24xf32>
    %95 = arith.mulf %90, %94 : vector<24x24xf32>
    %96 = arith.truncf %95 : vector<24x24xf32> to vector<24x24xbf16>
    %97 = arith.truncf %78 : vector<24x32xf32> to vector<24x32xbf16>
    %cst_40 = arith.constant dense<0.000000e+00> : vector<24x32xf32>
    %98 = tpu.matmul %96, %97, %cst_40 {dimension_numbers = #tpu.dot_dimension_numbers<[1], [0], [0], [1], [0, 0, 1, 1], [], []>} : vector<24x24xbf16>, vector<24x32xbf16>, vector<24x32xf32> -> vector<24x32xf32>
    %99 = vector.extract_strided_slice %52 {offsets = [0, 64], sizes = [24, 32], strides = [1, 1]} : vector<24x384xf32> to vector<24x32xf32>
    %100 = vector.extract_strided_slice %52 {offsets = [0, 192], sizes = [24, 32], strides = [1, 1]} : vector<24x384xf32> to vector<24x32xf32>
    %101 = vector.extract_strided_slice %52 {offsets = [0, 320], sizes = [24, 32], strides = [1, 1]} : vector<24x384xf32> to vector<24x32xf32>
    %102 = arith.truncf %99 : vector<24x32xf32> to vector<24x32xbf16>
    %103 = arith.truncf %100 : vector<24x32xf32> to vector<24x32xbf16>
    %cst_41 = arith.constant dense<0.000000e+00> : vector<24x24xf32>
    %104 = tpu.matmul %102, %103, %cst_41 {dimension_numbers = #tpu.dot_dimension_numbers<[1], [1], [0], [0], [0, 0, 1, 0], [], []>} : vector<24x32xbf16>, vector<24x32xbf16>, vector<24x24xf32> -> vector<24x24xf32>
    %cst_42 = arith.constant 0.176776692 : f32
    %105 = vector.broadcast %cst_42 : f32 to vector<24x24xf32>
    %106 = arith.mulf %104, %105 : vector<24x24xf32>
    %107 = vector.broadcast %18 : vector<1x24xf32> to vector<24x24xf32>
    %108 = arith.addf %106, %107 : vector<24x24xf32>
    %cst_43 = arith.constant dense<0xFF800000> : vector<24xf32>
    %109 = vector.multi_reduction <maximumf>, %108, %cst_43 [1] : vector<24x24xf32> to vector<24xf32>
    %110 = vector.shape_cast %109 : vector<24xf32> to vector<24x1xf32>
    %111 = vector.broadcast %110 : vector<24x1xf32> to vector<24x24xf32>
    %112 = arith.subf %108, %111 : vector<24x24xf32>
    %113 = math.exp %112 : vector<24x24xf32>
    %cst_44 = arith.constant dense<0.000000e+00> : vector<24xf32>
    %114 = vector.multi_reduction <add>, %113, %cst_44 [1] : vector<24x24xf32> to vector<24xf32>
    %115 = vector.shape_cast %114 : vector<24xf32> to vector<24x1xf32>
    %116 = tpu.reciprocal %115 {approx = true} : vector<24x1xf32> -> vector<24x1xf32>
    %117 = vector.broadcast %116 : vector<24x1xf32> to vector<24x24xf32>
    %118 = arith.mulf %113, %117 : vector<24x24xf32>
    %119 = arith.truncf %118 : vector<24x24xf32> to vector<24x24xbf16>
    %120 = arith.truncf %101 : vector<24x32xf32> to vector<24x32xbf16>
    %cst_45 = arith.constant dense<0.000000e+00> : vector<24x32xf32>
    %121 = tpu.matmul %119, %120, %cst_45 {dimension_numbers = #tpu.dot_dimension_numbers<[1], [0], [0], [1], [0, 0, 1, 1], [], []>} : vector<24x24xbf16>, vector<24x32xbf16>, vector<24x32xf32> -> vector<24x32xf32>
    %122 = vector.extract_strided_slice %52 {offsets = [0, 96], sizes = [24, 32], strides = [1, 1]} : vector<24x384xf32> to vector<24x32xf32>
    %123 = vector.extract_strided_slice %52 {offsets = [0, 224], sizes = [24, 32], strides = [1, 1]} : vector<24x384xf32> to vector<24x32xf32>
    %124 = vector.extract_strided_slice %52 {offsets = [0, 352], sizes = [24, 32], strides = [1, 1]} : vector<24x384xf32> to vector<24x32xf32>
    %125 = arith.truncf %122 : vector<24x32xf32> to vector<24x32xbf16>
    %126 = arith.truncf %123 : vector<24x32xf32> to vector<24x32xbf16>
    %cst_46 = arith.constant dense<0.000000e+00> : vector<24x24xf32>
    %127 = tpu.matmul %125, %126, %cst_46 {dimension_numbers = #tpu.dot_dimension_numbers<[1], [1], [0], [0], [0, 0, 1, 0], [], []>} : vector<24x32xbf16>, vector<24x32xbf16>, vector<24x24xf32> -> vector<24x24xf32>
    %cst_47 = arith.constant 0.176776692 : f32
    %128 = vector.broadcast %cst_47 : f32 to vector<24x24xf32>
    %129 = arith.mulf %127, %128 : vector<24x24xf32>
    %130 = vector.broadcast %18 : vector<1x24xf32> to vector<24x24xf32>
    %131 = arith.addf %129, %130 : vector<24x24xf32>
    %cst_48 = arith.constant dense<0xFF800000> : vector<24xf32>
    %132 = vector.multi_reduction <maximumf>, %131, %cst_48 [1] : vector<24x24xf32> to vector<24xf32>
    %133 = vector.shape_cast %132 : vector<24xf32> to vector<24x1xf32>
    %134 = vector.broadcast %133 : vector<24x1xf32> to vector<24x24xf32>
    %135 = arith.subf %131, %134 : vector<24x24xf32>
    %136 = math.exp %135 : vector<24x24xf32>
    %cst_49 = arith.constant dense<0.000000e+00> : vector<24xf32>
    %137 = vector.multi_reduction <add>, %136, %cst_49 [1] : vector<24x24xf32> to vector<24xf32>
    %138 = vector.shape_cast %137 : vector<24xf32> to vector<24x1xf32>
    %139 = tpu.reciprocal %138 {approx = true} : vector<24x1xf32> -> vector<24x1xf32>
    %140 = vector.broadcast %139 : vector<24x1xf32> to vector<24x24xf32>
    %141 = arith.mulf %136, %140 : vector<24x24xf32>
    %142 = arith.truncf %141 : vector<24x24xf32> to vector<24x24xbf16>
    %143 = arith.truncf %124 : vector<24x32xf32> to vector<24x32xbf16>
    %cst_50 = arith.constant dense<0.000000e+00> : vector<24x32xf32>
    %144 = tpu.matmul %142, %143, %cst_50 {dimension_numbers = #tpu.dot_dimension_numbers<[1], [0], [0], [1], [0, 0, 1, 1], [], []>} : vector<24x24xbf16>, vector<24x32xbf16>, vector<24x32xf32> -> vector<24x32xf32>
    %145 = tpu.concatenate %75, %98, %121, %144 in 1 : vector<24x32xf32>, vector<24x32xf32>, vector<24x32xf32>, vector<24x32xf32> -> vector<24x128xf32>
    %c0_51 = arith.constant 0 : index
    %c0_52 = arith.constant 0 : index
    %c0_53 = arith.constant 0 : index
    %146 = vector.load %arg10[%c0_51, %c0_52, %c0_53] : memref<2x128x128xbf16, #tpu.memory_space<vmem>>, vector<1x128x128xbf16>
    %147 = vector.shape_cast %146 : vector<1x128x128xbf16> to vector<128x128xbf16>
    %c0_54 = arith.constant 0 : index
    %c0_55 = arith.constant 0 : index
    %c0_56 = arith.constant 0 : index
    %148 = vector.load %arg11[%c0_54, %c0_55, %c0_56] : memref<2x1x128xf32, #tpu.memory_space<vmem>>, vector<1x1x128xf32>
    %149 = vector.shape_cast %148 : vector<1x1x128xf32> to vector<1x128xf32>
    %150 = arith.truncf %145 : vector<24x128xf32> to vector<24x128xbf16>
    %cst_57 = arith.constant dense<0.000000e+00> : vector<24x128xf32>
    %151 = tpu.matmul %150, %147, %cst_57 {dimension_numbers = #tpu.dot_dimension_numbers<[1], [0], [0], [1], [0, 0, 1, 1], [], []>} : vector<24x128xbf16>, vector<128x128xbf16>, vector<24x128xf32> -> vector<24x128xf32>
    %152 = vector.broadcast %149 : vector<1x128xf32> to vector<24x128xf32>
    %153 = arith.addf %151, %152 : vector<24x128xf32>
    %154 = arith.addf %12, %153 : vector<24x128xf32>
    %c0_58 = arith.constant 0 : index
    %c0_59 = arith.constant 0 : index
    %c0_60 = arith.constant 0 : index
    %155 = vector.load %arg12[%c0_58, %c0_59, %c0_60] : memref<2x1x128xf32, #tpu.memory_space<vmem>>, vector<1x1x128xf32>
    %156 = vector.shape_cast %155 : vector<1x1x128xf32> to vector<1x128xf32>
    %c0_61 = arith.constant 0 : index
    %c0_62 = arith.constant 0 : index
    %c0_63 = arith.constant 0 : index
    %157 = vector.load %arg13[%c0_61, %c0_62, %c0_63] : memref<2x1x128xf32, #tpu.memory_space<vmem>>, vector<1x1x128xf32>
    %158 = vector.shape_cast %157 : vector<1x1x128xf32> to vector<1x128xf32>
    %cst_64 = arith.constant dense<0.000000e+00> : vector<24xf32>
    %159 = vector.multi_reduction <add>, %154, %cst_64 [1] : vector<24x128xf32> to vector<24xf32>
    %160 = vector.shape_cast %159 : vector<24xf32> to vector<24x1xf32>
    %cst_65 = arith.constant 1.280000e+02 : f32
    %161 = vector.broadcast %cst_65 : f32 to vector<24x1xf32>
    %162 = arith.divf %160, %161 : vector<24x1xf32>
    %163 = vector.broadcast %162 : vector<24x1xf32> to vector<24x128xf32>
    %164 = arith.subf %154, %163 : vector<24x128xf32>
    %165 = arith.mulf %164, %164 : vector<24x128xf32>
    %cst_66 = arith.constant dense<0.000000e+00> : vector<24xf32>
    %166 = vector.multi_reduction <add>, %165, %cst_66 [1] : vector<24x128xf32> to vector<24xf32>
    %167 = vector.shape_cast %166 : vector<24xf32> to vector<24x1xf32>
    %cst_67 = arith.constant 1.280000e+02 : f32
    %168 = vector.broadcast %cst_67 : f32 to vector<24x1xf32>
    %169 = arith.divf %167, %168 : vector<24x1xf32>
    %170 = vector.broadcast %162 : vector<24x1xf32> to vector<24x128xf32>
    %171 = arith.subf %154, %170 : vector<24x128xf32>
    %cst_68 = arith.constant 9.99999997E-7 : f32
    %172 = vector.broadcast %cst_68 : f32 to vector<24x1xf32>
    %173 = arith.addf %169, %172 : vector<24x1xf32>
    %174 = math.rsqrt %173 : vector<24x1xf32>
    %175 = vector.broadcast %174 : vector<24x1xf32> to vector<24x128xf32>
    %176 = arith.mulf %171, %175 : vector<24x128xf32>
    %177 = vector.broadcast %156 : vector<1x128xf32> to vector<24x128xf32>
    %178 = arith.mulf %176, %177 : vector<24x128xf32>
    %179 = vector.broadcast %158 : vector<1x128xf32> to vector<24x128xf32>
    %180 = arith.addf %178, %179 : vector<24x128xf32>
    %c0_69 = arith.constant 0 : index
    %c0_70 = arith.constant 0 : index
    %c0_71 = arith.constant 0 : index
    %181 = vector.load %arg14[%c0_69, %c0_70, %c0_71] : memref<2x128x512xbf16, #tpu.memory_space<vmem>>, vector<1x128x512xbf16>
    %182 = vector.shape_cast %181 : vector<1x128x512xbf16> to vector<128x512xbf16>
    %c0_72 = arith.constant 0 : index
    %c0_73 = arith.constant 0 : index
    %c0_74 = arith.constant 0 : index
    %183 = vector.load %arg15[%c0_72, %c0_73, %c0_74] : memref<2x1x512xf32, #tpu.memory_space<vmem>>, vector<1x1x512xf32>
    %184 = vector.shape_cast %183 : vector<1x1x512xf32> to vector<1x512xf32>
    %185 = arith.truncf %180 : vector<24x128xf32> to vector<24x128xbf16>
    %cst_75 = arith.constant dense<0.000000e+00> : vector<24x512xf32>
    %186 = tpu.matmul %185, %182, %cst_75 {dimension_numbers = #tpu.dot_dimension_numbers<[1], [0], [0], [1], [0, 0, 1, 1], [], []>} : vector<24x128xbf16>, vector<128x512xbf16>, vector<24x512xf32> -> vector<24x512xf32>
    %187 = vector.broadcast %184 : vector<1x512xf32> to vector<24x512xf32>
    %188 = arith.addf %186, %187 : vector<24x512xf32>
    %189 = arith.mulf %188, %188 : vector<24x512xf32>
    %190 = arith.mulf %188, %189 : vector<24x512xf32>
    %cst_76 = arith.constant 4.471500e-02 : f32
    %191 = vector.broadcast %cst_76 : f32 to vector<24x512xf32>
    %192 = arith.mulf %191, %190 : vector<24x512xf32>
    %193 = arith.addf %188, %192 : vector<24x512xf32>
    %cst_77 = arith.constant 0.797884583 : f32
    %194 = vector.broadcast %cst_77 : f32 to vector<24x512xf32>
    %195 = arith.mulf %194, %193 : vector<24x512xf32>
    %196 = math.tanh %195 : vector<24x512xf32>
    %cst_78 = arith.constant 1.000000e+00 : f32
    %197 = vector.broadcast %cst_78 : f32 to vector<24x512xf32>
    %198 = arith.addf %197, %196 : vector<24x512xf32>
    %cst_79 = arith.constant 5.000000e-01 : f32
    %199 = vector.broadcast %cst_79 : f32 to vector<24x512xf32>
    %200 = arith.mulf %199, %198 : vector<24x512xf32>
    %201 = arith.mulf %188, %200 : vector<24x512xf32>
    %c0_80 = arith.constant 0 : index
    %c0_81 = arith.constant 0 : index
    %c0_82 = arith.constant 0 : index
    %202 = vector.load %arg16[%c0_80, %c0_81, %c0_82] : memref<2x512x128xbf16, #tpu.memory_space<vmem>>, vector<1x512x128xbf16>
    %203 = vector.shape_cast %202 : vector<1x512x128xbf16> to vector<512x128xbf16>
    %c0_83 = arith.constant 0 : index
    %c0_84 = arith.constant 0 : index
    %c0_85 = arith.constant 0 : index
    %204 = vector.load %arg17[%c0_83, %c0_84, %c0_85] : memref<2x1x128xf32, #tpu.memory_space<vmem>>, vector<1x1x128xf32>
    %205 = vector.shape_cast %204 : vector<1x1x128xf32> to vector<1x128xf32>
    %206 = arith.truncf %201 : vector<24x512xf32> to vector<24x512xbf16>
    %cst_86 = arith.constant dense<0.000000e+00> : vector<24x128xf32>
    %207 = tpu.matmul %206, %203, %cst_86 {dimension_numbers = #tpu.dot_dimension_numbers<[1], [0], [0], [1], [0, 0, 1, 1], [], []>} : vector<24x512xbf16>, vector<512x128xbf16>, vector<24x128xf32> -> vector<24x128xf32>
    %208 = vector.broadcast %205 : vector<1x128xf32> to vector<24x128xf32>
    %209 = arith.addf %207, %208 : vector<24x128xf32>
    %210 = arith.addf %154, %209 : vector<24x128xf32>
    %c1 = arith.constant 1 : index
    %c0_87 = arith.constant 0 : index
    %c0_88 = arith.constant 0 : index
    %211 = vector.load %arg6[%c1, %c0_87, %c0_88] : memref<2x1x128xf32, #tpu.memory_space<vmem>>, vector<1x1x128xf32>
    %212 = vector.shape_cast %211 : vector<1x1x128xf32> to vector<1x128xf32>
    %c1_89 = arith.constant 1 : index
    %c0_90 = arith.constant 0 : index
    %c0_91 = arith.constant 0 : index
    %213 = vector.load %arg7[%c1_89, %c0_90, %c0_91] : memref<2x1x128xf32, #tpu.memory_space<vmem>>, vector<1x1x128xf32>
    %214 = vector.shape_cast %213 : vector<1x1x128xf32> to vector<1x128xf32>
    %cst_92 = arith.constant dense<0.000000e+00> : vector<24xf32>
    %215 = vector.multi_reduction <add>, %210, %cst_92 [1] : vector<24x128xf32> to vector<24xf32>
    %216 = vector.shape_cast %215 : vector<24xf32> to vector<24x1xf32>
    %cst_93 = arith.constant 1.280000e+02 : f32
    %217 = vector.broadcast %cst_93 : f32 to vector<24x1xf32>
    %218 = arith.divf %216, %217 : vector<24x1xf32>
    %219 = vector.broadcast %218 : vector<24x1xf32> to vector<24x128xf32>
    %220 = arith.subf %210, %219 : vector<24x128xf32>
    %221 = arith.mulf %220, %220 : vector<24x128xf32>
    %cst_94 = arith.constant dense<0.000000e+00> : vector<24xf32>
    %222 = vector.multi_reduction <add>, %221, %cst_94 [1] : vector<24x128xf32> to vector<24xf32>
    %223 = vector.shape_cast %222 : vector<24xf32> to vector<24x1xf32>
    %cst_95 = arith.constant 1.280000e+02 : f32
    %224 = vector.broadcast %cst_95 : f32 to vector<24x1xf32>
    %225 = arith.divf %223, %224 : vector<24x1xf32>
    %226 = vector.broadcast %218 : vector<24x1xf32> to vector<24x128xf32>
    %227 = arith.subf %210, %226 : vector<24x128xf32>
    %cst_96 = arith.constant 9.99999997E-7 : f32
    %228 = vector.broadcast %cst_96 : f32 to vector<24x1xf32>
    %229 = arith.addf %225, %228 : vector<24x1xf32>
    %230 = math.rsqrt %229 : vector<24x1xf32>
    %231 = vector.broadcast %230 : vector<24x1xf32> to vector<24x128xf32>
    %232 = arith.mulf %227, %231 : vector<24x128xf32>
    %233 = vector.broadcast %212 : vector<1x128xf32> to vector<24x128xf32>
    %234 = arith.mulf %232, %233 : vector<24x128xf32>
    %235 = vector.broadcast %214 : vector<1x128xf32> to vector<24x128xf32>
    %236 = arith.addf %234, %235 : vector<24x128xf32>
    %c1_97 = arith.constant 1 : index
    %c0_98 = arith.constant 0 : index
    %c0_99 = arith.constant 0 : index
    %237 = vector.load %arg8[%c1_97, %c0_98, %c0_99] : memref<2x128x384xbf16, #tpu.memory_space<vmem>>, vector<1x128x384xbf16>
    %238 = vector.shape_cast %237 : vector<1x128x384xbf16> to vector<128x384xbf16>
    %c1_100 = arith.constant 1 : index
    %c0_101 = arith.constant 0 : index
    %c0_102 = arith.constant 0 : index
    %239 = vector.load %arg9[%c1_100, %c0_101, %c0_102] : memref<2x1x384xf32, #tpu.memory_space<vmem>>, vector<1x1x384xf32>
    %240 = vector.shape_cast %239 : vector<1x1x384xf32> to vector<1x384xf32>
    %241 = arith.truncf %236 : vector<24x128xf32> to vector<24x128xbf16>
    %cst_103 = arith.constant dense<0.000000e+00> : vector<24x384xf32>
    %242 = tpu.matmul %241, %238, %cst_103 {dimension_numbers = #tpu.dot_dimension_numbers<[1], [0], [0], [1], [0, 0, 1, 1], [], []>} : vector<24x128xbf16>, vector<128x384xbf16>, vector<24x384xf32> -> vector<24x384xf32>
    %243 = vector.broadcast %240 : vector<1x384xf32> to vector<24x384xf32>
    %244 = arith.addf %242, %243 : vector<24x384xf32>
    %245 = vector.extract_strided_slice %244 {offsets = [0, 0], sizes = [24, 32], strides = [1, 1]} : vector<24x384xf32> to vector<24x32xf32>
    %246 = vector.extract_strided_slice %244 {offsets = [0, 128], sizes = [24, 32], strides = [1, 1]} : vector<24x384xf32> to vector<24x32xf32>
    %247 = vector.extract_strided_slice %244 {offsets = [0, 256], sizes = [24, 32], strides = [1, 1]} : vector<24x384xf32> to vector<24x32xf32>
    %248 = arith.truncf %245 : vector<24x32xf32> to vector<24x32xbf16>
    %249 = arith.truncf %246 : vector<24x32xf32> to vector<24x32xbf16>
    %cst_104 = arith.constant dense<0.000000e+00> : vector<24x24xf32>
    %250 = tpu.matmul %248, %249, %cst_104 {dimension_numbers = #tpu.dot_dimension_numbers<[1], [1], [0], [0], [0, 0, 1, 0], [], []>} : vector<24x32xbf16>, vector<24x32xbf16>, vector<24x24xf32> -> vector<24x24xf32>
    %cst_105 = arith.constant 0.176776692 : f32
    %251 = vector.broadcast %cst_105 : f32 to vector<24x24xf32>
    %252 = arith.mulf %250, %251 : vector<24x24xf32>
    %253 = vector.broadcast %18 : vector<1x24xf32> to vector<24x24xf32>
    %254 = arith.addf %252, %253 : vector<24x24xf32>
    %cst_106 = arith.constant dense<0xFF800000> : vector<24xf32>
    %255 = vector.multi_reduction <maximumf>, %254, %cst_106 [1] : vector<24x24xf32> to vector<24xf32>
    %256 = vector.shape_cast %255 : vector<24xf32> to vector<24x1xf32>
    %257 = vector.broadcast %256 : vector<24x1xf32> to vector<24x24xf32>
    %258 = arith.subf %254, %257 : vector<24x24xf32>
    %259 = math.exp %258 : vector<24x24xf32>
    %cst_107 = arith.constant dense<0.000000e+00> : vector<24xf32>
    %260 = vector.multi_reduction <add>, %259, %cst_107 [1] : vector<24x24xf32> to vector<24xf32>
    %261 = vector.shape_cast %260 : vector<24xf32> to vector<24x1xf32>
    %262 = tpu.reciprocal %261 {approx = true} : vector<24x1xf32> -> vector<24x1xf32>
    %263 = vector.broadcast %262 : vector<24x1xf32> to vector<24x24xf32>
    %264 = arith.mulf %259, %263 : vector<24x24xf32>
    %265 = arith.truncf %264 : vector<24x24xf32> to vector<24x24xbf16>
    %266 = arith.truncf %247 : vector<24x32xf32> to vector<24x32xbf16>
    %cst_108 = arith.constant dense<0.000000e+00> : vector<24x32xf32>
    %267 = tpu.matmul %265, %266, %cst_108 {dimension_numbers = #tpu.dot_dimension_numbers<[1], [0], [0], [1], [0, 0, 1, 1], [], []>} : vector<24x24xbf16>, vector<24x32xbf16>, vector<24x32xf32> -> vector<24x32xf32>
    %268 = vector.extract_strided_slice %244 {offsets = [0, 32], sizes = [24, 32], strides = [1, 1]} : vector<24x384xf32> to vector<24x32xf32>
    %269 = vector.extract_strided_slice %244 {offsets = [0, 160], sizes = [24, 32], strides = [1, 1]} : vector<24x384xf32> to vector<24x32xf32>
    %270 = vector.extract_strided_slice %244 {offsets = [0, 288], sizes = [24, 32], strides = [1, 1]} : vector<24x384xf32> to vector<24x32xf32>
    %271 = arith.truncf %268 : vector<24x32xf32> to vector<24x32xbf16>
    %272 = arith.truncf %269 : vector<24x32xf32> to vector<24x32xbf16>
    %cst_109 = arith.constant dense<0.000000e+00> : vector<24x24xf32>
    %273 = tpu.matmul %271, %272, %cst_109 {dimension_numbers = #tpu.dot_dimension_numbers<[1], [1], [0], [0], [0, 0, 1, 0], [], []>} : vector<24x32xbf16>, vector<24x32xbf16>, vector<24x24xf32> -> vector<24x24xf32>
    %cst_110 = arith.constant 0.176776692 : f32
    %274 = vector.broadcast %cst_110 : f32 to vector<24x24xf32>
    %275 = arith.mulf %273, %274 : vector<24x24xf32>
    %276 = vector.broadcast %18 : vector<1x24xf32> to vector<24x24xf32>
    %277 = arith.addf %275, %276 : vector<24x24xf32>
    %cst_111 = arith.constant dense<0xFF800000> : vector<24xf32>
    %278 = vector.multi_reduction <maximumf>, %277, %cst_111 [1] : vector<24x24xf32> to vector<24xf32>
    %279 = vector.shape_cast %278 : vector<24xf32> to vector<24x1xf32>
    %280 = vector.broadcast %279 : vector<24x1xf32> to vector<24x24xf32>
    %281 = arith.subf %277, %280 : vector<24x24xf32>
    %282 = math.exp %281 : vector<24x24xf32>
    %cst_112 = arith.constant dense<0.000000e+00> : vector<24xf32>
    %283 = vector.multi_reduction <add>, %282, %cst_112 [1] : vector<24x24xf32> to vector<24xf32>
    %284 = vector.shape_cast %283 : vector<24xf32> to vector<24x1xf32>
    %285 = tpu.reciprocal %284 {approx = true} : vector<24x1xf32> -> vector<24x1xf32>
    %286 = vector.broadcast %285 : vector<24x1xf32> to vector<24x24xf32>
    %287 = arith.mulf %282, %286 : vector<24x24xf32>
    %288 = arith.truncf %287 : vector<24x24xf32> to vector<24x24xbf16>
    %289 = arith.truncf %270 : vector<24x32xf32> to vector<24x32xbf16>
    %cst_113 = arith.constant dense<0.000000e+00> : vector<24x32xf32>
    %290 = tpu.matmul %288, %289, %cst_113 {dimension_numbers = #tpu.dot_dimension_numbers<[1], [0], [0], [1], [0, 0, 1, 1], [], []>} : vector<24x24xbf16>, vector<24x32xbf16>, vector<24x32xf32> -> vector<24x32xf32>
    %291 = vector.extract_strided_slice %244 {offsets = [0, 64], sizes = [24, 32], strides = [1, 1]} : vector<24x384xf32> to vector<24x32xf32>
    %292 = vector.extract_strided_slice %244 {offsets = [0, 192], sizes = [24, 32], strides = [1, 1]} : vector<24x384xf32> to vector<24x32xf32>
    %293 = vector.extract_strided_slice %244 {offsets = [0, 320], sizes = [24, 32], strides = [1, 1]} : vector<24x384xf32> to vector<24x32xf32>
    %294 = arith.truncf %291 : vector<24x32xf32> to vector<24x32xbf16>
    %295 = arith.truncf %292 : vector<24x32xf32> to vector<24x32xbf16>
    %cst_114 = arith.constant dense<0.000000e+00> : vector<24x24xf32>
    %296 = tpu.matmul %294, %295, %cst_114 {dimension_numbers = #tpu.dot_dimension_numbers<[1], [1], [0], [0], [0, 0, 1, 0], [], []>} : vector<24x32xbf16>, vector<24x32xbf16>, vector<24x24xf32> -> vector<24x24xf32>
    %cst_115 = arith.constant 0.176776692 : f32
    %297 = vector.broadcast %cst_115 : f32 to vector<24x24xf32>
    %298 = arith.mulf %296, %297 : vector<24x24xf32>
    %299 = vector.broadcast %18 : vector<1x24xf32> to vector<24x24xf32>
    %300 = arith.addf %298, %299 : vector<24x24xf32>
    %cst_116 = arith.constant dense<0xFF800000> : vector<24xf32>
    %301 = vector.multi_reduction <maximumf>, %300, %cst_116 [1] : vector<24x24xf32> to vector<24xf32>
    %302 = vector.shape_cast %301 : vector<24xf32> to vector<24x1xf32>
    %303 = vector.broadcast %302 : vector<24x1xf32> to vector<24x24xf32>
    %304 = arith.subf %300, %303 : vector<24x24xf32>
    %305 = math.exp %304 : vector<24x24xf32>
    %cst_117 = arith.constant dense<0.000000e+00> : vector<24xf32>
    %306 = vector.multi_reduction <add>, %305, %cst_117 [1] : vector<24x24xf32> to vector<24xf32>
    %307 = vector.shape_cast %306 : vector<24xf32> to vector<24x1xf32>
    %308 = tpu.reciprocal %307 {approx = true} : vector<24x1xf32> -> vector<24x1xf32>
    %309 = vector.broadcast %308 : vector<24x1xf32> to vector<24x24xf32>
    %310 = arith.mulf %305, %309 : vector<24x24xf32>
    %311 = arith.truncf %310 : vector<24x24xf32> to vector<24x24xbf16>
    %312 = arith.truncf %293 : vector<24x32xf32> to vector<24x32xbf16>
    %cst_118 = arith.constant dense<0.000000e+00> : vector<24x32xf32>
    %313 = tpu.matmul %311, %312, %cst_118 {dimension_numbers = #tpu.dot_dimension_numbers<[1], [0], [0], [1], [0, 0, 1, 1], [], []>} : vector<24x24xbf16>, vector<24x32xbf16>, vector<24x32xf32> -> vector<24x32xf32>
    %314 = vector.extract_strided_slice %244 {offsets = [0, 96], sizes = [24, 32], strides = [1, 1]} : vector<24x384xf32> to vector<24x32xf32>
    %315 = vector.extract_strided_slice %244 {offsets = [0, 224], sizes = [24, 32], strides = [1, 1]} : vector<24x384xf32> to vector<24x32xf32>
    %316 = vector.extract_strided_slice %244 {offsets = [0, 352], sizes = [24, 32], strides = [1, 1]} : vector<24x384xf32> to vector<24x32xf32>
    %317 = arith.truncf %314 : vector<24x32xf32> to vector<24x32xbf16>
    %318 = arith.truncf %315 : vector<24x32xf32> to vector<24x32xbf16>
    %cst_119 = arith.constant dense<0.000000e+00> : vector<24x24xf32>
    %319 = tpu.matmul %317, %318, %cst_119 {dimension_numbers = #tpu.dot_dimension_numbers<[1], [1], [0], [0], [0, 0, 1, 0], [], []>} : vector<24x32xbf16>, vector<24x32xbf16>, vector<24x24xf32> -> vector<24x24xf32>
    %cst_120 = arith.constant 0.176776692 : f32
    %320 = vector.broadcast %cst_120 : f32 to vector<24x24xf32>
    %321 = arith.mulf %319, %320 : vector<24x24xf32>
    %322 = vector.broadcast %18 : vector<1x24xf32> to vector<24x24xf32>
    %323 = arith.addf %321, %322 : vector<24x24xf32>
    %cst_121 = arith.constant dense<0xFF800000> : vector<24xf32>
    %324 = vector.multi_reduction <maximumf>, %323, %cst_121 [1] : vector<24x24xf32> to vector<24xf32>
    %325 = vector.shape_cast %324 : vector<24xf32> to vector<24x1xf32>
    %326 = vector.broadcast %325 : vector<24x1xf32> to vector<24x24xf32>
    %327 = arith.subf %323, %326 : vector<24x24xf32>
    %328 = math.exp %327 : vector<24x24xf32>
    %cst_122 = arith.constant dense<0.000000e+00> : vector<24xf32>
    %329 = vector.multi_reduction <add>, %328, %cst_122 [1] : vector<24x24xf32> to vector<24xf32>
    %330 = vector.shape_cast %329 : vector<24xf32> to vector<24x1xf32>
    %331 = tpu.reciprocal %330 {approx = true} : vector<24x1xf32> -> vector<24x1xf32>
    %332 = vector.broadcast %331 : vector<24x1xf32> to vector<24x24xf32>
    %333 = arith.mulf %328, %332 : vector<24x24xf32>
    %334 = arith.truncf %333 : vector<24x24xf32> to vector<24x24xbf16>
    %335 = arith.truncf %316 : vector<24x32xf32> to vector<24x32xbf16>
    %cst_123 = arith.constant dense<0.000000e+00> : vector<24x32xf32>
    %336 = tpu.matmul %334, %335, %cst_123 {dimension_numbers = #tpu.dot_dimension_numbers<[1], [0], [0], [1], [0, 0, 1, 1], [], []>} : vector<24x24xbf16>, vector<24x32xbf16>, vector<24x32xf32> -> vector<24x32xf32>
    %337 = tpu.concatenate %267, %290, %313, %336 in 1 : vector<24x32xf32>, vector<24x32xf32>, vector<24x32xf32>, vector<24x32xf32> -> vector<24x128xf32>
    %c1_124 = arith.constant 1 : index
    %c0_125 = arith.constant 0 : index
    %c0_126 = arith.constant 0 : index
    %338 = vector.load %arg10[%c1_124, %c0_125, %c0_126] : memref<2x128x128xbf16, #tpu.memory_space<vmem>>, vector<1x128x128xbf16>
    %339 = vector.shape_cast %338 : vector<1x128x128xbf16> to vector<128x128xbf16>
    %c1_127 = arith.constant 1 : index
    %c0_128 = arith.constant 0 : index
    %c0_129 = arith.constant 0 : index
    %340 = vector.load %arg11[%c1_127, %c0_128, %c0_129] : memref<2x1x128xf32, #tpu.memory_space<vmem>>, vector<1x1x128xf32>
    %341 = vector.shape_cast %340 : vector<1x1x128xf32> to vector<1x128xf32>
    %342 = arith.truncf %337 : vector<24x128xf32> to vector<24x128xbf16>
    %cst_130 = arith.constant dense<0.000000e+00> : vector<24x128xf32>
    %343 = tpu.matmul %342, %339, %cst_130 {dimension_numbers = #tpu.dot_dimension_numbers<[1], [0], [0], [1], [0, 0, 1, 1], [], []>} : vector<24x128xbf16>, vector<128x128xbf16>, vector<24x128xf32> -> vector<24x128xf32>
    %344 = vector.broadcast %341 : vector<1x128xf32> to vector<24x128xf32>
    %345 = arith.addf %343, %344 : vector<24x128xf32>
    %346 = arith.addf %210, %345 : vector<24x128xf32>
    %c1_131 = arith.constant 1 : index
    %c0_132 = arith.constant 0 : index
    %c0_133 = arith.constant 0 : index
    %347 = vector.load %arg12[%c1_131, %c0_132, %c0_133] : memref<2x1x128xf32, #tpu.memory_space<vmem>>, vector<1x1x128xf32>
    %348 = vector.shape_cast %347 : vector<1x1x128xf32> to vector<1x128xf32>
    %c1_134 = arith.constant 1 : index
    %c0_135 = arith.constant 0 : index
    %c0_136 = arith.constant 0 : index
    %349 = vector.load %arg13[%c1_134, %c0_135, %c0_136] : memref<2x1x128xf32, #tpu.memory_space<vmem>>, vector<1x1x128xf32>
    %350 = vector.shape_cast %349 : vector<1x1x128xf32> to vector<1x128xf32>
    %cst_137 = arith.constant dense<0.000000e+00> : vector<24xf32>
    %351 = vector.multi_reduction <add>, %346, %cst_137 [1] : vector<24x128xf32> to vector<24xf32>
    %352 = vector.shape_cast %351 : vector<24xf32> to vector<24x1xf32>
    %cst_138 = arith.constant 1.280000e+02 : f32
    %353 = vector.broadcast %cst_138 : f32 to vector<24x1xf32>
    %354 = arith.divf %352, %353 : vector<24x1xf32>
    %355 = vector.broadcast %354 : vector<24x1xf32> to vector<24x128xf32>
    %356 = arith.subf %346, %355 : vector<24x128xf32>
    %357 = arith.mulf %356, %356 : vector<24x128xf32>
    %cst_139 = arith.constant dense<0.000000e+00> : vector<24xf32>
    %358 = vector.multi_reduction <add>, %357, %cst_139 [1] : vector<24x128xf32> to vector<24xf32>
    %359 = vector.shape_cast %358 : vector<24xf32> to vector<24x1xf32>
    %cst_140 = arith.constant 1.280000e+02 : f32
    %360 = vector.broadcast %cst_140 : f32 to vector<24x1xf32>
    %361 = arith.divf %359, %360 : vector<24x1xf32>
    %362 = vector.broadcast %354 : vector<24x1xf32> to vector<24x128xf32>
    %363 = arith.subf %346, %362 : vector<24x128xf32>
    %cst_141 = arith.constant 9.99999997E-7 : f32
    %364 = vector.broadcast %cst_141 : f32 to vector<24x1xf32>
    %365 = arith.addf %361, %364 : vector<24x1xf32>
    %366 = math.rsqrt %365 : vector<24x1xf32>
    %367 = vector.broadcast %366 : vector<24x1xf32> to vector<24x128xf32>
    %368 = arith.mulf %363, %367 : vector<24x128xf32>
    %369 = vector.broadcast %348 : vector<1x128xf32> to vector<24x128xf32>
    %370 = arith.mulf %368, %369 : vector<24x128xf32>
    %371 = vector.broadcast %350 : vector<1x128xf32> to vector<24x128xf32>
    %372 = arith.addf %370, %371 : vector<24x128xf32>
    %c1_142 = arith.constant 1 : index
    %c0_143 = arith.constant 0 : index
    %c0_144 = arith.constant 0 : index
    %373 = vector.load %arg14[%c1_142, %c0_143, %c0_144] : memref<2x128x512xbf16, #tpu.memory_space<vmem>>, vector<1x128x512xbf16>
    %374 = vector.shape_cast %373 : vector<1x128x512xbf16> to vector<128x512xbf16>
    %c1_145 = arith.constant 1 : index
    %c0_146 = arith.constant 0 : index
    %c0_147 = arith.constant 0 : index
    %375 = vector.load %arg15[%c1_145, %c0_146, %c0_147] : memref<2x1x512xf32, #tpu.memory_space<vmem>>, vector<1x1x512xf32>
    %376 = vector.shape_cast %375 : vector<1x1x512xf32> to vector<1x512xf32>
    %377 = arith.truncf %372 : vector<24x128xf32> to vector<24x128xbf16>
    %cst_148 = arith.constant dense<0.000000e+00> : vector<24x512xf32>
    %378 = tpu.matmul %377, %374, %cst_148 {dimension_numbers = #tpu.dot_dimension_numbers<[1], [0], [0], [1], [0, 0, 1, 1], [], []>} : vector<24x128xbf16>, vector<128x512xbf16>, vector<24x512xf32> -> vector<24x512xf32>
    %379 = vector.broadcast %376 : vector<1x512xf32> to vector<24x512xf32>
    %380 = arith.addf %378, %379 : vector<24x512xf32>
    %381 = arith.mulf %380, %380 : vector<24x512xf32>
    %382 = arith.mulf %380, %381 : vector<24x512xf32>
    %cst_149 = arith.constant 4.471500e-02 : f32
    %383 = vector.broadcast %cst_149 : f32 to vector<24x512xf32>
    %384 = arith.mulf %383, %382 : vector<24x512xf32>
    %385 = arith.addf %380, %384 : vector<24x512xf32>
    %cst_150 = arith.constant 0.797884583 : f32
    %386 = vector.broadcast %cst_150 : f32 to vector<24x512xf32>
    %387 = arith.mulf %386, %385 : vector<24x512xf32>
    %388 = math.tanh %387 : vector<24x512xf32>
    %cst_151 = arith.constant 1.000000e+00 : f32
    %389 = vector.broadcast %cst_151 : f32 to vector<24x512xf32>
    %390 = arith.addf %389, %388 : vector<24x512xf32>
    %cst_152 = arith.constant 5.000000e-01 : f32
    %391 = vector.broadcast %cst_152 : f32 to vector<24x512xf32>
    %392 = arith.mulf %391, %390 : vector<24x512xf32>
    %393 = arith.mulf %380, %392 : vector<24x512xf32>
    %c1_153 = arith.constant 1 : index
    %c0_154 = arith.constant 0 : index
    %c0_155 = arith.constant 0 : index
    %394 = vector.load %arg16[%c1_153, %c0_154, %c0_155] : memref<2x512x128xbf16, #tpu.memory_space<vmem>>, vector<1x512x128xbf16>
    %395 = vector.shape_cast %394 : vector<1x512x128xbf16> to vector<512x128xbf16>
    %c1_156 = arith.constant 1 : index
    %c0_157 = arith.constant 0 : index
    %c0_158 = arith.constant 0 : index
    %396 = vector.load %arg17[%c1_156, %c0_157, %c0_158] : memref<2x1x128xf32, #tpu.memory_space<vmem>>, vector<1x1x128xf32>
    %397 = vector.shape_cast %396 : vector<1x1x128xf32> to vector<1x128xf32>
    %398 = arith.truncf %393 : vector<24x512xf32> to vector<24x512xbf16>
    %cst_159 = arith.constant dense<0.000000e+00> : vector<24x128xf32>
    %399 = tpu.matmul %398, %395, %cst_159 {dimension_numbers = #tpu.dot_dimension_numbers<[1], [0], [0], [1], [0, 0, 1, 1], [], []>} : vector<24x512xbf16>, vector<512x128xbf16>, vector<24x128xf32> -> vector<24x128xf32>
    %400 = vector.broadcast %397 : vector<1x128xf32> to vector<24x128xf32>
    %401 = arith.addf %399, %400 : vector<24x128xf32>
    %402 = arith.addf %346, %401 : vector<24x128xf32>
    %c0_160 = arith.constant 0 : index
    %c0_161 = arith.constant 0 : index
    %403 = vector.load %arg18[%c0_160, %c0_161] : memref<1x128xf32, #tpu.memory_space<vmem>>, vector<1x128xf32>
    %c0_162 = arith.constant 0 : index
    %c0_163 = arith.constant 0 : index
    %404 = vector.load %arg19[%c0_162, %c0_163] : memref<1x128xf32, #tpu.memory_space<vmem>>, vector<1x128xf32>
    %cst_164 = arith.constant dense<0.000000e+00> : vector<24xf32>
    %405 = vector.multi_reduction <add>, %402, %cst_164 [1] : vector<24x128xf32> to vector<24xf32>
    %406 = vector.shape_cast %405 : vector<24xf32> to vector<24x1xf32>
    %cst_165 = arith.constant 1.280000e+02 : f32
    %407 = vector.broadcast %cst_165 : f32 to vector<24x1xf32>
    %408 = arith.divf %406, %407 : vector<24x1xf32>
    %409 = vector.broadcast %408 : vector<24x1xf32> to vector<24x128xf32>
    %410 = arith.subf %402, %409 : vector<24x128xf32>
    %411 = arith.mulf %410, %410 : vector<24x128xf32>
    %cst_166 = arith.constant dense<0.000000e+00> : vector<24xf32>
    %412 = vector.multi_reduction <add>, %411, %cst_166 [1] : vector<24x128xf32> to vector<24xf32>
    %413 = vector.shape_cast %412 : vector<24xf32> to vector<24x1xf32>
    %cst_167 = arith.constant 1.280000e+02 : f32
    %414 = vector.broadcast %cst_167 : f32 to vector<24x1xf32>
    %415 = arith.divf %413, %414 : vector<24x1xf32>
    %416 = vector.broadcast %408 : vector<24x1xf32> to vector<24x128xf32>
    %417 = arith.subf %402, %416 : vector<24x128xf32>
    %cst_168 = arith.constant 9.99999997E-7 : f32
    %418 = vector.broadcast %cst_168 : f32 to vector<24x1xf32>
    %419 = arith.addf %415, %418 : vector<24x1xf32>
    %420 = math.rsqrt %419 : vector<24x1xf32>
    %421 = vector.broadcast %420 : vector<24x1xf32> to vector<24x128xf32>
    %422 = arith.mulf %417, %421 : vector<24x128xf32>
    %423 = vector.broadcast %403 : vector<1x128xf32> to vector<24x128xf32>
    %424 = arith.mulf %422, %423 : vector<24x128xf32>
    %425 = vector.broadcast %404 : vector<1x128xf32> to vector<24x128xf32>
    %426 = arith.addf %424, %425 : vector<24x128xf32>
    %427 = vector.extract_strided_slice %426 {offsets = [0, 0], sizes = [1, 128], strides = [1, 1]} : vector<24x128xf32> to vector<1x128xf32>
    %c0_169 = arith.constant 0 : index
    %c0_170 = arith.constant 0 : index
    %c0_171 = arith.constant 0 : index
    %428 = vector.load %arg22[%c0_169, %c0_170, %c0_171] : memref<1x1x128xf32, #tpu.memory_space<vmem>>, vector<1x1x128xf32>
    %429 = vector.shape_cast %428 : vector<1x1x128xf32> to vector<1x128xf32>
    %430 = vector.shape_cast %427 : vector<1x128xf32> to vector<1x1x128xf32>
    tpu.vector_store %arg22[%c0_169, %c0_170, %c0_171], %430 {strides = array<i32>} : memref<1x1x128xf32, #tpu.memory_space<vmem>>, vector<1x1x128xf32>,
    %c0_172 = arith.constant 0 : index
    %c0_173 = arith.constant 0 : index
    %431 = vector.load %arg20[%c0_172, %c0_173] : memref<128x128xbf16, #tpu.memory_space<vmem>>, vector<128x128xbf16>
    %c0_174 = arith.constant 0 : index
    %c0_175 = arith.constant 0 : index
    %432 = vector.load %arg21[%c0_174, %c0_175] : memref<1x128xf32, #tpu.memory_space<vmem>>, vector<1x128xf32>
    %433 = arith.truncf %427 : vector<1x128xf32> to vector<1x128xbf16>
    %cst_176 = arith.constant dense<0.000000e+00> : vector<1x128xf32>
    %434 = tpu.matmul %433, %431, %cst_176 {dimension_numbers = #tpu.dot_dimension_numbers<[1], [0], [0], [1], [0, 0, 1, 1], [], []>} : vector<1x128xbf16>, vector<128x128xbf16>, vector<1x128xf32> -> vector<1x128xf32>
    %435 = arith.addf %434, %432 : vector<1x128xf32>
    %c0_177 = arith.constant 0 : index
    %c0_178 = arith.constant 0 : index
    %c0_179 = arith.constant 0 : index
    %436 = vector.load %arg23[%c0_177, %c0_178, %c0_179] : memref<1x1x128xf32, #tpu.memory_space<vmem>>, vector<1x1x128xf32>
    %437 = vector.shape_cast %436 : vector<1x1x128xf32> to vector<1x128xf32>
    %438 = vector.shape_cast %435 : vector<1x128xf32> to vector<1x1x128xf32>
    tpu.vector_store %arg23[%c0_177, %c0_178, %c0_179], %438 {strides = array<i32>} : memref<1x1x128xf32, #tpu.memory_space<vmem>>, vector<1x1x128xf32>,
    return
  }
  func.func @transform_0(%arg0: i32) -> (i32, i32, i32) {
    %c0_i32 = arith.constant 0 : i32
    %c0_i32_0 = arith.constant 0 : i32
    %c0_i32_1 = arith.constant 0 : i32
    return %arg0, %c0_i32, %c0_i32_0 : i32, i32, i32
  }
  func.func @transform_1(%arg0: i32) -> (i32, i32) {
    %c0_i32 = arith.constant 0 : i32
    %c0_i32_0 = arith.constant 0 : i32
    %c0_i32_1 = arith.constant 0 : i32
    return %c0_i32, %c0_i32_0 : i32, i32
  }
  func.func @transform_2(%arg0: i32) -> (i32, i32) {
    %c0_i32 = arith.constant 0 : i32
    %c0_i32_0 = arith.constant 0 : i32
    %c0_i32_1 = arith.constant 0 : i32
    return %c0_i32, %c0_i32_0 : i32, i32
  }
  func.func @transform_3(%arg0: i32) -> (i32, i32) {
    %c0_i32 = arith.constant 0 : i32
    %c0_i32_0 = arith.constant 0 : i32
    %c0_i32_1 = arith.constant 0 : i32
    return %c0_i32, %c0_i32_0 : i32, i32
  }
  func.func @transform_4(%arg0: i32) -> (i32, i32) {
    %c0_i32 = arith.constant 0 : i32
    %c0_i32_0 = arith.constant 0 : i32
    %c0_i32_1 = arith.constant 0 : i32
    return %c0_i32, %c0_i32_0 : i32, i32
  }
  func.func @transform_5(%arg0: i32) -> (i32, i32, i32) {
    %c0_i32 = arith.constant 0 : i32
    %c0_i32_0 = arith.constant 0 : i32
    %c0_i32_1 = arith.constant 0 : i32
    %c0_i32_2 = arith.constant 0 : i32
    return %c0_i32, %c0_i32_0, %c0_i32_1 : i32, i32, i32
  }
  func.func @transform_6(%arg0: i32) -> (i32, i32, i32) {
    %c0_i32 = arith.constant 0 : i32
    %c0_i32_0 = arith.constant 0 : i32
    %c0_i32_1 = arith.constant 0 : i32
    %c0_i32_2 = arith.constant 0 : i32
    return %c0_i32, %c0_i32_0, %c0_i32_1 : i32, i32, i32
  }
  func.func @transform_7(%arg0: i32) -> (i32, i32, i32) {
    %c0_i32 = arith.constant 0 : i32
    %c0_i32_0 = arith.constant 0 : i32
    %c0_i32_1 = arith.constant 0 : i32
    %c0_i32_2 = arith.constant 0 : i32
    return %c0_i32, %c0_i32_0, %c0_i32_1 : i32, i32, i32
  }
  func.func @transform_8(%arg0: i32) -> (i32, i32, i32) {
    %c0_i32 = arith.constant 0 : i32
    %c0_i32_0 = arith.constant 0 : i32
    %c0_i32_1 = arith.constant 0 : i32
    %c0_i32_2 = arith.constant 0 : i32
    return %c0_i32, %c0_i32_0, %c0_i32_1 : i32, i32, i32
  }
  func.func @transform_9(%arg0: i32) -> (i32, i32, i32) {
    %c0_i32 = arith.constant 0 : i32
    %c0_i32_0 = arith.constant 0 : i32
    %c0_i32_1 = arith.constant 0 : i32
    %c0_i32_2 = arith.constant 0 : i32
    return %c0_i32, %c0_i32_0, %c0_i32_1 : i32, i32, i32
  }
  func.func @transform_10(%arg0: i32) -> (i32, i32, i32) {
    %c0_i32 = arith.constant 0 : i32
    %c0_i32_0 = arith.constant 0 : i32
    %c0_i32_1 = arith.constant 0 : i32
    %c0_i32_2 = arith.constant 0 : i32
    return %c0_i32, %c0_i32_0, %c0_i32_1 : i32, i32, i32
  }
  func.func @transform_11(%arg0: i32) -> (i32, i32, i32) {
    %c0_i32 = arith.constant 0 : i32
    %c0_i32_0 = arith.constant 0 : i32
    %c0_i32_1 = arith.constant 0 : i32
    %c0_i32_2 = arith.constant 0 : i32
    return %c0_i32, %c0_i32_0, %c0_i32_1 : i32, i32, i32
  }
  func.func @transform_12(%arg0: i32) -> (i32, i32, i32) {
    %c0_i32 = arith.constant 0 : i32
    %c0_i32_0 = arith.constant 0 : i32
    %c0_i32_1 = arith.constant 0 : i32
    %c0_i32_2 = arith.constant 0 : i32
    return %c0_i32, %c0_i32_0, %c0_i32_1 : i32, i32, i32
  }
  func.func @transform_13(%arg0: i32) -> (i32, i32, i32) {
    %c0_i32 = arith.constant 0 : i32
    %c0_i32_0 = arith.constant 0 : i32
    %c0_i32_1 = arith.constant 0 : i32
    %c0_i32_2 = arith.constant 0 : i32
    return %c0_i32, %c0_i32_0, %c0_i32_1 : i32, i32, i32
  }
  func.func @transform_14(%arg0: i32) -> (i32, i32, i32) {
    %c0_i32 = arith.constant 0 : i32
    %c0_i32_0 = arith.constant 0 : i32
    %c0_i32_1 = arith.constant 0 : i32
    %c0_i32_2 = arith.constant 0 : i32
    return %c0_i32, %c0_i32_0, %c0_i32_1 : i32, i32, i32
  }
  func.func @transform_15(%arg0: i32) -> (i32, i32, i32) {
    %c0_i32 = arith.constant 0 : i32
    %c0_i32_0 = arith.constant 0 : i32
    %c0_i32_1 = arith.constant 0 : i32
    %c0_i32_2 = arith.constant 0 : i32
    return %c0_i32, %c0_i32_0, %c0_i32_1 : i32, i32, i32
  }
  func.func @transform_16(%arg0: i32) -> (i32, i32, i32) {
    %c0_i32 = arith.constant 0 : i32
    %c0_i32_0 = arith.constant 0 : i32
    %c0_i32_1 = arith.constant 0 : i32
    %c0_i32_2 = arith.constant 0 : i32
    return %c0_i32, %c0_i32_0, %c0_i32_1 : i32, i32, i32
  }
  func.func @transform_17(%arg0: i32) -> (i32, i32) {
    %c0_i32 = arith.constant 0 : i32
    %c0_i32_0 = arith.constant 0 : i32
    %c0_i32_1 = arith.constant 0 : i32
    return %c0_i32, %c0_i32_0 : i32, i32
  }
  func.func @transform_18(%arg0: i32) -> (i32, i32) {
    %c0_i32 = arith.constant 0 : i32
    %c0_i32_0 = arith.constant 0 : i32
    %c0_i32_1 = arith.constant 0 : i32
    return %c0_i32, %c0_i32_0 : i32, i32
  }
  func.func @transform_19(%arg0: i32) -> (i32, i32) {
    %c0_i32 = arith.constant 0 : i32
    %c0_i32_0 = arith.constant 0 : i32
    %c0_i32_1 = arith.constant 0 : i32
    return %c0_i32, %c0_i32_0 : i32, i32
  }
  func.func @transform_20(%arg0: i32) -> (i32, i32) {
    %c0_i32 = arith.constant 0 : i32
    %c0_i32_0 = arith.constant 0 : i32
    %c0_i32_1 = arith.constant 0 : i32
    return %c0_i32, %c0_i32_0 : i32, i32
  }
  func.func @transform_21(%arg0: i32) -> (i32, i32, i32) {
    %c0_i32 = arith.constant 0 : i32
    %c0_i32_0 = arith.constant 0 : i32
    %c0_i32_1 = arith.constant 0 : i32
    return %arg0, %c0_i32, %c0_i32_0 : i32, i32, i32
  }
  func.func @transform_22(%arg0: i32) -> (i32, i32, i32) {
    %c0_i32 = arith.constant 0 : i32
    %c0_i32_0 = arith.constant 0 : i32
    %c0_i32_1 = arith.constant 0 : i32
    return %arg0, %c0_i32, %c0_i32_0 : i32, i32, i32
  }
}

</mosaic_0001>

<bundles_post_ra>
// kernel: backbone_and_fc.1
= control target key start
LH: loop header
LB: loop body
LE: loop exit
PB: predicated region body
PF: predicated region fallthrough
CT: control target
= control target key end

     0   :  { %s8463_s0 = inlined_call_operand.vmem [shape: f32[2,16,48], index: 0, kind: input, shape index: {}]   ;;  %s8464_s1 = inlined_call_operand.hbm [shape: f32[1,128], index: 1, kind: input, shape index: {}]   ;;  %s8465_s2 = inlined_call_operand.vmem [shape: f32[24,128], index: 2, kind: input, shape index: {}]   ;;  %s8466_s3 = inlined_call_operand.vmem [shape: bf16[48,128], index: 3, kind: input, shape index: {}]   ;;  %s8467_s4 = inlined_call_operand.vmem [shape: f32[1,128], index: 4, kind: input, shape index: {}]   ;;  %s8468_s5 = inlined_call_operand.vmem [shape: f32[2,1,128], index: 5, kind: input, shape index: {}]   ;;  %s8469_s6 = inlined_call_operand.vmem [shape: f32[2,1,128], index: 6, kind: input, shape index: {}]   ;;  %s8470_s7 = inlined_call_operand.vmem [shape: bf16[2,128,384], index: 7, kind: input, shape index: {}]   ;;  %s8471_s8 = inlined_call_operand.vmem [shape: f32[2,1,384], index: 8, kind: input, shape index: {}]   ;;  %s8472_s9 = inlined_call_operand.vmem [shape: bf16[2,128,128], index: 9, kind: input, shape index: {}]   ;;  %s8473_s10 = inlined_call_operand.vmem [shape: f32[2,1,128], index: 10, kind: input, shape index: {}]   ;;  %s8474_s11 = inlined_call_operand.vmem [shape: f32[2,1,128], index: 11, kind: input, shape index: {}]   ;;  %s8475_s12 = inlined_call_operand.vmem [shape: f32[2,1,128], index: 12, kind: input, shape index: {}]   ;;  %s8476_s13 = inlined_call_operand.vmem [shape: bf16[2,128,512], index: 13, kind: input, shape index: {}]   ;;  %s8477_s14 = inlined_call_operand.vmem [shape: f32[2,1,512], index: 14, kind: input, shape index: {}]   ;;  %s8478_s15 = inlined_call_operand.vmem [shape: bf16[2,512,128], index: 15, kind: input, shape index: {}]   ;;  %s8479_s16 = inlined_call_operand.hbm [shape: f32[2,1,128], index: 16, kind: input, shape index: {}]   ;;  %s8480_s17 = inlined_call_operand.vmem [shape: f32[1,128], index: 17, kind: input, shape index: {}]   ;;  %s8481_s18 = inlined_call_operand.vmem [shape: f32[1,128], index: 18, kind: input, shape index: {}]   ;;  %s8482_s19 = inlined_call_operand.vmem [shape: bf16[128,128], index: 19, kind: input, shape index: {}]   ;;  %s8483_s20 = inlined_call_operand.vmem [shape: f32[1,128], index: 20, kind: input, shape index: {}]   ;;  %s8484_s21 = inlined_call_operand.hbm [shape: f32[2,1,128], index: 21, kind: output, shape index: {0}]   ;;  %s8485_s22 = inlined_call_operand.hbm [shape: f32[2,1,128], index: 22, kind: output, shape index: {1}]  }
   0x1   :  { %8510 = sst [smem:[#allocation20_spill]] %s8463_s0 }
   0x2   :  { %8511 = sst [smem:[#allocation21_spill]] %s8464_s1 }
   0x3   :  { %8512 = sst [smem:[#allocation22_spill]] %s8465_s2 }
   0x4   :  { %8513 = sst [smem:[#allocation23_spill]] %s8466_s3 }
   0x5   :  { %8514 = sst [smem:[#allocation24_spill]] %s8467_s4 }
   0x6   :  { %8515 = sst [smem:[#allocation25_spill]] %s8468_s5 }
   0x7   :  { %8516 = sst [smem:[#allocation26_spill]] %s8469_s6 }
   0x8   :  { %8517 = sst [smem:[#allocation27_spill]] %s8470_s7 }
   0x9   :  { %8518 = sst [smem:[#allocation28_spill]] %s8471_s8 }
   0xa   :  { %8519 = sst [smem:[#allocation29_spill]] %s8479_s16 }
   0xb   :  { %8520 = sst [smem:[#allocation30_spill]] %s8483_s20 }
   0xc   :  { %8521 = sst [smem:[#allocation31_spill]] %s8485_s22 }
   0xd   :  { %28 = vsyncpa [#allocation3], 0 }
   0xe   :  { %29 = vsyncpa [#allocation6], 0 }
   0xf   :  { %30 = vsyncpa [#allocation4], 0 }
  0x10   :  { %32 = vsyncpa [#allocation4 + $0x1], 0 }
  0x11   :  { %33 = vsyncpa [#allocation9], 0 }
  0x12   :  { %35 = vsyncpa [#allocation9 + $0x1], 0  ;;  %s6888_s3 = smov 0   ;;  %s6890_s28 = smov 0  }
  0x13   :  { %s6892_s29 = smov 0   ;;  %s6894_s30 = smov 0  }
  0x14 LB: > { %8522 = sst [smem:[#allocation14_spill]] %s6746_s3  ;;  %s6909_s4 = sadd.s32 4294967295, %s6758_s30   ;;  %s6758_s30 = sphi %s6894_s30, %s8558_s30   ;;  %s6754_s29 = sphi %s6892_s29, %s8560_s29   ;;  %s6750_s28 = sphi %s6890_s28, %s8562_s28   ;;  %s6746_s3 = sphi %s6888_s3, %s8561_s3  }
  0x15   : > { %8523 = sst [smem:[#allocation15_spill]] %s6754_s29  ;;  %s5167_s0 = sadd.s32 4294967294, %s6758_s30  }
  0x16   : > { %8524 = sst [smem:[#allocation16_spill]] %s6758_s30  ;;  %s6913_s23 = sadd.s32 1, %s6758_s30  }
  0x17   : > { %8525 = sst [smem:[#allocation17_spill]] %s6913_s23  ;;  %s494_s1 = sadd.s32 1, %s6754_s29 }
  0x18   : > { %s491_s5 = ssub.s32 %s6758_s30, %s6913_s23  ;;  %p504_p0 = scmp.ne.s32.totalorder %s6754_s29, %s6750_s28 }
  0x19   : > { %p492_p1 = scmp.eq.s32.totalorder %s491_s5, 0  ;;  %p505_p2 = scmp.eq.s32.totalorder %s6909_s4, 1 }
  0x1a   : > { %p510_p3 = scmp.ne.s32.totalorder %s6750_s28, %s6746_s3  ;;  %p511_p4 = scmp.eq.s32.totalorder %s5167_s0, 1 }
  0x1b   : > { %s6924_s24 = scalar_select %p492_p1, %s6754_s29, %s494_s1  }
  0x1c   : > { %p6926_p5 = por %p505_p2, %p504_p0  ;;  %p6930_p6 = por %p511_p4, %p510_p3 }
  0x1d   : > { %8526 = sst [smem:[#allocation18_spill]] %s6924_s24  ;;  %p5168_p7 = scmp.ge.s32.totalorder %s6758_s30, 1 }
  0x1e   : > { %s8527_s6 = scalar_select %p6926_p5, 1, 0 }
  0x1f   : > { %s8528_s25 = scalar_select %p6930_p6, 1, 0 }
  0x20   : > { %p544_p8 = scmp.lt.s32.totalorder %s6758_s30, 3  ;;  %p8498_p9 = scmp.eq.s32.totalorder %s6909_s4, 0 }
  0x21   : > { %8529 = sst [smem:[#allocation19_spill]] %s8528_s25  ;;  %s6760_s2 = smov [#allocation2]  }
  0x22   : > { %p6937_p10 = pnand %p5168_p7, %p544_p8  ;;  %s557_s27 = sshll.u32 %s6760_s2, 4  ;;  %s558_s27 = int_to_ptr.vmem [resolvable:$true] %s557_s27 }
  0x23   : > { %s6761_s0 = smov [#allocation5]   ;;  %s8532_s23 = sld [smem:[#allocation21_spill]] }
  0x24   : > { %s8530_s26 = scalar_select %p6937_p10, 1, 0 }
  0x25   : > { %p6087_p11 = pneg %p6937_p10  ;;  %s609_s1 = sshll.u32 %s6761_s0, 4  ;;  %s6949_s1 = int_to_ptr.vmem [resolvable:$true] %s609_s1 }
  0x27   : > { %p6945_p12 = pnand %p8498_p9, %p6087_p11 }
  0x29   : > { %s6600_s25 = scalar_lea.hbm %s8532_s23, 16  ;;  %p6602_p0 = pneg %p6945_p12 }
  0x2a   : > { %p6601_p13 = scmp.ne.s32.totalorder %s8532_s23, %s6600_s25  ;;  %p6607_p3 = scmp.lt.u32.totalorder %s6600_s25, %s8532_s23 }
  0x2c   : > { %p6603_p1 = pnand %p6602_p0, %p6601_p13 }
  0x2e   : > { %p6604_p2 = pneg %p6603_p1 }
  0x30   : > { %p6609_p4 = pnand %p6607_p3, %p6604_p2 }
  0x32   : > { %6612 = shalt.err (!%p6609_p4)
}
  0x33   : > { %s6613_s22 = scalar_lea.vmem %s558_s27, 16  ;;  %s6620_s3 = scalar_lea.vmem %s558_s27, 32 }
  0x34   : > { %p6614_p7 = scmp.ne.s32.totalorder %s558_s27, %s6613_s22  ;;  %p6621_p9 = scmp.lt.s32.totalorder %s558_s27, %s558_s27 }
  0x35   : > { %p6622_p6 = scmp.lt.s32.totalorder %s6620_s3, %s6613_s22 }
  0x36   : > { %p6616_p8 = pnand %p6614_p7, %p6602_p0 }
  0x37   : > { %p6623_p5 = por %p6622_p6, %p6621_p9 }
  0x38   : > { %p6617_p11 = pneg %p6616_p8 }
  0x3a   : > { %p6624_p10 = pnand %p6623_p5, %p6617_p11 }
  0x3c   : > { %6627 = shalt.err (!%p6624_p10)
}
  0x3d   : > { %6090 = dma.hbm_to_vmem [thread:$0]  (!%p6945_p12), %s8532_s23, 16, %s558_s27, [#allocation3]  }
  0x3e   : > { %s8533_s16 = sld [smem:[#allocation29_spill]] }
  0x44   : > { %s6628_s2 = scalar_lea.hbm %s8533_s16, 32 }
  0x45   : > { %p6629_p13 = scmp.ne.s32.totalorder %s8533_s16, %s6628_s2  ;;  %p6635_p9 = scmp.lt.u32.totalorder %s6628_s2, %s8533_s16 }
  0x47   : > { %p6631_p6 = pnand %p6629_p13, %p6602_p0 }
  0x49   : > { %p6632_p5 = pneg %p6631_p6 }
  0x4b   : > { %p6637_p10 = pnand %p6635_p9, %p6632_p5 }
  0x4d   : > { %6640 = shalt.err (!%p6637_p10)
}
  0x4e   : > { %s6641_s27 = scalar_lea.vmem %s6949_s1, 32  ;;  %p6649_p4 = scmp.lt.s32.totalorder %s6949_s1, %s6949_s1 }
  0x4f   : > { %p6642_p1 = scmp.ne.s32.totalorder %s6949_s1, %s6641_s27  ;;  %p6650_p7 = scmp.lt.s32.totalorder %s6641_s27, %s6641_s27 }
  0x51   : > { %p6644_p2 = pnand %p6642_p1, %p6602_p0  ;;  %p6651_p8 = por %p6650_p7, %p6649_p4 }
  0x53   : > { %p6645_p3 = pneg %p6644_p2 }
  0x55   : > { %p6652_p11 = pnand %p6651_p8, %p6645_p3 }
  0x57   : > { %6655 = shalt.err (!%p6652_p11)
}
  0x58   : > { %s6762_s20 = smov 16   ;;  %s6763_s29 = smov 1  }
  0x59   : > { %6093 = dma.hbm_to_vmem [thread:$0]  (!%p6945_p12), %s8533_s16, 32, %s6949_s1, [#allocation6], %s6762_s20, %s6762_s20, %s6763_s29  }
  0x5a   : > { %p8534_p13 = scmp.ne.s32.totalorder %s8530_s26, 0 }
  0x5b   : > { %p8535_p0 = scmp.eq.s32.totalorder (!%p8534_p13), %s6909_s4, 0 }
  0x5c   : > { %645 = sbr.rel (%p8534_p13) target bundleno = 8635 (0x21bb), region = 104 }
  0x63   : > { %6729 = dma.done.wait (%p8535_p0), [#allocation3], 16   ;;  %p8536_p6 = pmov %p8535_p0 }
  0x64   : > { %p8537_p5 = pmov %p8535_p0 }
  0x65   : > { %6731 = vsyncadd (%p8536_p6), [#allocation3], 4294967280 }
  0x66   : > { %6733 = dma.done.wait (%p8537_p5), [#allocation6], 32   ;;  %p8538_p9 = pmov %p8535_p0 }
  0x67   : > { %p714_p10 = scmp.lt.s32.totalorder %s6909_s4, 1  ;;  %v6764_v0 = vmov 0.0   ;;  %vm6765_vm0 = vmmov 0   ;;  %s8539_s2 = sld [smem:[#allocation23_spill]]  ;;  %vm754_vm1 = vcmask 392192   ;;  %vm802_vm2 = vcmask 1040384  }
  0x68   : > { %6735 = vsyncadd (%p8538_p9), [#allocation6], 4294967264  ;;  %5813 = vmatprep.subr.bf16.mxu0 %v6764_v0  ;;  %5819 = vmatprep.mubr.msk.bf16.mxu0 %vm6765_vm0, %v6764_v0  ;;  %s8540_s3 = sld [smem:[#allocation20_spill]]  ;;  %s8541_s5 = sld [smem:[#allocation24_spill]]  ;;  %v799_v12 = vld [vmem:[#allocation2] sm:$0x1] }
  0x69   : > { %s715_s26 = scalar_select %p714_p10, %s6909_s4, 1  ;;  %v6766_v58 = vmov 0   ;;  %vm1157_vm3 = vcmask 261120   ;;  %vm1268_vm4 = vcmask 1043456   ;;  %vm1224_vm6 = vcmask 195584  }
  0x6a   : > { %s8542_s22 = sld [smem:[#allocation22_spill]]  ;;  %s8543_s7 = sld [smem:[#allocation27_spill]]  ;;  %1086 = vmatprep.mubr.bf16.mxu1 %v6766_v58  ;;  %vm1878_vm7 = vcmask 523264   ;;  %vm1882_vm8 = vcmask 785408  }
  0x6b   : > { %s5583_s1 = sshll.u32 %s715_s26, 4  ;;  %s8544_s0 = sld [smem:[#allocation25_spill]] }
  0x6c   : > { %s8545_s20 = sld [smem:[#allocation26_spill]]  ;;  %s8546_s8 = sld [smem:[#allocation28_spill]] }
  0x6d   : > { %v6179_v1 = vld [vmem:[%s8539_s2] sm:$0xff]   ;;  %v6180_v2 = vld [vmem:[%s8539_s2 + $0x8] sm:$0xff]   ;;  %v6181_v3 = vld [vmem:[%s8539_s2 + $0x10] sm:$0xff]   ;;  %s8505_s24 = smov 96   ;;  %s8503_s26 = smov 64  }
  0x6e   : > { %s718_s27 = scalar_lea.vmem %s8540_s3, %s5583_s1  ;;  %5814 = vmatpush3.bf16.msra.mxu0 %v6179_v1  ;;  %v5177_v7 = vld [vmem:[%s8541_s5] ss:$0 sm:$0xff]  ;;  %s8501_s1 = smov 32  }
  0x6f   : > { %5815 = vmatprep.subr.bf16.mxu0 %v6764_v0  ;;  %v720_v4 = vld [vmem:[%s718_s27] sm:$0xff]  ;;  %v721_v5 = vld [vmem:[%s718_s27 + $0x8] sm:$0xff]  ;;  %s8547_s27 = smov 96   ;;  %s8548_s29 = smov 64  }
  0x70   : > { %v729_v6 = vpack.c.bf16 %v721_v5, %v720_v4  ;;  %v811_v16 = vld [vmem:[%s8542_s22] sm:$0xff]  ;;  %v813_v19 = vld [vmem:[%s8542_s22 + $0x10] sm:$0xff]  ;;  %v812_v23 = vld [vmem:[%s8542_s22 + $0x8] sm:$0xff]  ;;  %s8549_s30 = smov 32   ;;  %p8550_p1 = scmp.ne.s32.totalorder %s8527_s6, 0 }
  0x71   : > { %v6182_v26 = vld [vmem:[%s8543_s7 + $0x4] ss:$12 sps:$4 sm:$0xff]   ;;  %v6184_v27 = vld [vmem:[%s8543_s7] ss:$12 sps:$4 sm:$0xff]   ;;  %v6185_v28 = vld [vmem:[%s8543_s7 + $0x8] ss:$12 sps:$4 sm:$0xff]  }
  0x72   : > { %5816 = vmatpush3.bf16.msra.mxu0 %v6180_v2  ;;  %v6186_v29 = vld [vmem:[%s8543_s7 + $0x1c] ss:$12 sps:$4 sm:$0xff]   ;;  %1054 = vmatprep.subr.bf16.mxu1 %v6182_v26  ;;  %v6188_v42 = vld [vmem:[%s8543_s7 + $0x18] ss:$12 sps:$4 sm:$0xff]   ;;  %v6189_v43 = vld [vmem:[%s8543_s7 + $0x20] ss:$12 sps:$4 sm:$0xff]  }
  0x73   : > { %5817 = vmatprep.subr.bf16.mxu0 %v6764_v0  ;;  %1055 = vmatpush1.bf16.msra.mxu1 %v6184_v27  ;;  %v6190_v44 = vld [vmem:[%s8543_s7 + $0x34] ss:$12 sps:$4 sm:$0xff]   ;;  %v6192_v45 = vld [vmem:[%s8543_s7 + $0x30] ss:$12 sps:$4 sm:$0xff]   ;;  %v6193_v46 = vld [vmem:[%s8543_s7 + $0x38] ss:$12 sps:$4 sm:$0xff]  }
  0x74   : > { %1056 = vmatprep.subr.bf16.mxu1 %v6186_v29  ;;  %v6194_v47 = vld [vmem:[%s8543_s7 + $0x4c] ss:$12 sps:$4 sm:$0xff]   ;;  %v6196_v48 = vld [vmem:[%s8543_s7 + $0x48] ss:$12 sps:$4 sm:$0xff]   ;;  %v6197_v49 = vld [vmem:[%s8543_s7 + $0x50] ss:$12 sps:$4 sm:$0xff]  }
  0x75   : > { %v6198_v50 = vld [vmem:[%s8543_s7 + $0x64] ss:$12 sps:$4 sm:$0xff]   ;;  %v6200_v51 = vld [vmem:[%s8543_s7 + $0x60] ss:$12 sps:$4 sm:$0xff]   ;;  %v6201_v52 = vld [vmem:[%s8543_s7 + $0x68] ss:$12 sps:$4 sm:$0xff]  }
  0x76   : > { %5818 = vmatpush3.bf16.msra.mxu0 %v6181_v3  ;;  %v6202_v53 = vld [vmem:[%s8543_s7 + $0x7c] ss:$12 sps:$4 sm:$0xff]   ;;  %v6205_v54 = vld [vmem:[%s8543_s7 + $0x80] ss:$12 sps:$4 sm:$0xff]   ;;  %v6204_v55 = vld [vmem:[%s8543_s7 + $0x78] ss:$12 sps:$4 sm:$0xff]  }
  0x77   : > { %5823 = vmatprep.subr.bf16.mxu0 %v6185_v28  ;;  %1057 = vmatpush1.bf16.msra.mxu1 %v6188_v42  ;;  %v6206_v56 = vld [vmem:[%s8543_s7 + $0x94] ss:$12 sps:$4 sm:$0xff]   ;;  %v6209_v57 = vld [vmem:[%s8543_s7 + $0x98] ss:$12 sps:$4 sm:$0xff]   ;;  %v6208_v59 = vld [vmem:[%s8543_s7 + $0x90] ss:$12 sps:$4 sm:$0xff]  }
  0x78   : > { %1058 = vmatprep.subr.bf16.mxu1 %v6190_v44  ;;  %v6210_v60 = vld [vmem:[%s8543_s7 + $0xac] ss:$12 sps:$4 sm:$0xff]   ;;  %v6213_v61 = vld [vmem:[%s8543_s7 + $0xb0] ss:$12 sps:$4 sm:$0xff]   ;;  %v6212_v62 = vld [vmem:[%s8543_s7 + $0xa8] ss:$12 sps:$4 sm:$0xff]  }
  0x79   : > { %5820 = vmatmul.mubr.msk.bf16.vlgmr.msra.gmra.mrb[0].mxu0 %vm754_vm1, %v729_v6  ;;  %s6771_s25 = smov [#allocation7]  }
  0x7a   : > { %5824 = vmatpush3.bf16.msra.mxu0 %v6185_v28  ;;  %v817_v28 = vlaneseq  ;;  %s6660_s3 = sshll.u32 %s6771_s25, 4  ;;  %s6661_s3 = int_to_ptr.vmem [resolvable:$false] %s6660_s3 }
  0x7b   : > { %5825 = vmatprep.subr.bf16.mxu0 %v6189_v43  ;;  %1059 = vmatpush1.bf16.msra.mxu1 %v6192_v45 }
  0x7c   : > { %1060 = vmatprep.subr.bf16.mxu1 %v6194_v47  ;;  %v7147_v29 = vshrl.u32 %v817_v28, 7 }
  0x7e   : > { %5826 = vmatpush3.bf16.msra.mxu0 %v6189_v43 }
  0x7f   : > { %5827 = vmatprep.subr.bf16.mxu0 %v6193_v46  ;;  %1061 = vmatpush1.bf16.msra.mxu1 %v6196_v48 }
  0x80   : > { %1062 = vmatprep.subr.bf16.mxu1 %v6198_v50 }
  0x82   : > { %5828 = vmatpush3.bf16.msra.mxu0 %v6193_v46 }
  0x83   : > { %5829 = vmatprep.subr.bf16.mxu0 %v6197_v49  ;;  %1063 = vmatpush1.bf16.msra.mxu1 %v6200_v51 }
  0x84   : > { %1064 = vmatprep.subr.bf16.mxu1 %v6202_v53 }
  0x86   : > { %5830 = vmatpush3.bf16.msra.mxu0 %v6197_v49 }
  0x87   : > { %5831 = vmatprep.subr.bf16.mxu0 %v6201_v52  ;;  %1065 = vmatpush1.bf16.msra.mxu1 %v6204_v55 }
  0x88   : > { %1066 = vmatprep.subr.bf16.mxu1 %v6206_v56 }
  0x8a   : > { %5832 = vmatpush3.bf16.msra.mxu0 %v6201_v52 }
  0x8b   : > { %5833 = vmatprep.subr.bf16.mxu0 %v6205_v54  ;;  %1067 = vmatpush1.bf16.msra.mxu1 %v6208_v59 }
  0x8c   : > { %1068 = vmatprep.subr.bf16.mxu1 %v6210_v60 }
  0x8e   : > { %5834 = vmatpush3.bf16.msra.mxu0 %v6205_v54 }
  0x8f   : > { %5835 = vmatprep.subr.bf16.mxu0 %v6209_v57  ;;  %1069 = vmatpush1.bf16.msra.mxu1 %v6212_v62 }
  0x92   : > { %5836 = vmatpush3.bf16.msra.mxu0 %v6209_v57 }
  0x93   : > { %5837 = vmatprep.subr.bf16.mxu0 %v6213_v61 }
  0x96   : > { %5838 = vmatpush3.bf16.msra.mxu0 %v6213_v61 }
 0x14c   : > { %v792_v8 = vpop.f32.mrb[0].mxu0 }
 0x14d   : > { %v793_v9 = vadd.f32 %v5177_v7, %v792_v8  ;;  %v5821_v10 = vpop.f32.mrb[1].mxu0 }
 0x14e   : > { %v795_v11 = vpop.f32.mrb[2].mxu0 }
 0x14f   : > { %v803_v13 = vrot.slane %v793_v9, 7  ;;  %v796_v14 = vadd.f32 %v5177_v7, %v795_v11  ;;  %v5822_v15 = vpop.f32.mrb[3].mxu0  ;;  %v5182_v11 = vld [vmem:[%s8544_s0] ss:$0 sm:$0xff] }
 0x151   : > { %v804_v17 = vrot.slane %v796_v14, 7  ;;  %v809_v18 = vsel %vm802_vm2, %v799_v12, %v803_v13 }
 0x152   : > { %v7036_v20 = vadd.f32 %v811_v16, %v809_v18 }
 0x153   : > { %v810_v21 = vsel %vm802_vm2, %v804_v17, 0.0  ;;  %v805_v22 = vsel %vm802_vm2, %v803_v13, %v804_v17  ;;  %v5183_v17 = vld [vmem:[%s8545_s20] ss:$0 sm:$0xff] }
 0x154   : > { %823 = vadd.xlane.f32.xlu0 %v7036_v20  ;;  %v7042_v24 = vadd.f32 %v813_v19, %v810_v21  ;;  %v7045_v25 = vadd.f32 %v812_v23, %v805_v22 }
 0x156   : > { %827 = vadd.xlane.f32.xlu1 %v7042_v24 }
 0x158   : > { %825 = vadd.xlane.f32.xlu0 %v7045_v25 }
 0x1e1   : > { %v824_v30 = vpop.xlane.xlu0 %823 }
 0x1e2   : > { %v830_v31 = vmul.f32 0.0078125, %v824_v30  ;;  %v7150_v30 = vsub.s32 0, %v7147_v29 }
 0x1e3   : > { %v828_v32 = vpop.xlane.xlu1 %827 }
 0x1e4   : > { %v832_v33 = vmul.f32 0.0078125, %v828_v32  ;;  %v7061_v34 = vsub.f32 %v7036_v20, %v830_v31  ;;  %v907_v31 = vld [vmem:[%s8546_s8] sm:$0x7]  ;;  %v7156_v32 = vsub.s32 1, %v7147_v29 }
 0x1e5   : > { %v826_v35 = vpop.xlane.xlu0 %825 }
 0x1e6   : > { %v831_v36 = vmul.f32 0.0078125, %v826_v35  ;;  %v836_v37 = vmul.f32 %v7061_v34, %v7061_v34  ;;  %v7066_v38 = vsub.f32 %v7042_v24, %v832_v33  ;;  %v7159_v33 = vsub.s32 2, %v7147_v29 }
 0x1e8   : > { %839 = vadd.xlane.f32.xlu1 %v836_v37  ;;  %v7069_v39 = vsub.f32 %v7045_v25, %v831_v36  ;;  %v838_v40 = vmul.f32 %v7066_v38, %v7066_v38  ;;  %v918_v36 = vrot.slane %v907_v31, %v7156_v32 }
 0x1ea   : > { %v837_v41 = vmul.f32 %v7069_v39, %v7069_v39 }
 0x1ec   : > { %843 = vadd.xlane.f32.xlu1 %v838_v40  ;;  %841 = vadd.xlane.f32.xlu0 %v837_v41 }
 0x275   : > { %v840_v63 = vpop.xlane.xlu1 %839 }
 0x276   : > { %v845_v1 = vmul.f32 0.0078125, %v840_v63 }
 0x278   : > { %v848_v2 = vadd.f32 1e-06, %v845_v1 }
 0x279   : > { %v844_v3 = vpop.xlane.xlu1 %843  ;;  %v842_v4 = vpop.xlane.xlu0 %841 }
 0x27a   : > { %6430 = vrsqrt.f32 %v848_v2  ;;  %v847_v5 = vmul.f32 0.0078125, %v844_v3  ;;  %v846_v6 = vmul.f32 0.0078125, %v842_v4 }
 0x27c   : > { %v850_v7 = vadd.f32 1e-06, %v847_v5  ;;  %v849_v8 = vadd.f32 1e-06, %v846_v6 }
 0x27e   : > { %6432 = vrsqrt.f32 %v850_v7 }
 0x27f   : > { %6434 = vrsqrt.f32 %v849_v8 }
 0x284   : > { %v6431_v9 = vpop.eup %6430 }
 0x285   : > { %v854_v10 = vmul.f32 %v6431_v9, %v7061_v34  ;;  %v914_v34 = vrot.slane %v907_v31, %v7150_v30 }
 0x287   : > { %v863_v16 = vmul.f32 %v5182_v11, %v854_v10 }
 0x288   : > { %v6433_v12 = vpop.eup %6432 }
 0x289   : > { %v6435_v13 = vpop.eup %6434  ;;  %v856_v14 = vmul.f32 %v6433_v12, %v7066_v38  ;;  %v872_v22 = vadd.f32 %v5183_v17, %v863_v16  ;;  %v922_v38 = vrot.slane %v907_v31, %v7159_v33 }
 0x28a   : > { %v855_v15 = vmul.f32 %v6435_v13, %v7069_v39  ;;  %v6768_v13 = vmov -1e+30  }
 0x28b   : > { %v865_v18 = vmul.f32 %v5182_v11, %v856_v14 }
 0x28c   : > { %v864_v19 = vmul.f32 %v5182_v11, %v855_v15  ;;  %v818_v11 = vand.u32 127, %v817_v28 }
 0x28d   : > { %v874_v21 = vadd.f32 %v5183_v17, %v865_v18 }
 0x28e   : > { %v873_v23 = vadd.f32 %v5183_v17, %v864_v19  ;;  %vm819_vm5 = vcmp.lt.s32.totalorder %v818_v11, 17 }
 0x28f   : > { %v909_v26 = vpack.c.bf16 %v874_v21, %v874_v21  ;;  %v7209_v14 = vsel %vm819_vm5, 0.0, %v6768_v13 }
 0x290   : > { %v908_v27 = vpack.c.bf16 %v873_v23, %v872_v22 }
 0x292   : > { %1087 = vmatmul.mubr.bf16.vlgmr.msra.gmra.mrb[0].mxu1 %v908_v27  ;;  %5839 = vmatprep.mubr.bf16.mxu0 %v908_v27 }
 0x293   : > { %5840 = vmatmul.mubr.bf16.vlgmr.msra.gmra.mrb[4].mxu0 %v909_v26  ;;  %1096 = vmatprep.mubr.bf16.mxu1 %v6766_v58 }
 0x29a   : > { %1097 = vmatmul.mubr.bf16.gmra.mrb[4].mxu1 %v909_v26 }
 0x365   : > { %v1088_v35 = vpop.f32.mrb[0].mxu1 }
 0x366   : > { %v1090_v37 = vpop.f32.mrb[1].mxu1  ;;  %v5841_v39 = vpop.f32.mrb[4].mxu0  ;;  %v1089_v42 = vadd.f32 %v1088_v35, %v914_v34 }
 0x367   : > { %v1092_v40 = vpop.f32.mrb[2].mxu1  ;;  %v1139_v41 = vpop.f32.mrb[5].mxu0  ;;  %v1091_v46 = vadd.f32 %v1090_v37, %v918_v36  ;;  %v1148_v49 = vadd.f32 %v5841_v39, %v922_v38 }
 0x368   : > { %v1093_v43 = vadd.f32 %v1092_v40, %v914_v34  ;;  %v1094_v44 = vpop.f32.mrb[3].mxu1  ;;  %v5842_v45 = vpop.f32.mrb[6].mxu0  ;;  %v1140_v51 = vadd.f32 %v1139_v41, %v922_v38 }
 0x369   : > { %v1095_v47 = vadd.f32 %v1094_v44, %v918_v36  ;;  %v1142_v48 = vpop.f32.mrb[7].mxu0  ;;  %v7178_v57 = vpack.c.bf16 %v1148_v49, %v1148_v49 }
 0x36a   : > { %v7164_v50 = vpack.c.bf16 %v1093_v43, %v1089_v42  ;;  %v1143_v52 = vadd.f32 %v1142_v48, %v922_v38 }
 0x36b   : > { %v7166_v53 = vpack.c.bf16 %v1095_v47, %v1091_v46  ;;  %v1270_v1 = vsel %vm1268_vm4, %v7178_v57, 0 }
 0x36c   : > { %v7168_v54 = vpack.c.bf16 %v1143_v52, %v1140_v51  ;;  %5847 = vmatprep.mubr.msk.bf16.mxu1 %vm1157_vm3, %v7164_v50 }
 0x36d   : > { %v1098_v55 = vpop.f32.mrb[4].mxu1  ;;  %1328 = vrot.lane.b32.xlu0 %v7166_v53, %s8505_s24  ;;  %6051 = vmatprep.subr.msk.bf16.mxu1 %vm1157_vm3, %v7166_v53  ;;  %v1165_v56 = vsel %vm1157_vm3, %v7166_v53, 0 }
 0x36e   : > { %v1100_v59 = vpop.f32.mrb[5].mxu1  ;;  %5844 = vmatpush3.bf16.xpose.msra.mxu1 %v1165_v56  ;;  %5851 = vmatprep.subr.bf16.mxu0 %v7168_v54  ;;  %v1099_v2 = vadd.f32 %v1098_v55, %v914_v34 }
 0x36f   : > { %v1101_v60 = vadd.f32 %v1100_v59, %v918_v36  ;;  %v1102_v61 = vpop.f32.mrb[6].mxu1  ;;  %5852 = vmatpush3.bf16.msra.mxu0 %v7168_v54 }
 0x370   : > { %v1103_v62 = vpop.f32.mrb[7].mxu1  ;;  %6053 = vmatprep.subr.msk.bf16.mxu0 %vm1268_vm4, %v7178_v57  ;;  %v7196_v4 = vpack.c.bf16 %v1099_v2, %v1099_v2 }
 0x371   : > { %v7184_v63 = vpack.c.bf16 %v1101_v60, %v1101_v60 }
 0x373   : > { %1330 = vrot.lane.b32.xlu1 %v7184_v63, %s8505_s24  ;;  %6052 = vmatprep.subr.msk.bf16.mxu1 %vm1157_vm3, %v7184_v63  ;;  %v1168_v3 = vsel %vm1157_vm3, %v7184_v63, 0 }
 0x374   : > { %5854 = vmatpush3.bf16.msra.mxu0 %v1270_v1 }
 0x376   : > { %5846 = vmatpush3.bf16.xpose.msra.mxu1 %v1168_v3 }
 0x377   : > { %1322 = vrot.lane.b32.xlu1 %v7164_v50, %s8505_s24 }
 0x37b   : > { %1324 = vrot.lane.b32.xlu1 %v7196_v4, %s8505_s24 }
 0x37d   : > { %5848 = vmatmul.mubr.msk.bf16.vlgmr.msra.gmra.mrb[8].mxu1 %vm1157_vm3, %v7196_v4 }
 0x3df   : > { %v1329_v5 = vpop.permute.xlu0 %1328 }
 0x3e0   : > { %6054 = vmatprep.subr.msk.bf16.mxu1 %vm1157_vm3, %v1329_v5  ;;  %v1339_v6 = vsel %vm1157_vm3, %v1329_v5, 0 }
 0x3e1   : > { %5860 = vmatpush3.bf16.xpose.msra.mxu1 %v1339_v6 }
 0x3e5   : > { %v1331_v7 = vpop.permute.xlu1 %1330 }
 0x3e6   : > { %6055 = vmatprep.subr.msk.bf16.mxu1 %vm1157_vm3, %v1331_v7  ;;  %v1342_v8 = vsel %vm1157_vm3, %v1331_v7, 0 }
 0x3e9   : > { %v1323_v9 = vpop.permute.xlu1 %1322  ;;  %5862 = vmatpush3.bf16.xpose.msra.mxu1 %v1342_v8 }
 0x3ea   : > { %5863 = vmatprep.mubr.msk.bf16.mxu1 %vm1157_vm3, %v1323_v9 }
 0x3ed   : > { %v1325_v10 = vpop.permute.xlu1 %1324 }
 0x3f0   : > { %5864 = vmatmul.mubr.msk.bf16.vlgmr.msra.gmra.mrb[12].mxu1 %vm1157_vm3, %v1325_v10 }
 0x450   : > { %v5849_v12 = vpop.f32.mrb[8].mxu1 }
 0x451   : > { %v1204_v15 = vpop.f32.mrb[9].mxu1  ;;  %v1220_v16 = vmul.f32 0.17677669, %v5849_v12 }
 0x452   : > { %v1218_v17 = vmul.f32 0.17677669, %v1204_v15  ;;  %v5850_v18 = vpop.f32.mrb[10].mxu1 }
 0x453   : > { %v1207_v19 = vpop.f32.mrb[11].mxu1  ;;  %v1223_v27 = vadd.f32 %v1220_v16, %v7209_v14 }
 0x454   : > { %v1219_v21 = vmul.f32 0.17677669, %v1207_v19  ;;  %v1221_v22 = vadd.f32 %v1218_v17, %v7209_v14 }
 0x455   : > { %v1231_v31 = vsel %vm1224_vm6, %v1223_v27, -inf }
 0x456   : > { %v1225_v23 = vsel %vm1224_vm6, %v1221_v22, -inf  ;;  %v1222_v26 = vadd.f32 %v1219_v21, %v7209_v14 }
 0x457   : > { %1226 = vmax.xlane.f32.xlu0 %v1225_v23 }
 0x458   : > { %v1228_v28 = vsel %vm1224_vm6, %v1222_v26, -inf }
 0x459   : > { %1229 = vmax.xlane.f32.xlu1 %v1228_v28 }
 0x45b   : > { %1232 = vmax.xlane.f32.xlu0 %v1231_v31 }
 0x4c3   : > { %v5865_v34 = vpop.f32.mrb[12].mxu1 }
 0x4c4   : > { %v1394_v35 = vmul.f32 0.17677669, %v5865_v34  ;;  %v1378_v36 = vpop.f32.mrb[13].mxu1 }
 0x4c5   : > { %v1392_v37 = vmul.f32 0.17677669, %v1378_v36  ;;  %v5866_v38 = vpop.f32.mrb[14].mxu1 }
 0x4c6   : > { %v1381_v39 = vpop.f32.mrb[15].mxu1  ;;  %v1397_v40 = vadd.f32 %v1394_v35, %v7209_v14 }
 0x4c7   : > { %v1393_v41 = vmul.f32 0.17677669, %v1381_v39  ;;  %v1395_v42 = vadd.f32 %v1392_v37, %v7209_v14 }
 0x4c8   : > { %v1404_v43 = vsel %vm1224_vm6, %v1397_v40, -inf }
 0x4c9   : > { %1405 = vmax.xlane.f32.xlu1 %v1404_v43  ;;  %v1398_v44 = vsel %vm1224_vm6, %v1395_v42, -inf  ;;  %v1396_v45 = vadd.f32 %v1393_v41, %v7209_v14 }
 0x4ca   : > { %1399 = vmax.xlane.f32.xlu0 %v1398_v44 }
 0x4cb   : > { %v1401_v46 = vsel %vm1224_vm6, %v1396_v45, -inf }
 0x4ce   : > { %1402 = vmax.xlane.f32.xlu0 %v1401_v46 }
 0x4e4   : > { %v1227_v47 = vpop.xlane.xlu0 %1226 }
 0x4e5   : > { %v1234_v49 = vsub.f32 %v1221_v22, %v1227_v47 }
 0x4e6   : > { %v1230_v48 = vpop.xlane.xlu1 %1229 }
 0x4e7   : > { %v1235_v51 = vsub.f32 %v1222_v26, %v1230_v48  ;;  %v1237_v59 = vmul.f32 1.442695, %v1234_v49 }
 0x4e8   : > { %v1233_v52 = vpop.xlane.xlu0 %1232 }
 0x4e9   : > { %v1239_v55 = vmul.f32 1.442695, %v1235_v51  ;;  %v1236_v56 = vsub.f32 %v1223_v27, %v1233_v52 }
 0x4eb   : > { %6436 = vpow2.f32 %v1239_v55  ;;  %v1241_v60 = vmul.f32 1.442695, %v1236_v56 }
 0x4ed   : > { %6438 = vpow2.f32 %v1241_v60 }
 0x4ee   : > { %6440 = vpow2.f32 %v1237_v59 }
 0x4f5   : > { %v6437_v61 = vpop.eup %6436 }
 0x4f6   : > { %v1246_v62 = vsel %vm1224_vm6, %v6437_v61, 0.0 }
 0x4f7   : > { %v6439_v1 = vpop.eup %6438  ;;  %1247 = vadd.xlane.f32.xlu1 %v1246_v62 }
 0x4f8   : > { %v1249_v2 = vsel %vm1224_vm6, %v6439_v1, 0.0  ;;  %v6441_v3 = vpop.eup %6440 }
 0x4f9   : > { %1250 = vadd.xlane.f32.xlu0 %v1249_v2  ;;  %v1243_v5 = vsel %vm1224_vm6, %v6441_v3, 0.0 }
 0x4fd   : > { %1244 = vadd.xlane.f32.xlu0 %v1243_v5 }
 0x556   : > { %v1406_v6 = vpop.xlane.xlu1 %1405 }
 0x557   : > { %v1409_v7 = vsub.f32 %v1397_v40, %v1406_v6  ;;  %v1400_v8 = vpop.xlane.xlu0 %1399 }
 0x558   : > { %v1407_v9 = vsub.f32 %v1395_v42, %v1400_v8 }
 0x559   : > { %v1414_v10 = vmul.f32 1.442695, %v1409_v7 }
 0x55a   : > { %v1410_v11 = vmul.f32 1.442695, %v1407_v9 }
 0x55b   : > { %6442 = vpow2.f32 %v1414_v10  ;;  %v1403_v12 = vpop.xlane.xlu0 %1402 }
 0x55c   : > { %v1408_v13 = vsub.f32 %v1396_v45, %v1403_v12  ;;  %6444 = vpow2.f32 %v1410_v11 }
 0x55e   : > { %v1412_v15 = vmul.f32 1.442695, %v1408_v13 }
 0x560   : > { %6446 = vpow2.f32 %v1412_v15 }
 0x565   : > { %v6443_v16 = vpop.eup %6442 }
 0x566   : > { %v1422_v17 = vsel %vm1224_vm6, %v6443_v16, 0.0  ;;  %v6445_v18 = vpop.eup %6444 }
 0x567   : > { %1423 = vadd.xlane.f32.xlu1 %v1422_v17  ;;  %v1416_v21 = vsel %vm1224_vm6, %v6445_v18, 0.0 }
 0x56a   : > { %v6447_v19 = vpop.eup %6446 }
 0x56b   : > { %1417 = vadd.xlane.f32.xlu1 %v1416_v21  ;;  %v1419_v22 = vsel %vm1224_vm6, %v6447_v19, 0.0 }
 0x56c   : > { %1420 = vadd.xlane.f32.xlu0 %v1419_v22 }
 0x57c   : > { %1437 = vrot.lane.b32.xlu1 %v7178_v57, %s8505_s24 }
 0x580   : > { %1501 = vrot.lane.b32.xlu1 %v7166_v53, %s8503_s26 }
 0x582   : > { %1435 = vrot.lane.b32.xlu0 %v7168_v54, %s8505_s24 }
 0x584   : > { %1503 = vrot.lane.b32.xlu1 %v7184_v63, %s8503_s26  ;;  %v1248_v23 = vpop.xlane.xlu1 %1247 }
 0x586   : > { %v1251_v26 = vpop.xlane.xlu0 %1250  ;;  %1497 = vrot.lane.b32.xlu0 %v7164_v50, %s8503_s26 }
 0x587   : > { %6448 = vrcp.f32 %v1251_v26 }
 0x588   : > { %1499 = vrot.lane.b32.xlu1 %v7196_v4, %s8503_s26  ;;  %6450 = vrcp.f32 %v1248_v23 }
 0x58a   : > { %v1245_v27 = vpop.xlane.xlu0 %1244 }
 0x58b   : > { %6452 = vrcp.f32 %v1245_v27 }
 0x591   : > { %v6449_v28 = vpop.eup %6448 }
 0x592   : > { %v6451_v31 = vpop.eup %6450  ;;  %v1257_v35 = vmul.f32 %v6449_v28, %v6439_v1 }
 0x593   : > { %v1256_v37 = vmul.f32 %v6451_v31, %v6437_v61 }
 0x594   : > { %v1259_v39 = vpack.c.bf16 %v1257_v35, %v1257_v35 }
 0x595   : > { %v6453_v34 = vpop.eup %6452 }
 0x596   : > { %v1255_v36 = vmul.f32 %v6453_v34, %v6441_v3 }
 0x598   : > { %v1258_v38 = vpack.c.bf16 %v1256_v37, %v1255_v36 }
 0x59a   : > { %5855 = vmatprep.mubr.msk.bf16.mxu0 %vm1224_vm6, %v1258_v38 }
 0x59b   : > { %5856 = vmatmul.mubr.msk.bf16.vlgmr.msra.gmra.mrb[8].mxu0 %vm1224_vm6, %v1259_v39 }
 0x5f4   : > { %v1424_v40 = vpop.xlane.xlu1 %1423 }
 0x5f5   : > { %6454 = vrcp.f32 %v1424_v40 }
 0x5f8   : > { %v1418_v41 = vpop.xlane.xlu1 %1417 }
 0x5f9   : > { %6456 = vrcp.f32 %v1418_v41  ;;  %v1421_v42 = vpop.xlane.xlu0 %1420 }
 0x5fa   : > { %6458 = vrcp.f32 %v1421_v42 }
 0x5fc   : > { %v1438_v43 = vpop.permute.xlu1 %1437 }
 0x5fd   : > { %v1436_v44 = vpop.permute.xlu0 %1435  ;;  %v1447_v46 = vsel %vm1268_vm4, %v1438_v43, 0 }
 0x5fe   : > { %5867 = vmatprep.subr.bf16.mxu0 %v1436_v44 }
 0x5ff   : > { %5868 = vmatpush3.bf16.msra.mxu0 %v1436_v44  ;;  %v6455_v45 = vpop.eup %6454 }
 0x600   : > { %6056 = vmatprep.subr.msk.bf16.mxu0 %vm1268_vm4, %v1438_v43  ;;  %v1502_v48 = vpop.permute.xlu1 %1501  ;;  %v1430_v52 = vmul.f32 %v6455_v45, %v6443_v16 }
 0x601   : > { %v1498_v60 = vpop.permute.xlu0 %1497  ;;  %v1512_v61 = vsel %vm1157_vm3, %v1502_v48, 0 }
 0x602   : > { %v1432_v59 = vpack.c.bf16 %v1430_v52, %v1430_v52 }
 0x603   : > { %v6457_v47 = vpop.eup %6456  ;;  %5870 = vmatpush3.bf16.msra.mxu0 %v1447_v46 }
 0x604   : > { %v6459_v49 = vpop.eup %6458  ;;  %6057 = vmatprep.subr.msk.bf16.mxu0 %vm1157_vm3, %v1502_v48  ;;  %v1428_v51 = vmul.f32 %v6457_v47, %v6445_v18  ;;  %v1504_v62 = vpop.permute.xlu1 %1503 }
 0x605   : > { %v1429_v55 = vmul.f32 %v6459_v49, %v6447_v19  ;;  %v1515_v1 = vsel %vm1157_vm3, %v1504_v62, 0 }
 0x607   : > { %v1431_v56 = vpack.c.bf16 %v1429_v55, %v1428_v51 }
 0x608   : > { %v1500_v2 = vpop.permute.xlu1 %1499 }
 0x609   : > { %5871 = vmatprep.mubr.msk.bf16.mxu0 %vm1224_vm6, %v1431_v56 }
 0x60a   : > { %5872 = vmatmul.mubr.msk.bf16.vlgmr.msra.gmra.mrb[12].mxu0 %vm1224_vm6, %v1432_v59 }
 0x60b   : > { %5879 = vmatprep.mubr.msk.bf16.mxu0 %vm1157_vm3, %v1498_v60 }
 0x60c   : > { %5876 = vmatpush3.bf16.xpose.msra.mxu0 %v1512_v61 }
 0x60d   : > { %6058 = vmatprep.subr.msk.bf16.mxu0 %vm1157_vm3, %v1504_v62 }
 0x614   : > { %5878 = vmatpush3.bf16.xpose.msra.mxu0 %v1515_v1 }
 0x61b   : > { %5880 = vmatmul.mubr.msk.bf16.vlgmr.msra.gmra.mrb[16].mxu0 %vm1157_vm3, %v1500_v2 }
 0x66e   : > { %v7253_v3 = vpop.f32.mrb[8].mxu0 }
 0x66f   : > { %v7255_v5 = vpop.f32.mrb[9].mxu0 }
 0x670   : > { %v5858_v6 = vpop.f32.mrb[10].mxu0 }
 0x671   : > { %v7257_v7 = vpop.f32.mrb[11].mxu0 }
 0x6dd   : > { %v7259_v8 = vpop.f32.mrb[12].mxu0 }
 0x6de   : > { %v7261_v9 = vpop.f32.mrb[13].mxu0 }
 0x6df   : > { %v5874_v10 = vpop.f32.mrb[14].mxu0 }
 0x6e0   : > { %v7263_v11 = vpop.f32.mrb[15].mxu0 }
 0x6e1   : > { %v6149_v12 = vpack.i.bf16 %v7263_v11, %v7261_v9 }
 0x6ee   : > { %v5881_v13 = vpop.f32.mrb[16].mxu0 }
 0x6ef   : > { %v1551_v15 = vpop.f32.mrb[17].mxu0  ;;  %v1567_v16 = vmul.f32 0.17677669, %v5881_v13 }
 0x6f0   : > { %v1565_v17 = vmul.f32 0.17677669, %v1551_v15  ;;  %v5882_v18 = vpop.f32.mrb[18].mxu0 }
 0x6f1   : > { %v1554_v19 = vpop.f32.mrb[19].mxu0  ;;  %v1570_v27 = vadd.f32 %v1567_v16, %v7209_v14 }
 0x6f2   : > { %v1566_v21 = vmul.f32 0.17677669, %v1554_v19  ;;  %v1568_v22 = vadd.f32 %v1565_v17, %v7209_v14 }
 0x6f3   : > { %v1577_v31 = vsel %vm1224_vm6, %v1570_v27, -inf }
 0x6f4   : > { %v1571_v23 = vsel %vm1224_vm6, %v1568_v22, -inf  ;;  %v1569_v26 = vadd.f32 %v1566_v21, %v7209_v14 }
 0x6f5   : > { %1572 = vmax.xlane.f32.xlu0 %v1571_v23 }
 0x6f6   : > { %v1574_v28 = vsel %vm1224_vm6, %v1569_v26, -inf }
 0x6f7   : > { %1575 = vmax.xlane.f32.xlu1 %v1574_v28 }
 0x6f9   : > { %1578 = vmax.xlane.f32.xlu0 %v1577_v31 }
 0x782   : > { %v1573_v34 = vpop.xlane.xlu0 %1572 }
 0x783   : > { %v1580_v35 = vsub.f32 %v1568_v22, %v1573_v34 }
 0x784   : > { %v1576_v36 = vpop.xlane.xlu1 %1575 }
 0x785   : > { %v1583_v37 = vmul.f32 1.442695, %v1580_v35  ;;  %v1581_v38 = vsub.f32 %v1569_v26, %v1576_v36 }
 0x786   : > { %v1579_v39 = vpop.xlane.xlu0 %1578 }
 0x787   : > { %6460 = vpow2.f32 %v1583_v37  ;;  %v1585_v40 = vmul.f32 1.442695, %v1581_v38  ;;  %v1582_v41 = vsub.f32 %v1570_v27, %v1579_v39 }
 0x789   : > { %6462 = vpow2.f32 %v1585_v40  ;;  %v1587_v42 = vmul.f32 1.442695, %v1582_v41 }
 0x78b   : > { %6464 = vpow2.f32 %v1587_v42 }
 0x791   : > { %v6461_v43 = vpop.eup %6460 }
 0x792   : > { %v1589_v44 = vsel %vm1224_vm6, %v6461_v43, 0.0 }
 0x793   : > { %v6463_v45 = vpop.eup %6462  ;;  %1590 = vadd.xlane.f32.xlu0 %v1589_v44 }
 0x794   : > { %v1592_v48 = vsel %vm1224_vm6, %v6463_v45, 0.0 }
 0x795   : > { %v6465_v46 = vpop.eup %6464 }
 0x796   : > { %v1595_v47 = vsel %vm1224_vm6, %v6465_v46, 0.0 }
 0x797   : > { %1596 = vadd.xlane.f32.xlu1 %v1595_v47  ;;  %1593 = vadd.xlane.f32.xlu0 %v1592_v48 }
 0x7a8   : > { %1608 = vrot.lane.b32.xlu1 %v7178_v57, %s8503_s26 }
 0x7ac   : > { %1672 = vrot.lane.b32.xlu1 %v7166_v53, %s8501_s1 }
 0x7ad   : > { %1606 = vrot.lane.b32.xlu0 %v7168_v54, %s8503_s26 }
 0x7b0   : > { %1674 = vrot.lane.b32.xlu1 %v7184_v63, %s8501_s1 }
 0x7b1   : > { %1668 = vrot.lane.b32.xlu0 %v7164_v50, %s8501_s1 }
 0x7b4   : > { %1670 = vrot.lane.b32.xlu1 %v7196_v4, %s8501_s1 }
 0x820   : > { %v1591_v49 = vpop.xlane.xlu0 %1590 }
 0x821   : > { %6466 = vrcp.f32 %v1591_v49 }
 0x824   : > { %v1594_v51 = vpop.xlane.xlu0 %1593  ;;  %v1597_v52 = vpop.xlane.xlu1 %1596 }
 0x825   : > { %6468 = vrcp.f32 %v1594_v51 }
 0x826   : > { %6470 = vrcp.f32 %v1597_v52 }
 0x828   : > { %v1607_v55 = vpop.permute.xlu0 %1606  ;;  %v1609_v53 = vpop.permute.xlu1 %1608 }
 0x829   : > { %5883 = vmatprep.subr.bf16.mxu1 %v1607_v55  ;;  %v1618_v63 = vsel %vm1268_vm4, %v1609_v53, 0 }
 0x82a   : > { %5884 = vmatpush3.bf16.msra.mxu1 %v1607_v55 }
 0x82b   : > { %6059 = vmatprep.subr.msk.bf16.mxu1 %vm1268_vm4, %v1609_v53  ;;  %v6467_v56 = vpop.eup %6466 }
 0x82c   : > { %v1673_v59 = vpop.permute.xlu1 %1672  ;;  %v1601_v60 = vmul.f32 %v6467_v56, %v6461_v43  ;;  %v1669_v6 = vpop.permute.xlu0 %1668 }
 0x82d   : > { %v1683_v10 = vsel %vm1157_vm3, %v1673_v59, 0 }
 0x82e   : > { %5886 = vmatpush3.bf16.msra.mxu1 %v1618_v63 }
 0x82f   : > { %v6469_v50 = vpop.eup %6468  ;;  %6060 = vmatprep.subr.msk.bf16.mxu1 %vm1157_vm3, %v1673_v59 }
 0x830   : > { %v6471_v4 = vpop.eup %6470  ;;  %v1602_v61 = vmul.f32 %v6469_v50, %v6463_v45  ;;  %v1675_v13 = vpop.permute.xlu1 %1674 }
 0x831   : > { %v1603_v62 = vmul.f32 %v6471_v4, %v6465_v46  ;;  %v1686_v15 = vsel %vm1157_vm3, %v1675_v13, 0 }
 0x832   : > { %v1604_v1 = vpack.c.bf16 %v1602_v61, %v1601_v60 }
 0x833   : > { %v1605_v2 = vpack.c.bf16 %v1603_v62, %v1603_v62 }
 0x834   : > { %5887 = vmatprep.mubr.msk.bf16.mxu1 %vm1224_vm6, %v1604_v1  ;;  %v1671_v16 = vpop.permute.xlu1 %1670 }
 0x835   : > { %5888 = vmatmul.mubr.msk.bf16.vlgmr.msra.gmra.mrb[16].mxu1 %vm1224_vm6, %v1605_v2 }
 0x836   : > { %5895 = vmatprep.mubr.msk.bf16.mxu1 %vm1157_vm3, %v1669_v6 }
 0x837   : > { %5892 = vmatpush3.bf16.xpose.msra.mxu1 %v1683_v10  ;;  %v6214_v10 = vld [vmem:[%s8472_s9] sm:$0xff]  }
 0x838   : > { %6061 = vmatprep.subr.msk.bf16.mxu1 %vm1157_vm3, %v1675_v13  ;;  %v6215_v13 = vld [vmem:[%s8472_s9 + $0x8] sm:$0xff]  }
 0x83f   : > { %5894 = vmatpush3.bf16.xpose.msra.mxu1 %v1686_v15  ;;  %v6216_v15 = vld [vmem:[%s8472_s9 + $0x10] sm:$0xff]  }
 0x846   : > { %5896 = vmatmul.mubr.msk.bf16.vlgmr.msra.gmra.mrb[20].mxu1 %vm1157_vm3, %v1671_v16  ;;  %v6217_v16 = vld [vmem:[%s8472_s9 + $0x18] sm:$0xff]  }
 0x847   : > { %2311 = vmatprep.mubr.bf16.mxu1 %v6766_v58 }
 0x908   : > { %v5889_v17 = vpop.f32.mrb[16].mxu1 }
 0x909   : > { %v1654_v18 = vpop.f32.mrb[17].mxu1 }
 0x90a   : > { %v5890_v19 = vpop.f32.mrb[18].mxu1 }
 0x90b   : > { %v1657_v21 = vpop.f32.mrb[19].mxu1  ;;  %v6220_v19 = vld [vmem:[%s8472_s9 + $0x30] sm:$0xff]  }
 0x90c   : > { %v6154_v22 = vpack.i.bf16 %v1657_v21, %v1654_v18  ;;  %v6219_v18 = vld [vmem:[%s8472_s9 + $0x28] sm:$0xff]   ;;  %v6221_v21 = vld [vmem:[%s8472_s9 + $0x38] sm:$0xff]  }
 0x919   : > { %v5897_v23 = vpop.f32.mrb[20].mxu1 }
 0x91a   : > { %v1722_v26 = vpop.f32.mrb[21].mxu1  ;;  %v1738_v27 = vmul.f32 0.17677669, %v5897_v23 }
 0x91b   : > { %v1736_v28 = vmul.f32 0.17677669, %v1722_v26  ;;  %v5898_v31 = vpop.f32.mrb[22].mxu1 }
 0x91c   : > { %v1725_v34 = vpop.f32.mrb[23].mxu1  ;;  %v1741_v39 = vadd.f32 %v1738_v27, %v7209_v14 }
 0x91d   : > { %v1737_v35 = vmul.f32 0.17677669, %v1725_v34  ;;  %v1739_v36 = vadd.f32 %v1736_v28, %v7209_v14 }
 0x91e   : > { %v1748_v41 = vsel %vm1224_vm6, %v1741_v39, -inf }
 0x91f   : > { %v1742_v37 = vsel %vm1224_vm6, %v1739_v36, -inf  ;;  %v1740_v38 = vadd.f32 %v1737_v35, %v7209_v14 }
 0x920   : > { %1743 = vmax.xlane.f32.xlu0 %v1742_v37 }
 0x921   : > { %v1745_v40 = vsel %vm1224_vm6, %v1740_v38, -inf }
 0x922   : > { %1746 = vmax.xlane.f32.xlu1 %v1745_v40 }
 0x924   : > { %1749 = vmax.xlane.f32.xlu0 %v1748_v41 }
 0x9ad   : > { %v1744_v42 = vpop.xlane.xlu0 %1743 }
 0x9ae   : > { %v1751_v43 = vsub.f32 %v1739_v36, %v1744_v42 }
 0x9af   : > { %v1747_v44 = vpop.xlane.xlu1 %1746 }
 0x9b0   : > { %v1754_v45 = vmul.f32 1.442695, %v1751_v43  ;;  %v1752_v46 = vsub.f32 %v1740_v38, %v1747_v44 }
 0x9b1   : > { %v1750_v47 = vpop.xlane.xlu0 %1749 }
 0x9b2   : > { %6472 = vpow2.f32 %v1754_v45  ;;  %v1756_v48 = vmul.f32 1.442695, %v1752_v46  ;;  %v1753_v49 = vsub.f32 %v1741_v39, %v1750_v47 }
 0x9b4   : > { %6474 = vpow2.f32 %v1756_v48  ;;  %v1758_v51 = vmul.f32 1.442695, %v1753_v49 }
 0x9b6   : > { %6476 = vpow2.f32 %v1758_v51 }
 0x9bc   : > { %v6473_v52 = vpop.eup %6472 }
 0x9bd   : > { %v1760_v55 = vsel %vm1224_vm6, %v6473_v52, 0.0 }
 0x9be   : > { %v6475_v53 = vpop.eup %6474  ;;  %1761 = vadd.xlane.f32.xlu0 %v1760_v55 }
 0x9bf   : > { %v1763_v59 = vsel %vm1224_vm6, %v6475_v53, 0.0 }
 0x9c0   : > { %v6477_v56 = vpop.eup %6476 }
 0x9c1   : > { %v1766_v63 = vsel %vm1224_vm6, %v6477_v56, 0.0 }
 0x9c2   : > { %1767 = vadd.xlane.f32.xlu1 %v1766_v63  ;;  %1764 = vadd.xlane.f32.xlu0 %v1763_v59 }
 0x9d3   : > { %1779 = vrot.lane.b32.xlu1 %v7178_v57, %s8501_s1 }
 0x9d7   : > { %6150 = vrot.lane.b32.xlu1 %v6149_v12, %s8501_s1 }
 0x9d8   : > { %1777 = vrot.lane.b32.xlu0 %v7168_v54, %s8501_s1 }
 0x9db   : > { %1846 = vrot.lane.b32.xlu1 %v7259_v8, %s8501_s1 }
 0x9dc   : > { %6155 = vrot.lane.b32.xlu0 %v6154_v22, %s8503_s26 }
 0x9df   : > { %1858 = vrot.lane.b32.xlu1 %v5889_v17, %s8503_s26  ;;  %v6218_v17 = vld [vmem:[%s8472_s9 + $0x20] sm:$0xff]  }
 0xa4b   : > { %v1762_v50 = vpop.xlane.xlu0 %1761 }
 0xa4c   : > { %6478 = vrcp.f32 %v1762_v50 }
 0xa4f   : > { %v1765_v4 = vpop.xlane.xlu0 %1764  ;;  %v1768_v60 = vpop.xlane.xlu1 %1767 }
 0xa50   : > { %6480 = vrcp.f32 %v1765_v4 }
 0xa51   : > { %6482 = vrcp.f32 %v1768_v60 }
 0xa53   : > { %v1778_v57 = vpop.permute.xlu0 %1777  ;;  %v1780_v9 = vpop.permute.xlu1 %1779 }
 0xa54   : > { %5899 = vmatprep.subr.bf16.mxu0 %v1778_v57  ;;  %v1789_v11 = vsel %vm1268_vm4, %v1780_v9, 0 }
 0xa55   : > { %5900 = vmatpush3.bf16.msra.mxu0 %v1778_v57 }
 0xa56   : > { %6062 = vmatprep.subr.msk.bf16.mxu0 %vm1268_vm4, %v1780_v9  ;;  %v6479_v54 = vpop.eup %6478 }
 0xa57   : > { %v1772_v61 = vmul.f32 %v6479_v54, %v6473_v52  ;;  %v6151_v31 = vpop.permute.xlu1 %6150  ;;  %v6156_v35 = vpop.permute.xlu0 %6155 }
 0xa58   : > { %v6153_v36 = vunpack.i.h.bf16 %v6151_v31  ;;  %v6152_v37 = vunpack.i.l.bf16 %v6151_v31  ;;  %v6158_v39 = vunpack.i.h.bf16 %v6156_v35  ;;  %v6157_v40 = vunpack.i.l.bf16 %v6156_v35  ;;  %v6237_v31 = vld [vmem:[%s8476_s13 + $0x48] ss:$16 sps:$4 sm:$0xff]   ;;  %v6245_v35 = vld [vmem:[%s8476_s13 + $0x6c] ss:$16 sps:$4 sm:$0xff]  }
 0xa59   : > { %5902 = vmatpush3.bf16.msra.mxu0 %v1789_v11 }
 0xa5a   : > { %v6481_v8 = vpop.eup %6480  ;;  %5907 = vmatprep.subr.bf16.mxu0 %v6214_v10  ;;  %v1876_v41 = vsel %vm1157_vm3, %v7257_v7, %v6153_v36  ;;  %v1875_v42 = vsel %vm1157_vm3, %v7255_v5, %v6152_v37  ;;  %v6240_v36 = vld [vmem:[%s8476_s13 + $0x60] ss:$16 sps:$4 sm:$0xff]   ;;  %v6243_v37 = vld [vmem:[%s8476_s13 + $0x68] ss:$16 sps:$4 sm:$0xff]  }
 0xa5b   : > { %v6483_v12 = vpop.eup %6482  ;;  %v1773_v62 = vmul.f32 %v6481_v8, %v6475_v53  ;;  %v1847_v34 = vpop.permute.xlu1 %1846  ;;  %v1879_v51 = vsel %vm1878_vm7, %v1875_v42, %v6157_v40  ;;  %v1880_v7 = vsel %vm1878_vm7, %v1876_v41, %v6158_v39  ;;  %v6222_v8 = vld [vmem:[%s8476_s13] ss:$16 sps:$4 sm:$0xff]   ;;  %v6251_v39 = vld [vmem:[%s8476_s13 + $0x8c] ss:$16 sps:$4 sm:$0xff]   ;;  %v6249_v41 = vld [vmem:[%s8476_s13 + $0x88] ss:$16 sps:$4 sm:$0xff]  }
 0xa5c   : > { %v1774_v1 = vmul.f32 %v6483_v12, %v6477_v56  ;;  %v1877_v44 = vsel %vm1157_vm3, %v7253_v3, %v1847_v34  ;;  %v5224_v3 = vld [vmem:[%s8473_s10] ss:$0 sm:$0xff]  ;;  %v6230_v12 = vld [vmem:[%s8476_s13 + $0x24] ss:$16 sps:$4 sm:$0xff]  }
 0xa5d   : > { %v1775_v2 = vpack.c.bf16 %v1773_v62, %v1772_v61  ;;  %v6233_v61 = vld [vmem:[%s8476_s13 + $0x2c] ss:$16 sps:$4 sm:$0xff]   ;;  %v6228_v62 = vld [vmem:[%s8476_s13 + $0x20] ss:$16 sps:$4 sm:$0xff]   ;;  %v6242_v34 = vld [vmem:[%s8476_s13 + $0x64] ss:$16 sps:$4 sm:$0xff]  }
 0xa5e   : > { %v1776_v6 = vpack.c.bf16 %v1774_v1, %v1774_v1  ;;  %v6231_v1 = vld [vmem:[%s8476_s13 + $0x28] ss:$16 sps:$4 sm:$0xff]   ;;  %v6246_v40 = vld [vmem:[%s8476_s13 + $0x80] ss:$16 sps:$4 sm:$0xff]   ;;  %v6254_v42 = vld [vmem:[%s8476_s13 + $0xa4] ss:$16 sps:$4 sm:$0xff]  }
 0xa5f   : > { %5903 = vmatprep.mubr.msk.bf16.mxu0 %vm1224_vm6, %v1775_v2  ;;  %v1859_v38 = vpop.permute.xlu1 %1858 }
 0xa60   : > { %5904 = vmatmul.mubr.msk.bf16.vlgmr.msra.gmra.mrb[20].mxu0 %vm1224_vm6, %v1776_v6  ;;  %v1881_v46 = vsel %vm1878_vm7, %v1877_v44, %v1859_v38  ;;  %v6248_v38 = vld [vmem:[%s8476_s13 + $0x84] ss:$16 sps:$4 sm:$0xff]   ;;  %v6252_v44 = vld [vmem:[%s8476_s13 + $0xa0] ss:$16 sps:$4 sm:$0xff]  }
 0xa61   : > { %5908 = vmatpush3.bf16.msra.mxu0 %v6214_v10 }
 0xa62   : > { %5909 = vmatprep.subr.bf16.mxu0 %v6215_v13 }
 0xa65   : > { %5910 = vmatpush3.bf16.msra.mxu0 %v6215_v13 }
 0xa66   : > { %5911 = vmatprep.subr.bf16.mxu0 %v6216_v15 }
 0xa69   : > { %5912 = vmatpush3.bf16.msra.mxu0 %v6216_v15 }
 0xa6a   : > { %5913 = vmatprep.subr.bf16.mxu0 %v6217_v16 }
 0xa6d   : > { %5914 = vmatpush3.bf16.msra.mxu0 %v6217_v16 }
 0xa6e   : > { %5915 = vmatprep.subr.bf16.mxu0 %v6218_v17 }
 0xa71   : > { %5916 = vmatpush3.bf16.msra.mxu0 %v6218_v17 }
 0xa72   : > { %5917 = vmatprep.subr.bf16.mxu0 %v6219_v18 }
 0xa75   : > { %5918 = vmatpush3.bf16.msra.mxu0 %v6219_v18 }
 0xa76   : > { %5919 = vmatprep.subr.bf16.mxu0 %v6220_v19 }
 0xa79   : > { %5920 = vmatpush3.bf16.msra.mxu0 %v6220_v19 }
 0xa7a   : > { %5921 = vmatprep.subr.bf16.mxu0 %v6221_v21 }
 0xa7d   : > { %5922 = vmatpush3.bf16.msra.mxu0 %v6221_v21 }
 0xb33   : > { %v5905_v22 = vpop.f32.mrb[20].mxu0 }
 0xb34   : > { %1870 = vrot.lane.b32.xlu1 %v5905_v22, %s8505_s24  ;;  %v1825_v23 = vpop.f32.mrb[21].mxu0 }
 0xb35   : > { %v5906_v26 = vpop.f32.mrb[22].mxu0 }
 0xb36   : > { %v1828_v27 = vpop.f32.mrb[23].mxu0  ;;  %v6236_v26 = vld [vmem:[%s8476_s13 + $0x44] ss:$16 sps:$4 sm:$0xff]  }
 0xb37   : > { %v6159_v28 = vpack.i.bf16 %v1828_v27, %v1825_v23  ;;  %v6239_v27 = vld [vmem:[%s8476_s13 + $0x4c] ss:$16 sps:$4 sm:$0xff]  }
 0xb39   : > { %6160 = vrot.lane.b32.xlu0 %v6159_v28, %s8505_s24  ;;  %v6234_v28 = vld [vmem:[%s8476_s13 + $0x40] ss:$16 sps:$4 sm:$0xff]  }
 0xba6   : > { %v1871_v43 = vpop.permute.xlu1 %1870 }
 0xba7   : > { %v1885_v49 = vsel %vm1882_vm8, %v1881_v46, %v1871_v43  ;;  %v6257_v43 = vld [vmem:[%s8476_s13 + $0xac] ss:$16 sps:$4 sm:$0xff]   ;;  %v6260_v46 = vld [vmem:[%s8476_s13 + $0xc4] ss:$16 sps:$4 sm:$0xff]  }
 0xba8   : > { %v1904_v53 = vpack.c.bf16 %v1885_v49, %v1885_v49  ;;  %v6261_v49 = vld [vmem:[%s8476_s13 + $0xc8] ss:$16 sps:$4 sm:$0xff]  }
 0xbab   : > { %v6161_v45 = vpop.permute.xlu0 %6160 }
 0xbac   : > { %v6163_v47 = vunpack.i.h.bf16 %v6161_v45  ;;  %v6162_v48 = vunpack.i.l.bf16 %v6161_v45  ;;  %v6255_v45 = vld [vmem:[%s8476_s13 + $0xa8] ss:$16 sps:$4 sm:$0xff]  }
 0xbae   : > { %v1883_v52 = vsel %vm1882_vm8, %v1879_v51, %v6162_v48  ;;  %v1884_v5 = vsel %vm1882_vm8, %v1880_v7, %v6163_v47  ;;  %v6263_v47 = vld [vmem:[%s8476_s13 + $0xcc] ss:$16 sps:$4 sm:$0xff]   ;;  %v6258_v48 = vld [vmem:[%s8476_s13 + $0xc0] ss:$16 sps:$4 sm:$0xff]   ;;  %v6266_v51 = vld [vmem:[%s8476_s13 + $0xe4] ss:$16 sps:$4 sm:$0xff]  }
 0xbaf   : > { %v1903_v55 = vpack.c.bf16 %v1884_v5, %v1883_v52  ;;  %v6264_v7 = vld [vmem:[%s8476_s13 + $0xe0] ss:$16 sps:$4 sm:$0xff]   ;;  %v6267_v52 = vld [vmem:[%s8476_s13 + $0xe8] ss:$16 sps:$4 sm:$0xff]   ;;  %v6269_v5 = vld [vmem:[%s8476_s13 + $0xec] ss:$16 sps:$4 sm:$0xff]  }
 0xbb1   : > { %5923 = vmatprep.mubr.bf16.mxu0 %v1903_v55 }
 0xbb2   : > { %5924 = vmatmul.mubr.bf16.vlgmr.msra.gmra.mrb[24].mxu0 %v1904_v53 }
 0xbb3   : > { %2362 = vmatprep.mubr.bf16.mxu0 %v6766_v58 }
 0xc85   : > { %v5925_v56 = vpop.f32.mrb[24].mxu0 }
 0xc86   : > { %v1993_v63 = vpop.f32.mrb[25].mxu0  ;;  %v2002_v60 = vadd.f32 %v5925_v56, %v5224_v3 }
 0xc87   : > { %v1994_v59 = vadd.f32 %v5224_v3, %v1993_v63  ;;  %v5926_v50 = vpop.f32.mrb[26].mxu0 }
 0xc88   : > { %v1996_v4 = vpop.f32.mrb[27].mxu0  ;;  %v7374_v11 = vadd.f32 %v2002_v60, %v7042_v24  ;;  %v6227_v24 = vld [vmem:[%s8476_s13 + $0xc] ss:$16 sps:$4 sm:$0xff]  }
 0xc89   : > { %v7367_v57 = vadd.f32 %v1994_v59, %v7036_v20  ;;  %v1997_v9 = vadd.f32 %v5224_v3, %v1996_v4  ;;  %v6224_v20 = vld [vmem:[%s8476_s13 + $0x4] ss:$16 sps:$4 sm:$0xff]   ;;  %2330 = vmatprep.subr.bf16.mxu0 %v6227_v24 }
 0xc8a   : > { %2279 = vmatprep.subr.bf16.mxu1 %v6224_v20  ;;  %v5233_v20 = vld [vmem:[%s8474_s11] ss:$0 sm:$0xff] }
 0xc8b   : > { %v7370_v54 = vadd.f32 %v1997_v9, %v7045_v25  ;;  %2012 = vadd.xlane.f32.xlu0 %v7367_v57  ;;  %v6225_v25 = vld [vmem:[%s8476_s13 + $0x8] ss:$16 sps:$4 sm:$0xff]   ;;  %2280 = vmatpush1.bf16.msra.mxu1 %v6222_v8 }
 0xc8c   : > { %2331 = vmatpush1.bf16.msra.mxu0 %v6225_v25  ;;  %2281 = vmatprep.subr.bf16.mxu1 %v6230_v12 }
 0xc8d   : > { %2014 = vadd.xlane.f32.xlu1 %v7370_v54  ;;  %2332 = vmatprep.subr.bf16.mxu0 %v6233_v61 }
 0xc8f   : > { %2016 = vadd.xlane.f32.xlu0 %v7374_v11  ;;  %2282 = vmatpush1.bf16.msra.mxu1 %v6228_v62  ;;  %v5234_v62 = vld [vmem:[%s8475_s12] ss:$0 sm:$0xff] }
 0xc90   : > { %2333 = vmatpush1.bf16.msra.mxu0 %v6231_v1  ;;  %2283 = vmatprep.subr.bf16.mxu1 %v6236_v26  ;;  %v6275_v26 = vld [vmem:[%s8478_s15 + $0xc8] sm:$0xff]  }
 0xc91   : > { %2334 = vmatprep.subr.bf16.mxu0 %v6239_v27  ;;  %v6276_v27 = vld [vmem:[%s8478_s15 + $0x8] sm:$0xff]  }
 0xc93   : > { %2284 = vmatpush1.bf16.msra.mxu1 %v6234_v28  ;;  %v6277_v28 = vld [vmem:[%s8478_s15 + $0x88] sm:$0xff]  }
 0xc94   : > { %2335 = vmatpush1.bf16.msra.mxu0 %v6237_v31  ;;  %2285 = vmatprep.subr.bf16.mxu1 %v6242_v34  ;;  %v6278_v31 = vld [vmem:[%s8478_s15 + $0x50] sm:$0xff]  }
 0xc95   : > { %2336 = vmatprep.subr.bf16.mxu0 %v6245_v35  ;;  %v6279_v34 = vld [vmem:[%s8478_s15 + $0xd0] sm:$0xff]  }
 0xc96   : > { %v6280_v35 = vld [vmem:[%s8478_s15 + $0x10] sm:$0xff]  }
 0xc97   : > { %2286 = vmatpush1.bf16.msra.mxu1 %v6240_v36  ;;  %v6281_v36 = vld [vmem:[%s8478_s15 + $0x90] sm:$0xff]  }
 0xc98   : > { %2337 = vmatpush1.bf16.msra.mxu0 %v6243_v37  ;;  %2287 = vmatprep.subr.bf16.mxu1 %v6248_v38  ;;  %v6282_v37 = vld [vmem:[%s8478_s15 + $0x58] sm:$0xff]  }
 0xc99   : > { %2338 = vmatprep.subr.bf16.mxu0 %v6251_v39  ;;  %v6283_v38 = vld [vmem:[%s8478_s15 + $0xd8] sm:$0xff]  }
 0xc9a   : > { %v6284_v39 = vld [vmem:[%s8478_s15 + $0x18] sm:$0xff]  }
 0xc9b   : > { %2288 = vmatpush1.bf16.msra.mxu1 %v6246_v40  ;;  %v6285_v40 = vld [vmem:[%s8478_s15 + $0x98] sm:$0xff]  }
 0xc9c   : > { %2339 = vmatpush1.bf16.msra.mxu0 %v6249_v41  ;;  %2289 = vmatprep.subr.bf16.mxu1 %v6254_v42  ;;  %v6286_v41 = vld [vmem:[%s8478_s15 + $0x60] sm:$0xff]  }
 0xc9d   : > { %2340 = vmatprep.subr.bf16.mxu0 %v6257_v43  ;;  %v6287_v42 = vld [vmem:[%s8478_s15 + $0xe0] sm:$0xff]  }
 0xc9e   : > { %v6288_v43 = vld [vmem:[%s8478_s15 + $0x20] sm:$0xff]  }
 0xc9f   : > { %2290 = vmatpush1.bf16.msra.mxu1 %v6252_v44  ;;  %v6289_v44 = vld [vmem:[%s8478_s15 + $0xa0] sm:$0xff]  }
 0xca0   : > { %2341 = vmatpush1.bf16.msra.mxu0 %v6255_v45  ;;  %2291 = vmatprep.subr.bf16.mxu1 %v6260_v46  ;;  %v6290_v45 = vld [vmem:[%s8478_s15 + $0x68] sm:$0xff]  }
 0xca1   : > { %2342 = vmatprep.subr.bf16.mxu0 %v6263_v47  ;;  %v6291_v46 = vld [vmem:[%s8478_s15 + $0xe8] sm:$0xff]  }
 0xca2   : > { %v6292_v47 = vld [vmem:[%s8478_s15 + $0x28] sm:$0xff]  }
 0xca3   : > { %2292 = vmatpush1.bf16.msra.mxu1 %v6258_v48  ;;  %v6293_v48 = vld [vmem:[%s8478_s15 + $0xa8] sm:$0xff]  }
 0xca4   : > { %2343 = vmatpush1.bf16.msra.mxu0 %v6261_v49  ;;  %2293 = vmatprep.subr.bf16.mxu1 %v6266_v51  ;;  %v6294_v49 = vld [vmem:[%s8478_s15 + $0x70] sm:$0xff]  }
 0xca5   : > { %2344 = vmatprep.subr.bf16.mxu0 %v6269_v5  ;;  %v6295_v51 = vld [vmem:[%s8478_s15 + $0xf0] sm:$0xff]   ;;  %v6298_v5 = vld [vmem:[%s8478_s15 + $0x78] sm:$0xff]  }
 0xca7   : > { %2294 = vmatpush1.bf16.msra.mxu1 %v6264_v7  ;;  %v6296_v7 = vld [vmem:[%s8478_s15 + $0x30] sm:$0xff]  }
 0xca8   : > { %2345 = vmatpush1.bf16.msra.mxu0 %v6267_v52  ;;  %v6297_v52 = vld [vmem:[%s8478_s15 + $0xb0] sm:$0xff]  }
 0xd18   : > { %v2013_v2 = vpop.xlane.xlu0 %2012 }
 0xd19   : > { %v2018_v6 = vmul.f32 0.0078125, %v2013_v2 }
 0xd1a   : > { %v2015_v10 = vpop.xlane.xlu1 %2014 }
 0xd1b   : > { %v7403_v13 = vsub.f32 %v7367_v57, %v2018_v6  ;;  %v2019_v15 = vmul.f32 0.0078125, %v2015_v10 }
 0xd1c   : > { %v2017_v16 = vpop.xlane.xlu0 %2016 }
 0xd1d   : > { %v7406_v17 = vsub.f32 %v7370_v54, %v2019_v15  ;;  %v2020_v18 = vmul.f32 0.0078125, %v2017_v16  ;;  %v2024_v19 = vmul.f32 %v7403_v13, %v7403_v13 }
 0xd1f   : > { %v7411_v21 = vsub.f32 %v7374_v11, %v2020_v18  ;;  %2027 = vadd.xlane.f32.xlu0 %v2024_v19  ;;  %v2025_v22 = vmul.f32 %v7406_v17, %v7406_v17  ;;  %v6270_v18 = vld [vmem:[%s8478_s15 + $0x40] sm:$0xff]  }
 0xd20   : > { %v6271_v19 = vld [vmem:[%s8478_s15 + $0xc0] sm:$0xff]   ;;  %5640 = vmatprep.subr.bf16.mxu1 %v6270_v18 }
 0xd21   : > { %v2026_v23 = vmul.f32 %v7411_v21, %v7411_v21  ;;  %5668 = vmatprep.subr.bf16.mxu0 %v6271_v19 }
 0xd23   : > { %2029 = vadd.xlane.f32.xlu0 %v2025_v22  ;;  %2031 = vadd.xlane.f32.xlu1 %v2026_v23  ;;  %v6273_v22 = vld [vmem:[%s8478_s15 + $0x80] sm:$0xff]   ;;  %v6274_v23 = vld [vmem:[%s8478_s15 + $0x48] sm:$0xff]  }
 0xdac   : > { %v2028_v55 = vpop.xlane.xlu0 %2027 }
 0xdad   : > { %v2033_v53 = vmul.f32 0.0078125, %v2028_v55  ;;  %v6299_v55 = vld [vmem:[%s8478_s15 + $0xf8] sm:$0xff]  }
 0xdaf   : > { %v2036_v3 = vadd.f32 1e-06, %v2033_v53  ;;  %v6300_v53 = vld [vmem:[%s8478_s15 + $0x38] sm:$0xff]  }
 0xdb0   : > { %v2032_v56 = vpop.xlane.xlu1 %2031  ;;  %v2030_v63 = vpop.xlane.xlu0 %2029 }
 0xdb1   : > { %6484 = vrsqrt.f32 %v2036_v3  ;;  %v2035_v59 = vmul.f32 0.0078125, %v2032_v56  ;;  %v2034_v50 = vmul.f32 0.0078125, %v2030_v63  ;;  %v6301_v3 = vld [vmem:[%s8478_s15 + $0xb8] sm:$0xff]   ;;  %v2095_v56 = vld [vmem:[%s8477_s14] sm:$0xf]  ;;  %v2113_v63 = vsub.s32 3, %v7147_v29 }
 0xdb3   : > { %v2038_v4 = vadd.f32 1e-06, %v2035_v59  ;;  %v2037_v60 = vadd.f32 1e-06, %v2034_v50  ;;  %v7601_v59 = vrot.slane %v2095_v56, %v7150_v30  ;;  %v7604_v50 = vrot.slane %v2095_v56, %v7159_v33 }
 0xdb5   : > { %6486 = vrsqrt.f32 %v2038_v4  ;;  %v7607_v4 = vrot.slane %v2095_v56, %v7156_v32 }
 0xdb6   : > { %6488 = vrsqrt.f32 %v2037_v60  ;;  %v7611_v60 = vrot.slane %v2095_v56, %v2113_v63 }
 0xdbb   : > { %v6485_v9 = vpop.eup %6484 }
 0xdbc   : > { %v2042_v8 = vmul.f32 %v6485_v9, %v7403_v13 }
 0xdbe   : > { %v2051_v61 = vmul.f32 %v5233_v20, %v2042_v8 }
 0xdbf   : > { %v6487_v25 = vpop.eup %6486 }
 0xdc0   : > { %v6489_v24 = vpop.eup %6488  ;;  %v2044_v2 = vmul.f32 %v6487_v25, %v7411_v21  ;;  %v2060_v6 = vadd.f32 %v5234_v62, %v2051_v61  ;;  %v6272_v21 = vld [vmem:[%s8478_s15] sm:$0xff]  }
 0xdc1   : > { %v2043_v12 = vmul.f32 %v6489_v24, %v7406_v17 }
 0xdc2   : > { %v2053_v13 = vmul.f32 %v5233_v20, %v2044_v2 }
 0xdc3   : > { %v2052_v1 = vmul.f32 %v5233_v20, %v2043_v12 }
 0xdc4   : > { %v2062_v16 = vadd.f32 %v5234_v62, %v2053_v13 }
 0xdc5   : > { %v2061_v10 = vadd.f32 %v5234_v62, %v2052_v1 }
 0xdc6   : > { %v2097_v17 = vpack.c.bf16 %v2062_v16, %v2062_v16 }
 0xdc7   : > { %v2096_v15 = vpack.c.bf16 %v2061_v10, %v2060_v6 }
 0xdc9   : > { %2312 = vmatmul.mubr.bf16.vlgmr.msra.gmra.mrb[24].mxu1 %v2096_v15  ;;  %2363 = vmatmul.mubr.bf16.vlgmr.msra.gmra.mrb[28].mxu0 %v2096_v15 }
 0xdca   : > { %2321 = vmatprep.mubr.bf16.mxu1 %v6766_v58  ;;  %2372 = vmatprep.mubr.bf16.mxu0 %v6766_v58 }
 0xdcb   : > { %5641 = vmatpush3.bf16.msra.mxu1 %v6272_v21  ;;  %5669 = vmatpush3.bf16.msra.mxu0 %v6273_v22 }
 0xdcc   : > { %5642 = vmatprep.subr.bf16.mxu1 %v6274_v23  ;;  %5670 = vmatprep.subr.bf16.mxu0 %v6275_v26 }
 0xdcf   : > { %5643 = vmatpush3.bf16.msra.mxu1 %v6276_v27  ;;  %5671 = vmatpush3.bf16.msra.mxu0 %v6277_v28 }
 0xdd0   : > { %5644 = vmatprep.subr.bf16.mxu1 %v6278_v31  ;;  %5672 = vmatprep.subr.bf16.mxu0 %v6279_v34 }
 0xdd1   : > { %2322 = vmatmul.mubr.bf16.gmra.mrb[28].mxu1 %v2097_v17  ;;  %2373 = vmatmul.mubr.bf16.gmra.mrb[32].mxu0 %v2097_v17 }
 0xdd3   : > { %5645 = vmatpush3.bf16.msra.mxu1 %v6280_v35  ;;  %5673 = vmatpush3.bf16.msra.mxu0 %v6281_v36 }
 0xdd4   : > { %5646 = vmatprep.subr.bf16.mxu1 %v6282_v37  ;;  %5674 = vmatprep.subr.bf16.mxu0 %v6283_v38 }
 0xdd7   : > { %5647 = vmatpush3.bf16.msra.mxu1 %v6284_v39  ;;  %5675 = vmatpush3.bf16.msra.mxu0 %v6285_v40 }
 0xdd8   : > { %5648 = vmatprep.subr.bf16.mxu1 %v6286_v41  ;;  %5676 = vmatprep.subr.bf16.mxu0 %v6287_v42 }
 0xddb   : > { %5649 = vmatpush3.bf16.msra.mxu1 %v6288_v43  ;;  %5677 = vmatpush3.bf16.msra.mxu0 %v6289_v44 }
 0xddc   : > { %5650 = vmatprep.subr.bf16.mxu1 %v6290_v45  ;;  %5678 = vmatprep.subr.bf16.mxu0 %v6291_v46 }
 0xddf   : > { %5651 = vmatpush3.bf16.msra.mxu1 %v6292_v47  ;;  %5679 = vmatpush3.bf16.msra.mxu0 %v6293_v48 }
 0xde0   : > { %5652 = vmatprep.subr.bf16.mxu1 %v6294_v49  ;;  %5680 = vmatprep.subr.bf16.mxu0 %v6295_v51 }
 0xde3   : > { %5653 = vmatpush3.bf16.msra.mxu1 %v6296_v7  ;;  %5681 = vmatpush3.bf16.msra.mxu0 %v6297_v52 }
 0xde4   : > { %5654 = vmatprep.subr.bf16.mxu1 %v6298_v5  ;;  %5682 = vmatprep.subr.bf16.mxu0 %v6299_v55 }
 0xde7   : > { %5655 = vmatpush3.bf16.msra.mxu1 %v6300_v53  ;;  %5683 = vmatpush3.bf16.msra.mxu0 %v6301_v3 }
 0xe9c   : > { %v2313_v9 = vpop.f32.mrb[24].mxu1  ;;  %v2364_v8 = vpop.f32.mrb[28].mxu0 }
 0xe9d   : > { %v7614_v20 = vadd.f32 %v2313_v9, %v7601_v59  ;;  %v7617_v25 = vadd.f32 %v2364_v8, %v7604_v50  ;;  %v2315_v24 = vpop.f32.mrb[25].mxu1  ;;  %v2366_v12 = vpop.f32.mrb[29].mxu0 }
 0xe9e   : > { %v7620_v61 = vadd.f32 %v2315_v24, %v7607_v4  ;;  %v7623_v62 = vadd.f32 %v2366_v12, %v7611_v60  ;;  %v2317_v1 = vpop.f32.mrb[26].mxu1  ;;  %v2368_v2 = vpop.f32.mrb[30].mxu0 }
 0xe9f   : > { %v2381_v6 = vmul.f32 %v7614_v20, %v7614_v20  ;;  %v2383_v10 = vmul.f32 %v7617_v25, %v7617_v25  ;;  %v7630_v15 = vadd.f32 %v2317_v1, %v7601_v59  ;;  %v7633_v13 = vadd.f32 %v2368_v2, %v7604_v50  ;;  %v2319_v16 = vpop.f32.mrb[27].mxu1  ;;  %v2370_v17 = vpop.f32.mrb[31].mxu0 }
 0xea0   : > { %v2382_v18 = vmul.f32 %v7620_v61, %v7620_v61  ;;  %v2384_v19 = vmul.f32 %v7623_v62, %v7623_v62  ;;  %v7640_v21 = vadd.f32 %v2319_v16, %v7607_v4  ;;  %v7643_v22 = vadd.f32 %v2370_v17, %v7611_v60 }
 0xea1   : > { %v2393_v23 = vmul.f32 %v2381_v6, %v7614_v20  ;;  %v2395_v26 = vmul.f32 %v2383_v10, %v7617_v25  ;;  %v2385_v27 = vmul.f32 %v7630_v15, %v7630_v15  ;;  %v2387_v28 = vmul.f32 %v7633_v13, %v7633_v13 }
 0xea2   : > { %v2394_v31 = vmul.f32 %v2382_v18, %v7620_v61  ;;  %v2396_v34 = vmul.f32 %v2384_v19, %v7623_v62  ;;  %v2386_v35 = vmul.f32 %v7640_v21, %v7640_v21  ;;  %v2388_v36 = vmul.f32 %v7643_v22, %v7643_v22 }
 0xea3   : > { %v2405_v37 = vmul.f32 0.044715, %v2393_v23  ;;  %v2407_v38 = vmul.f32 0.044715, %v2395_v26  ;;  %v2397_v39 = vmul.f32 %v2385_v27, %v7630_v15  ;;  %v2399_v40 = vmul.f32 %v2387_v28, %v7633_v13 }
 0xea4   : > { %v2406_v41 = vmul.f32 0.044715, %v2394_v31  ;;  %v2408_v42 = vmul.f32 0.044715, %v2396_v34  ;;  %v2398_v43 = vmul.f32 %v2386_v35, %v7640_v21  ;;  %v2400_v44 = vmul.f32 %v2388_v36, %v7643_v22  ;;  %v2323_v45 = vpop.f32.mrb[28].mxu1  ;;  %v2374_v46 = vpop.f32.mrb[32].mxu0 }
 0xea5   : > { %v2417_v47 = vadd.f32 %v2405_v37, %v7614_v20  ;;  %v2419_v48 = vadd.f32 %v2407_v38, %v7617_v25  ;;  %v2409_v49 = vmul.f32 0.044715, %v2397_v39  ;;  %v2411_v51 = vmul.f32 0.044715, %v2399_v40  ;;  %v2325_v7 = vpop.f32.mrb[29].mxu1  ;;  %v2376_v52 = vpop.f32.mrb[33].mxu0 }
 0xea6   : > { %v2418_v5 = vadd.f32 %v2406_v41, %v7620_v61  ;;  %v2420_v55 = vadd.f32 %v2408_v42, %v7623_v62  ;;  %v2410_v53 = vmul.f32 0.044715, %v2398_v43  ;;  %v2412_v3 = vmul.f32 0.044715, %v2400_v44  ;;  %v2327_v56 = vpop.f32.mrb[30].mxu1  ;;  %v2378_v9 = vpop.f32.mrb[34].mxu0 }
 0xea7   : > { %v2429_v8 = vmul.f32 0.7978846, %v2417_v47  ;;  %v2431_v24 = vmul.f32 0.7978846, %v2419_v48  ;;  %v2421_v12 = vadd.f32 %v2409_v49, %v7630_v15  ;;  %v2423_v1 = vadd.f32 %v2411_v51, %v7633_v13  ;;  %v2328_v2 = vpop.f32.mrb[31].mxu1  ;;  %v2379_v6 = vpop.f32.mrb[35].mxu0 }
 0xea8   : > { %v2430_v10 = vmul.f32 0.7978846, %v2418_v5  ;;  %v2432_v16 = vmul.f32 0.7978846, %v2420_v55  ;;  %v2422_v17 = vadd.f32 %v2410_v53, %v7640_v21  ;;  %v2424_v18 = vadd.f32 %v2412_v3, %v7643_v22 }
 0xea9   : > { %6490 = vtanh.f32 %v2429_v8  ;;  %v2433_v19 = vmul.f32 0.7978846, %v2421_v12  ;;  %v7670_v23 = vadd.f32 %v2323_v45, %v7601_v59  ;;  %v2435_v26 = vmul.f32 0.7978846, %v2423_v1 }
 0xeaa   : > { %6492 = vtanh.f32 %v2431_v24  ;;  %v2434_v27 = vmul.f32 0.7978846, %v2422_v17  ;;  %v7673_v28 = vadd.f32 %v2374_v46, %v7604_v50  ;;  %v7678_v34 = vadd.f32 %v2325_v7, %v7607_v4 }
 0xeab   : > { %6494 = vtanh.f32 %v2430_v10  ;;  %v2389_v31 = vmul.f32 %v7670_v23, %v7670_v23  ;;  %v7681_v35 = vadd.f32 %v2376_v52, %v7611_v60  ;;  %v2436_v36 = vmul.f32 0.7978846, %v2424_v18 }
 0xeac   : > { %6496 = vtanh.f32 %v2432_v16  ;;  %v2391_v59 = vmul.f32 %v7673_v28, %v7673_v28  ;;  %v2390_v50 = vmul.f32 %v7678_v34, %v7678_v34 }
 0xead   : > { %6498 = vtanh.f32 %v2433_v19  ;;  %v2401_v37 = vmul.f32 %v2389_v31, %v7670_v23  ;;  %v2392_v38 = vmul.f32 %v7681_v35, %v7681_v35 }
 0xeae   : > { %6500 = vtanh.f32 %v2435_v26  ;;  %v2403_v4 = vmul.f32 %v2391_v59, %v7673_v28  ;;  %v2402_v39 = vmul.f32 %v2390_v50, %v7678_v34 }
 0xeaf   : > { %6502 = vtanh.f32 %v2434_v27  ;;  %v2413_v60 = vmul.f32 0.044715, %v2401_v37  ;;  %v2404_v40 = vmul.f32 %v2392_v38, %v7681_v35 }
 0xeb0   : > { %6504 = vtanh.f32 %v2436_v36  ;;  %v2415_v41 = vmul.f32 0.044715, %v2403_v4  ;;  %v2414_v43 = vmul.f32 0.044715, %v2402_v39 }
 0xeb1   : > { %v2425_v42 = vadd.f32 %v2413_v60, %v7670_v23  ;;  %v2416_v44 = vmul.f32 0.044715, %v2404_v40 }
 0xeb2   : > { %v2427_v45 = vadd.f32 %v2415_v41, %v7673_v28  ;;  %v2426_v48 = vadd.f32 %v2414_v43, %v7678_v34 }
 0xeb3   : > { %v6491_v46 = vpop.eup %6490  ;;  %v2437_v47 = vmul.f32 0.7978846, %v2425_v42  ;;  %v2428_v49 = vadd.f32 %v2416_v44, %v7681_v35 }
 0xeb4   : > { %v6493_v51 = vpop.eup %6492  ;;  %v2453_v7 = vadd.f32 1.0, %v6491_v46  ;;  %v2439_v52 = vmul.f32 0.7978846, %v2427_v45  ;;  %v2438_v53 = vmul.f32 0.7978846, %v2426_v48 }
 0xeb5   : > { %v6495_v5 = vpop.eup %6494  ;;  %v2455_v55 = vadd.f32 1.0, %v6493_v51  ;;  %6506 = vtanh.f32 %v2437_v47  ;;  %v2440_v3 = vmul.f32 0.7978846, %v2428_v49 }
 0xeb6   : > { %v6497_v56 = vpop.eup %6496  ;;  %6508 = vtanh.f32 %v2439_v52  ;;  %v2454_v9 = vadd.f32 1.0, %v6495_v5  ;;  %v2465_v1 = vmul.f32 0.5, %v2453_v7 }
 0xeb7   : > { %v6499_v8 = vpop.eup %6498  ;;  %6510 = vtanh.f32 %v2438_v53  ;;  %v2456_v24 = vadd.f32 1.0, %v6497_v56  ;;  %v2467_v10 = vmul.f32 0.5, %v2455_v55 }
 0xeb8   : > { %v6501_v12 = vpop.eup %6500  ;;  %v2457_v2 = vadd.f32 1.0, %v6499_v8  ;;  %6512 = vtanh.f32 %v2440_v3  ;;  %v2466_v26 = vmul.f32 0.5, %v2454_v9  ;;  %v2477_v59 = vmul.f32 %v2465_v1, %v7614_v20 }
 0xeb9   : > { %v6503_v6 = vpop.eup %6502  ;;  %v2459_v16 = vadd.f32 1.0, %v6501_v12  ;;  %v2468_v36 = vmul.f32 0.5, %v2456_v24  ;;  %v2479_v38 = vmul.f32 %v2467_v10, %v7617_v25  ;;  %v5267_v12 = vld [vmem:[#allocation5] ss:$0 sm:$0xff] }
 0xeba   : > { %v6505_v17 = vpop.eup %6504  ;;  %v2469_v18 = vmul.f32 0.5, %v2457_v2  ;;  %v2458_v19 = vadd.f32 1.0, %v6503_v6  ;;  %v2478_v40 = vmul.f32 %v2466_v26, %v7620_v61 }
 0xebb   : > { %v2471_v27 = vmul.f32 0.5, %v2459_v16  ;;  %v2460_v31 = vadd.f32 1.0, %v6505_v17  ;;  %v2480_v44 = vmul.f32 %v2468_v36, %v7623_v62 }
 0xebc   : > { %v2481_v37 = vmul.f32 %v2469_v18, %v7630_v15  ;;  %v2470_v50 = vmul.f32 0.5, %v2458_v19 }
 0xebd   : > { %v2483_v4 = vmul.f32 %v2471_v27, %v7633_v13  ;;  %v2472_v60 = vmul.f32 0.5, %v2460_v31 }
 0xebe   : > { %v2554_v39 = vpack.c.bf16 %v2481_v37, %v2477_v59  ;;  %v2482_v41 = vmul.f32 %v2470_v50, %v7640_v21 }
 0xebf   : > { %v6507_v42 = vpop.eup %6506  ;;  %v2556_v43 = vpack.c.bf16 %v2483_v4, %v2479_v38  ;;  %v2484_v45 = vmul.f32 %v2472_v60, %v7643_v22 }
 0xec0   : > { %v6509_v20 = vpop.eup %6508  ;;  %v2555_v46 = vpack.c.bf16 %v2482_v41, %v2478_v40  ;;  %v2461_v15 = vadd.f32 1.0, %v6507_v42 }
 0xec1   : > { %v6511_v47 = vpop.eup %6510  ;;  %v2557_v48 = vpack.c.bf16 %v2484_v45, %v2480_v44  ;;  %v2463_v25 = vadd.f32 1.0, %v6509_v20  ;;  %v6302_v45 = vld [vmem:[%s8543_s7 + $0xc0] ss:$12 sps:$4 sm:$0xff]   ;;  %v6307_v20 = vld [vmem:[%s8543_s7 + $0xdc] ss:$12 sps:$4 sm:$0xff]  }
 0xec2   : > { %v6513_v49 = vpop.eup %6512  ;;  %2792 = vmatprep.mubr.bf16.mxu1 %v2555_v46  ;;  %v2462_v13 = vadd.f32 1.0, %v6511_v47  ;;  %v2473_v51 = vmul.f32 0.5, %v2461_v15  ;;  %v6308_v46 = vld [vmem:[%s8543_s7 + $0xc8] ss:$12 sps:$4 sm:$0xff]  }
 0xec3   : > { %2840 = vmatprep.mubr.bf16.mxu0 %v2557_v48  ;;  %2793 = vmatmul.mubr.bf16.vlgmr.msra.gmra.mrb[32].mxu1 %v2554_v39  ;;  %v2464_v61 = vadd.f32 1.0, %v6513_v49  ;;  %v2475_v21 = vmul.f32 0.5, %v2463_v25 }
 0xec4   : > { %2841 = vmatmul.mubr.bf16.vlgmr.msra.gmra.mrb[36].mxu0 %v2556_v43  ;;  %v2474_v7 = vmul.f32 0.5, %v2462_v13  ;;  %v2485_v62 = vmul.f32 %v2473_v51, %v7670_v23  ;;  %5927 = vmatprep.subr.bf16.mxu0 %v6308_v46 }
 0xec5   : > { %v2476_v52 = vmul.f32 0.5, %v2464_v61  ;;  %v2487_v5 = vmul.f32 %v2475_v21, %v7673_v28  ;;  %5928 = vmatpush3.bf16.msra.mxu0 %v6308_v46 }
 0xec6   : > { %v2486_v22 = vmul.f32 %v2474_v7, %v7678_v34  ;;  %v2558_v56 = vpack.c.bf16 %v2485_v62, %v2485_v62 }
 0xec7   : > { %v2488_v55 = vmul.f32 %v2476_v52, %v7681_v35  ;;  %v2560_v9 = vpack.c.bf16 %v2487_v5, %v2487_v5  ;;  %v6309_v5 = vld [vmem:[%s8543_s7 + $0xf0] ss:$12 sps:$4 sm:$0xff]  }
 0xec8   : > { %v2559_v53 = vpack.c.bf16 %v2486_v22, %v2486_v22  ;;  %v6311_v22 = vld [vmem:[%s8543_s7 + $0xf4] ss:$12 sps:$4 sm:$0xff]  }
 0xec9   : > { %v2561_v3 = vpack.c.bf16 %v2488_v55, %v2488_v55  ;;  %v6312_v55 = vld [vmem:[%s8543_s7 + $0xe0] ss:$12 sps:$4 sm:$0xff]  }
 0xeca   : > { %2800 = vmatprep.mubr.bf16.mxu1 %v2559_v53  ;;  %5929 = vmatprep.subr.bf16.mxu0 %v6312_v55  ;;  %v6315_v53 = vld [vmem:[%s8543_s7 + $0x10c] ss:$12 sps:$4 sm:$0xff]  }
 0xecb   : > { %2848 = vmatprep.mubr.bf16.mxu0 %v2561_v3  ;;  %2801 = vmatmul.mubr.bf16.gmra.mrb[36].mxu1 %v2558_v56  ;;  %v6313_v3 = vld [vmem:[%s8543_s7 + $0x108] ss:$12 sps:$4 sm:$0xff]   ;;  %v6316_v56 = vld [vmem:[%s8543_s7 + $0xf8] ss:$12 sps:$4 sm:$0xff]  }
 0xecc   : > { %2849 = vmatmul.mubr.bf16.gmra.mrb[40].mxu0 %v2560_v9  ;;  %3127 = vmatprep.mubr.bf16.mxu1 %v6766_v58  ;;  %v6319_v9 = vld [vmem:[%s8543_s7 + $0x124] ss:$12 sps:$4 sm:$0xff]  }
 0xecd   : > { %5930 = vmatpush3.bf16.msra.mxu0 %v6312_v55 }
 0xece   : > { %5931 = vmatprep.subr.bf16.mxu0 %v6316_v56 }
 0xed1   : > { %5932 = vmatpush3.bf16.msra.mxu0 %v6316_v56 }
 0xf96   : > { %v5656_v8 = vpop.f32.mrb[32].mxu1 }
 0xf97   : > { %v5684_v24 = vpop.f32.mrb[36].mxu0  ;;  %v5657_v23 = vpop.f32.mrb[33].mxu1 }
 0xf98   : > { %v5658_v1 = vadd.f32 %v5657_v23, %v5656_v8  ;;  %v5685_v34 = vpop.f32.mrb[37].mxu0  ;;  %v5659_v2 = vpop.f32.mrb[34].mxu1  ;;  %v6317_v8 = vld [vmem:[%s8543_s7 + $0x120] ss:$12 sps:$4 sm:$0xff]   ;;  %v6321_v23 = vld [vmem:[%s8543_s7 + $0x138] ss:$12 sps:$4 sm:$0xff]  }
 0xf99   : > { %v5686_v28 = vadd.f32 %v5685_v34, %v5684_v24  ;;  %v5687_v6 = vpop.f32.mrb[38].mxu0  ;;  %v5660_v35 = vpop.f32.mrb[35].mxu1  ;;  %v6320_v24 = vld [vmem:[%s8543_s7 + $0x110] ss:$12 sps:$4 sm:$0xff]   ;;  %v6327_v34 = vld [vmem:[%s8543_s7 + $0x154] ss:$12 sps:$4 sm:$0xff]  }
 0xf9a   : > { %v2795_v10 = vadd.f32 %v5658_v1, %v5267_v12  ;;  %v5661_v16 = vadd.f32 %v5660_v35, %v5659_v2  ;;  %v5688_v17 = vpop.f32.mrb[39].mxu0  ;;  %5933 = vmatprep.subr.bf16.mxu0 %v6320_v24  ;;  %v6324_v1 = vld [vmem:[%s8543_s7 + $0x128] ss:$12 sps:$4 sm:$0xff]   ;;  %v6325_v2 = vld [vmem:[%s8543_s7 + $0x150] ss:$12 sps:$4 sm:$0xff]  }
 0xf9b   : > { %v5689_v18 = vadd.f32 %v5688_v17, %v5687_v6  ;;  %5934 = vmatpush3.bf16.msra.mxu0 %v6320_v24  ;;  %v6331_v6 = vld [vmem:[%s8543_s7 + $0x16c] ss:$12 sps:$4 sm:$0xff]   ;;  %v6329_v35 = vld [vmem:[%s8543_s7 + $0x168] ss:$12 sps:$4 sm:$0xff]  }
 0xf9c   : > { %v2843_v19 = vadd.f32 %v5686_v28, %v2795_v10  ;;  %v2798_v26 = vadd.f32 %v5661_v16, %v5267_v12  ;;  %5935 = vmatprep.subr.bf16.mxu0 %v6324_v1  ;;  %v6328_v28 = vld [vmem:[%s8543_s7 + $0x140] ss:$12 sps:$4 sm:$0xff]   ;;  %v6332_v10 = vld [vmem:[%s8543_s7 + $0x158] ss:$12 sps:$4 sm:$0xff]   ;;  %v6333_v16 = vld [vmem:[%s8543_s7 + $0x170] ss:$12 sps:$4 sm:$0xff]  }
 0xf9e   : > { %v2846_v27 = vadd.f32 %v5689_v18, %v2798_v26  ;;  %v5662_v31 = vpop.f32.mrb[36].mxu1  ;;  %v7711_v36 = vadd.f32 %v2843_v19, %v7367_v57 }
 0xf9f   : > { %v5690_v59 = vpop.f32.mrb[40].mxu0  ;;  %v5663_v37 = vpop.f32.mrb[37].mxu1  ;;  %5936 = vmatpush3.bf16.msra.mxu0 %v6324_v1 }
 0xfa0   : > { %v5664_v50 = vadd.f32 %v5663_v37, %v5662_v31  ;;  %v5691_v38 = vpop.f32.mrb[41].mxu0  ;;  %v5665_v4 = vpop.f32.mrb[38].mxu1  ;;  %2863 = vadd.xlane.f32.xlu0 %v7711_v36  ;;  %v7715_v60 = vadd.f32 %v2846_v27, %v7370_v54  ;;  %v6304_v54 = vld [vmem:[%s8543_s7 + $0xc4] ss:$12 sps:$4 sm:$0xff]   ;;  %5937 = vmatprep.subr.bf16.mxu0 %v6328_v28 }
 0xfa1   : > { %v5692_v39 = vadd.f32 %v5691_v38, %v5690_v59  ;;  %v5693_v40 = vpop.f32.mrb[42].mxu0  ;;  %v5666_v41 = vpop.f32.mrb[39].mxu1  ;;  %3095 = vmatprep.subr.bf16.mxu1 %v6304_v54  ;;  %v5302_v4 = vld [vmem:[%s8544_s0 + $0x1] ss:$0 sm:$0xff]  ;;  %s6662_s0 = scalar_lea.vmem %s6661_s3, 32 }
 0xfa2   : > { %v2803_v42 = vadd.f32 %v5664_v50, %v5267_v12  ;;  %v5694_v43 = vpop.f32.mrb[43].mxu0  ;;  %2865 = vadd.xlane.f32.xlu1 %v7715_v60  ;;  %3096 = vmatpush1.bf16.msra.mxu1 %v6302_v45  ;;  %v6323_v12 = vld [vmem:[%s8543_s7 + $0x13c] ss:$12 sps:$4 sm:$0xff]  }
 0xfa3   : > { %3097 = vmatprep.subr.bf16.mxu1 %v6307_v20  ;;  %5938 = vmatpush3.bf16.msra.mxu0 %v6328_v28  ;;  %v5303_v43 = vld [vmem:[%s8545_s20 + $0x1] ss:$0 sm:$0xff] }
 0xfa4   : > { %v2851_v44 = vadd.f32 %v5692_v39, %v2803_v42  ;;  %5939 = vmatprep.subr.bf16.mxu0 %v6332_v10 }
 0xfa6   : > { %v7719_v57 = vadd.f32 %v2851_v44, %v7374_v11  ;;  %v6305_v11 = vld [vmem:[%s8543_s7 + $0xd8] ss:$12 sps:$4 sm:$0xff]  }
 0xfa7   : > { %3098 = vmatpush1.bf16.msra.mxu1 %v6305_v11  ;;  %5940 = vmatpush3.bf16.msra.mxu0 %v6332_v10 }
 0xfa8   : > { %2867 = vadd.xlane.f32.xlu0 %v7719_v57  ;;  %3099 = vmatprep.subr.bf16.mxu1 %v6311_v22 }
 0xfa9   : > { %5941 = vmatprep.subr.bf16.mxu0 %v6333_v16 }
 0xfab   : > { %3100 = vmatpush1.bf16.msra.mxu1 %v6309_v5  ;;  %5942 = vmatpush3.bf16.msra.mxu0 %v6333_v16 }
 0xfac   : > { %3101 = vmatprep.subr.bf16.mxu1 %v6315_v53 }
 0xfaf   : > { %3102 = vmatpush1.bf16.msra.mxu1 %v6313_v3 }
 0xfb0   : > { %3103 = vmatprep.subr.bf16.mxu1 %v6319_v9 }
 0xfb3   : > { %3104 = vmatpush1.bf16.msra.mxu1 %v6317_v8 }
 0xfb4   : > { %3105 = vmatprep.subr.bf16.mxu1 %v6323_v12 }
 0xfb7   : > { %3106 = vmatpush1.bf16.msra.mxu1 %v6321_v23 }
 0xfb8   : > { %3107 = vmatprep.subr.bf16.mxu1 %v6327_v34 }
 0xfbb   : > { %3108 = vmatpush1.bf16.msra.mxu1 %v6325_v2 }
 0xfbc   : > { %3109 = vmatprep.subr.bf16.mxu1 %v6331_v6 }
 0xfbf   : > { %3110 = vmatpush1.bf16.msra.mxu1 %v6329_v35 }
0x102d   : > { %v2864_v15 = vpop.xlane.xlu0 %2863 }
0x102e   : > { %v2869_v47 = vmul.f32 0.0078125, %v2864_v15 }
0x102f   : > { %v2866_v48 = vpop.xlane.xlu1 %2865 }
0x1030   : > { %v7738_v25 = vsub.f32 %v7711_v36, %v2869_v47  ;;  %v2870_v49 = vmul.f32 0.0078125, %v2866_v48 }
0x1032   : > { %v7741_v13 = vsub.f32 %v7715_v60, %v2870_v49  ;;  %v2875_v51 = vmul.f32 %v7738_v25, %v7738_v25 }
0x1034   : > { %2878 = vadd.xlane.f32.xlu1 %v2875_v51  ;;  %v2876_v61 = vmul.f32 %v7741_v13, %v7741_v13 }
0x1035   : > { %v2868_v21 = vpop.xlane.xlu0 %2867 }
0x1036   : > { %v2871_v7 = vmul.f32 0.0078125, %v2868_v21  ;;  %2880 = vadd.xlane.f32.xlu0 %v2876_v61 }
0x1038   : > { %v7748_v52 = vsub.f32 %v7719_v57, %v2871_v7 }
0x103a   : > { %v2877_v62 = vmul.f32 %v7748_v52, %v7748_v52 }
0x103c   : > { %2882 = vadd.xlane.f32.xlu1 %v2877_v62 }
0x10c1   : > { %v2879_v17 = vpop.xlane.xlu1 %2878 }
0x10c2   : > { %v2884_v18 = vmul.f32 0.0078125, %v2879_v17 }
0x10c3   : > { %v2881_v19 = vpop.xlane.xlu0 %2880 }
0x10c4   : > { %v2887_v26 = vadd.f32 1e-06, %v2884_v18  ;;  %v2885_v27 = vmul.f32 0.0078125, %v2881_v19 }
0x10c6   : > { %6514 = vrsqrt.f32 %v2887_v26  ;;  %v2888_v31 = vadd.f32 1e-06, %v2885_v27 }
0x10c8   : > { %6516 = vrsqrt.f32 %v2888_v31 }
0x10c9   : > { %v2883_v59 = vpop.xlane.xlu1 %2882 }
0x10ca   : > { %v2886_v37 = vmul.f32 0.0078125, %v2883_v59 }
0x10cc   : > { %v2889_v50 = vadd.f32 1e-06, %v2886_v37 }
0x10ce   : > { %6518 = vrsqrt.f32 %v2889_v50 }
0x10d0   : > { %v6515_v38 = vpop.eup %6514 }
0x10d1   : > { %v2893_v39 = vmul.f32 %v6515_v38, %v7738_v25  ;;  %v5336_v25 = vld [vmem:[%s8546_s8 + $0x3] sm:$0x7] }
0x10d2   : > { %v6517_v40 = vpop.eup %6516  ;;  %v2955_v49 = vrot.slane %v5336_v25, %v7150_v30  ;;  %v2959_v51 = vrot.slane %v5336_v25, %v7156_v32  ;;  %v2963_v3 = vrot.slane %v5336_v25, %v7159_v33 }
0x10d3   : > { %v2902_v41 = vmul.f32 %v5302_v4, %v2893_v39  ;;  %v2894_v42 = vmul.f32 %v6517_v40, %v7741_v13 }
0x10d5   : > { %v2903_v44 = vmul.f32 %v5302_v4, %v2894_v42  ;;  %v2911_v45 = vadd.f32 %v5303_v43, %v2902_v41 }
0x10d7   : > { %v2912_v54 = vadd.f32 %v5303_v43, %v2903_v44 }
0x10d8   : > { %v6519_v20 = vpop.eup %6518 }
0x10d9   : > { %v2895_v46 = vmul.f32 %v6519_v20, %v7748_v52  ;;  %v2949_v11 = vpack.c.bf16 %v2912_v54, %v2911_v45 }
0x10db   : > { %3128 = vmatmul.mubr.bf16.vlgmr.msra.gmra.mrb[40].mxu1 %v2949_v11  ;;  %5943 = vmatprep.mubr.bf16.mxu0 %v2949_v11  ;;  %v2904_v15 = vmul.f32 %v5302_v4, %v2895_v46 }
0x10dc   : > { %3137 = vmatprep.mubr.bf16.mxu1 %v6766_v58 }
0x10dd   : > { %v2913_v47 = vadd.f32 %v5303_v43, %v2904_v15 }
0x10df   : > { %v2950_v48 = vpack.c.bf16 %v2913_v47, %v2913_v47 }
0x10e1   : > { %5944 = vmatmul.mubr.bf16.vlgmr.msra.gmra.mrb[44].mxu0 %v2950_v48 }
0x10e3   : > { %3138 = vmatmul.mubr.bf16.gmra.mrb[44].mxu1 %v2950_v48 }
0x11ae   : > { %v3129_v13 = vpop.f32.mrb[40].mxu1 }
0x11af   : > { %v3131_v61 = vpop.f32.mrb[41].mxu1  ;;  %v3130_v7 = vadd.f32 %v3129_v13, %v2955_v49 }
0x11b0   : > { %v3133_v21 = vpop.f32.mrb[42].mxu1  ;;  %v3132_v22 = vadd.f32 %v3131_v61, %v2959_v51 }
0x11b1   : > { %v3134_v52 = vadd.f32 %v3133_v21, %v2955_v49  ;;  %v3135_v62 = vpop.f32.mrb[43].mxu1 }
0x11b2   : > { %v3136_v5 = vadd.f32 %v3135_v62, %v2959_v51 }
0x11b3   : > { %v7824_v55 = vpack.c.bf16 %v3134_v52, %v3130_v7 }
0x11b4   : > { %v7826_v53 = vpack.c.bf16 %v3136_v5, %v3132_v22  ;;  %v5945_v56 = vpop.f32.mrb[44].mxu0 }
0x11b5   : > { %v3180_v9 = vpop.f32.mrb[45].mxu0  ;;  %5951 = vmatprep.mubr.msk.bf16.mxu1 %vm1157_vm3, %v7824_v55  ;;  %v3189_v19 = vadd.f32 %v5945_v56, %v2963_v3 }
0x11b6   : > { %v3139_v8 = vpop.f32.mrb[44].mxu1  ;;  %v5946_v24 = vpop.f32.mrb[46].mxu0  ;;  %6063 = vmatprep.subr.msk.bf16.mxu1 %vm1157_vm3, %v7826_v53  ;;  %v3205_v12 = vsel %vm1157_vm3, %v7826_v53, 0  ;;  %v3181_v34 = vadd.f32 %v3180_v9, %v2963_v3 }
0x11b7   : > { %v3141_v23 = vpop.f32.mrb[45].mxu1  ;;  %v3183_v1 = vpop.f32.mrb[47].mxu0  ;;  %5948 = vmatpush3.bf16.xpose.msra.mxu1 %v3205_v12  ;;  %v3140_v18 = vadd.f32 %v3139_v8, %v2955_v49  ;;  %v7846_v27 = vpack.c.bf16 %v3189_v19, %v3189_v19 }
0x11b8   : > { %v3142_v2 = vadd.f32 %v3141_v23, %v2959_v51  ;;  %v3184_v28 = vadd.f32 %v3183_v1, %v2963_v3  ;;  %v3143_v6 = vpop.f32.mrb[46].mxu1 }
0x11b9   : > { %v3144_v35 = vpop.f32.mrb[47].mxu1  ;;  %v7844_v26 = vpack.c.bf16 %v3140_v18, %v3140_v18  ;;  %v3308_v31 = vsel %vm1268_vm4, %v7846_v27, 0 }
0x11ba   : > { %v7835_v10 = vpack.c.bf16 %v3142_v2, %v3142_v2  ;;  %v7837_v16 = vpack.c.bf16 %v3184_v28, %v3181_v34 }
0x11bc   : > { %6064 = vmatprep.subr.msk.bf16.mxu1 %vm1157_vm3, %v7835_v10  ;;  %v3208_v17 = vsel %vm1157_vm3, %v7835_v10, 0 }
0x11bf   : > { %5950 = vmatpush3.bf16.xpose.msra.mxu1 %v3208_v17 }
0x11c0   : > { %5955 = vmatprep.subr.bf16.mxu1 %v7837_v16 }
0x11c6   : > { %5952 = vmatmul.mubr.msk.bf16.vlgmr.msra.gmra.mrb[48].mxu1 %vm1157_vm3, %v7844_v26 }
0x11c7   : > { %5956 = vmatpush3.bf16.msra.mxu1 %v7837_v16 }
0x11c8   : > { %6065 = vmatprep.subr.msk.bf16.mxu1 %vm1268_vm4, %v7846_v27 }
0x11cb   : > { %5958 = vmatpush3.bf16.msra.mxu1 %v3308_v31 }
0x1299   : > { %v5953_v59 = vpop.f32.mrb[48].mxu1 }
0x129a   : > { %v3244_v37 = vpop.f32.mrb[49].mxu1  ;;  %v3260_v50 = vmul.f32 0.17677669, %v5953_v59 }
0x129b   : > { %v3258_v38 = vmul.f32 0.17677669, %v3244_v37  ;;  %v5954_v4 = vpop.f32.mrb[50].mxu1 }
0x129c   : > { %v3247_v39 = vpop.f32.mrb[51].mxu1  ;;  %v3263_v44 = vadd.f32 %v3260_v50, %v7209_v14 }
0x129d   : > { %v3259_v40 = vmul.f32 0.17677669, %v3247_v39  ;;  %v3261_v41 = vadd.f32 %v3258_v38, %v7209_v14 }
0x129e   : > { %v3270_v54 = vsel %vm1224_vm6, %v3263_v44, -inf }
0x129f   : > { %v3264_v42 = vsel %vm1224_vm6, %v3261_v41, -inf  ;;  %v3262_v43 = vadd.f32 %v3259_v40, %v7209_v14 }
0x12a0   : > { %3265 = vmax.xlane.f32.xlu0 %v3264_v42 }
0x12a1   : > { %v3267_v45 = vsel %vm1224_vm6, %v3262_v43, -inf }
0x12a2   : > { %3268 = vmax.xlane.f32.xlu1 %v3267_v45 }
0x12a4   : > { %3271 = vmax.xlane.f32.xlu0 %v3270_v54 }
0x132d   : > { %v3266_v20 = vpop.xlane.xlu0 %3265 }
0x132e   : > { %v3273_v46 = vsub.f32 %v3261_v41, %v3266_v20 }
0x132f   : > { %v3269_v11 = vpop.xlane.xlu1 %3268 }
0x1330   : > { %v3276_v15 = vmul.f32 1.442695, %v3273_v46  ;;  %v3274_v47 = vsub.f32 %v3262_v43, %v3269_v11 }
0x1331   : > { %v3272_v48 = vpop.xlane.xlu0 %3271 }
0x1332   : > { %6520 = vpow2.f32 %v3276_v15  ;;  %v3278_v25 = vmul.f32 1.442695, %v3274_v47  ;;  %v3275_v49 = vsub.f32 %v3263_v44, %v3272_v48 }
0x1334   : > { %6522 = vpow2.f32 %v3278_v25  ;;  %v3280_v13 = vmul.f32 1.442695, %v3275_v49 }
0x1336   : > { %6524 = vpow2.f32 %v3280_v13 }
0x133c   : > { %v6521_v51 = vpop.eup %6520 }
0x133d   : > { %v3282_v61 = vsel %vm1224_vm6, %v6521_v51, 0.0 }
0x133e   : > { %v6523_v21 = vpop.eup %6522  ;;  %3283 = vadd.xlane.f32.xlu1 %v3282_v61 }
0x133f   : > { %v3285_v7 = vsel %vm1224_vm6, %v6523_v21, 0.0 }
0x1340   : > { %v6525_v52 = vpop.eup %6524  ;;  %3286 = vadd.xlane.f32.xlu0 %v3285_v7 }
0x1341   : > { %v3288_v62 = vsel %vm1224_vm6, %v6525_v52, 0.0 }
0x1342   : > { %3289 = vadd.xlane.f32.xlu1 %v3288_v62 }
0x1353   : > { %3368 = vrot.lane.b32.xlu1 %v7835_v10, %s8547_s27 }
0x1356   : > { %3366 = vrot.lane.b32.xlu0 %v7826_v53, %s8547_s27 }
0x1357   : > { %3360 = vrot.lane.b32.xlu1 %v7824_v55, %s8547_s27 }
0x135b   : > { %3362 = vrot.lane.b32.xlu1 %v7844_v26, %s8547_s27 }
0x13cb   : > { %v3284_v22 = vpop.xlane.xlu1 %3283 }
0x13cc   : > { %6526 = vrcp.f32 %v3284_v22 }
0x13cd   : > { %v3287_v5 = vpop.xlane.xlu0 %3286 }
0x13ce   : > { %6528 = vrcp.f32 %v3287_v5 }
0x13cf   : > { %v3290_v3 = vpop.xlane.xlu1 %3289 }
0x13d0   : > { %6530 = vrcp.f32 %v3290_v3 }
0x13d1   : > { %v3367_v56 = vpop.permute.xlu0 %3366 }
0x13d2   : > { %6066 = vmatprep.subr.msk.bf16.mxu1 %vm1157_vm3, %v3367_v56  ;;  %v3377_v6 = vsel %vm1157_vm3, %v3367_v56, 0 }
0x13d3   : > { %v3369_v24 = vpop.permute.xlu1 %3368 }
0x13d4   : > { %v3380_v17 = vsel %vm1157_vm3, %v3369_v24, 0 }
0x13d6   : > { %v6527_v9 = vpop.eup %6526 }
0x13d7   : > { %v3294_v12 = vmul.f32 %v6527_v9, %v6521_v51  ;;  %v3361_v35 = vpop.permute.xlu1 %3360 }
0x13d8   : > { %v6529_v8 = vpop.eup %6528 }
0x13d9   : > { %v3295_v23 = vmul.f32 %v6529_v8, %v6523_v21 }
0x13da   : > { %v6531_v1 = vpop.eup %6530 }
0x13db   : > { %v3296_v34 = vmul.f32 %v6531_v1, %v6525_v52  ;;  %v3297_v2 = vpack.c.bf16 %v3295_v23, %v3294_v12  ;;  %v3363_v18 = vpop.permute.xlu1 %3362 }
0x13dd   : > { %5959 = vmatprep.mubr.msk.bf16.mxu1 %vm1224_vm6, %v3297_v2  ;;  %v3298_v28 = vpack.c.bf16 %v3296_v34, %v3296_v34 }
0x13df   : > { %5960 = vmatmul.mubr.msk.bf16.vlgmr.msra.gmra.mrb[52].mxu1 %vm1224_vm6, %v3298_v28 }
0x13e0   : > { %5964 = vmatpush3.bf16.xpose.msra.mxu1 %v3377_v6  ;;  %5967 = vmatprep.mubr.msk.bf16.mxu1 %vm1157_vm3, %v3361_v35 }
0x13e1   : > { %6067 = vmatprep.subr.msk.bf16.mxu1 %vm1157_vm3, %v3369_v24 }
0x13e8   : > { %5966 = vmatpush3.bf16.xpose.msra.mxu1 %v3380_v17 }
0x13ef   : > { %5968 = vmatmul.mubr.msk.bf16.vlgmr.msra.gmra.mrb[56].mxu1 %vm1157_vm3, %v3363_v18 }
0x14b2   : > { %v7880_v19 = vpop.f32.mrb[52].mxu1 }
0x14b3   : > { %v7882_v31 = vpop.f32.mrb[53].mxu1 }
0x14b4   : > { %v5962_v59 = vpop.f32.mrb[54].mxu1 }
0x14b5   : > { %v7884_v37 = vpop.f32.mrb[55].mxu1 }
0x14c2   : > { %v5969_v50 = vpop.f32.mrb[56].mxu1 }
0x14c3   : > { %v3416_v38 = vpop.f32.mrb[57].mxu1  ;;  %v3432_v4 = vmul.f32 0.17677669, %v5969_v50 }
0x14c4   : > { %v3430_v39 = vmul.f32 0.17677669, %v3416_v38  ;;  %v5970_v40 = vpop.f32.mrb[58].mxu1 }
0x14c5   : > { %v3419_v41 = vpop.f32.mrb[59].mxu1  ;;  %v3435_v54 = vadd.f32 %v3432_v4, %v7209_v14 }
0x14c6   : > { %v3431_v42 = vmul.f32 0.17677669, %v3419_v41  ;;  %v3433_v43 = vadd.f32 %v3430_v39, %v7209_v14 }
0x14c7   : > { %v3442_v46 = vsel %vm1224_vm6, %v3435_v54, -inf }
0x14c8   : > { %v3436_v44 = vsel %vm1224_vm6, %v3433_v43, -inf  ;;  %v3434_v45 = vadd.f32 %v3431_v42, %v7209_v14 }
0x14c9   : > { %3437 = vmax.xlane.f32.xlu0 %v3436_v44 }
0x14ca   : > { %v3439_v20 = vsel %vm1224_vm6, %v3434_v45, -inf }
0x14cb   : > { %3440 = vmax.xlane.f32.xlu1 %v3439_v20 }
0x14cd   : > { %3443 = vmax.xlane.f32.xlu0 %v3442_v46 }
0x1556   : > { %v3438_v11 = vpop.xlane.xlu0 %3437 }
0x1557   : > { %v3445_v15 = vsub.f32 %v3433_v43, %v3438_v11 }
0x1558   : > { %v3441_v47 = vpop.xlane.xlu1 %3440 }
0x1559   : > { %v3448_v48 = vmul.f32 1.442695, %v3445_v15  ;;  %v3446_v25 = vsub.f32 %v3434_v45, %v3441_v47 }
0x155a   : > { %v3444_v49 = vpop.xlane.xlu0 %3443 }
0x155b   : > { %6532 = vpow2.f32 %v3448_v48  ;;  %v3450_v13 = vmul.f32 1.442695, %v3446_v25  ;;  %v3447_v51 = vsub.f32 %v3435_v54, %v3444_v49 }
0x155d   : > { %6534 = vpow2.f32 %v3450_v13  ;;  %v3452_v61 = vmul.f32 1.442695, %v3447_v51 }
0x155f   : > { %6536 = vpow2.f32 %v3452_v61 }
0x1565   : > { %v6533_v21 = vpop.eup %6532 }
0x1566   : > { %v3454_v7 = vsel %vm1224_vm6, %v6533_v21, 0.0 }
0x1567   : > { %v6535_v52 = vpop.eup %6534  ;;  %3455 = vadd.xlane.f32.xlu0 %v3454_v7 }
0x1568   : > { %v3457_v5 = vsel %vm1224_vm6, %v6535_v52, 0.0 }
0x1569   : > { %v6537_v62 = vpop.eup %6536 }
0x156a   : > { %v3460_v22 = vsel %vm1224_vm6, %v6537_v62, 0.0 }
0x156b   : > { %3461 = vadd.xlane.f32.xlu1 %v3460_v22  ;;  %3458 = vadd.xlane.f32.xlu0 %v3457_v5 }
0x157c   : > { %3475 = vrot.lane.b32.xlu1 %v7846_v27, %s8547_s27 }
0x1580   : > { %3539 = vrot.lane.b32.xlu1 %v7826_v53, %s8548_s29 }
0x1581   : > { %3473 = vrot.lane.b32.xlu0 %v7837_v16, %s8547_s27 }
0x1584   : > { %3541 = vrot.lane.b32.xlu1 %v7835_v10, %s8548_s29 }
0x1585   : > { %3535 = vrot.lane.b32.xlu0 %v7824_v55, %s8548_s29 }
0x1588   : > { %3537 = vrot.lane.b32.xlu1 %v7844_v26, %s8548_s29 }
0x15f4   : > { %v3456_v3 = vpop.xlane.xlu0 %3455 }
0x15f5   : > { %6538 = vrcp.f32 %v3456_v3 }
0x15f8   : > { %v3459_v56 = vpop.xlane.xlu0 %3458  ;;  %v3462_v9 = vpop.xlane.xlu1 %3461 }
0x15f9   : > { %6540 = vrcp.f32 %v3459_v56 }
0x15fa   : > { %6542 = vrcp.f32 %v3462_v9 }
0x15fc   : > { %v3474_v8 = vpop.permute.xlu0 %3473  ;;  %v3476_v24 = vpop.permute.xlu1 %3475 }
0x15fd   : > { %5971 = vmatprep.subr.bf16.mxu0 %v3474_v8  ;;  %v3485_v23 = vsel %vm1268_vm4, %v3476_v24, 0 }
0x15fe   : > { %5972 = vmatpush3.bf16.msra.mxu0 %v3474_v8 }
0x15ff   : > { %6068 = vmatprep.subr.msk.bf16.mxu0 %vm1268_vm4, %v3476_v24  ;;  %v6539_v12 = vpop.eup %6538 }
0x1600   : > { %v3540_v1 = vpop.permute.xlu1 %3539  ;;  %v3466_v28 = vmul.f32 %v6539_v12, %v6533_v21  ;;  %v3536_v59 = vpop.permute.xlu0 %3535 }
0x1601   : > { %v3550_v50 = vsel %vm1157_vm3, %v3540_v1, 0 }
0x1602   : > { %5974 = vmatpush3.bf16.msra.mxu0 %v3485_v23 }
0x1603   : > { %v6541_v34 = vpop.eup %6540  ;;  %6069 = vmatprep.subr.msk.bf16.mxu0 %vm1157_vm3, %v3540_v1 }
0x1604   : > { %v6543_v2 = vpop.eup %6542  ;;  %v3467_v6 = vmul.f32 %v6541_v34, %v6535_v52  ;;  %v3542_v38 = vpop.permute.xlu1 %3541 }
0x1605   : > { %v3468_v35 = vmul.f32 %v6543_v2, %v6537_v62  ;;  %v3553_v4 = vsel %vm1157_vm3, %v3542_v38, 0 }
0x1606   : > { %v3469_v17 = vpack.c.bf16 %v3467_v6, %v3466_v28 }
0x1607   : > { %v3470_v18 = vpack.c.bf16 %v3468_v35, %v3468_v35 }
0x1608   : > { %5975 = vmatprep.mubr.msk.bf16.mxu0 %vm1224_vm6, %v3469_v17  ;;  %v3538_v39 = vpop.permute.xlu1 %3537 }
0x1609   : > { %5976 = vmatmul.mubr.msk.bf16.vlgmr.msra.gmra.mrb[48].mxu0 %vm1224_vm6, %v3470_v18 }
0x160a   : > { %5983 = vmatprep.mubr.msk.bf16.mxu0 %vm1157_vm3, %v3536_v59 }
0x160b   : > { %5980 = vmatpush3.bf16.xpose.msra.mxu0 %v3550_v50 }
0x160c   : > { %6070 = vmatprep.subr.msk.bf16.mxu0 %vm1157_vm3, %v3542_v38 }
0x1613   : > { %5982 = vmatpush3.bf16.xpose.msra.mxu0 %v3553_v4 }
0x161a   : > { %5984 = vmatmul.mubr.msk.bf16.vlgmr.msra.gmra.mrb[52].mxu0 %vm1157_vm3, %v3538_v39 }
0x16dc   : > { %v7917_v40 = vpop.f32.mrb[48].mxu0 }
0x16dd   : > { %v7919_v41 = vpop.f32.mrb[49].mxu0 }
0x16de   : > { %v5978_v42 = vpop.f32.mrb[50].mxu0 }
0x16df   : > { %v7921_v43 = vpop.f32.mrb[51].mxu0 }
0x16e0   : > { %v6164_v44 = vpack.i.bf16 %v7921_v43, %v7919_v41 }
0x16ed   : > { %v5985_v45 = vpop.f32.mrb[52].mxu0 }
0x16ee   : > { %v3589_v54 = vpop.f32.mrb[53].mxu0  ;;  %v3605_v20 = vmul.f32 0.17677669, %v5985_v45 }
0x16ef   : > { %v3603_v46 = vmul.f32 0.17677669, %v3589_v54  ;;  %v5986_v11 = vpop.f32.mrb[54].mxu0 }
0x16f0   : > { %v3592_v15 = vpop.f32.mrb[55].mxu0  ;;  %v3608_v13 = vadd.f32 %v3605_v20, %v7209_v14 }
0x16f1   : > { %v3604_v47 = vmul.f32 0.17677669, %v3592_v15  ;;  %v3606_v48 = vadd.f32 %v3603_v46, %v7209_v14 }
0x16f2   : > { %v3615_v61 = vsel %vm1224_vm6, %v3608_v13, -inf }
0x16f3   : > { %v3609_v25 = vsel %vm1224_vm6, %v3606_v48, -inf  ;;  %v3607_v49 = vadd.f32 %v3604_v47, %v7209_v14 }
0x16f4   : > { %3610 = vmax.xlane.f32.xlu0 %v3609_v25 }
0x16f5   : > { %v3612_v51 = vsel %vm1224_vm6, %v3607_v49, -inf }
0x16f6   : > { %3613 = vmax.xlane.f32.xlu1 %v3612_v51 }
0x16f8   : > { %3616 = vmax.xlane.f32.xlu0 %v3615_v61 }
0x1781   : > { %v3611_v21 = vpop.xlane.xlu0 %3610 }
0x1782   : > { %v3618_v7 = vsub.f32 %v3606_v48, %v3611_v21 }
0x1783   : > { %v3614_v52 = vpop.xlane.xlu1 %3613 }
0x1784   : > { %v3621_v62 = vmul.f32 1.442695, %v3618_v7  ;;  %v3619_v22 = vsub.f32 %v3607_v49, %v3614_v52 }
0x1785   : > { %v3617_v5 = vpop.xlane.xlu0 %3616 }
0x1786   : > { %6544 = vpow2.f32 %v3621_v62  ;;  %v3623_v3 = vmul.f32 1.442695, %v3619_v22  ;;  %v3620_v56 = vsub.f32 %v3608_v13, %v3617_v5 }
0x1788   : > { %6546 = vpow2.f32 %v3623_v3  ;;  %v3625_v9 = vmul.f32 1.442695, %v3620_v56 }
0x178a   : > { %6548 = vpow2.f32 %v3625_v9 }
0x1790   : > { %v6545_v8 = vpop.eup %6544 }
0x1791   : > { %v3627_v24 = vsel %vm1224_vm6, %v6545_v8, 0.0 }
0x1792   : > { %v6547_v12 = vpop.eup %6546  ;;  %3628 = vadd.xlane.f32.xlu0 %v3627_v24 }
0x1793   : > { %v3630_v34 = vsel %vm1224_vm6, %v6547_v12, 0.0 }
0x1794   : > { %v6549_v23 = vpop.eup %6548 }
0x1795   : > { %v3633_v1 = vsel %vm1224_vm6, %v6549_v23, 0.0 }
0x1796   : > { %3634 = vadd.xlane.f32.xlu1 %v3633_v1  ;;  %3631 = vadd.xlane.f32.xlu0 %v3630_v34 }
0x17a7   : > { %3646 = vrot.lane.b32.xlu1 %v7846_v27, %s8548_s29 }
0x17ab   : > { %3710 = vrot.lane.b32.xlu1 %v7826_v53, %s8549_s30 }
0x17ac   : > { %3644 = vrot.lane.b32.xlu0 %v7837_v16, %s8548_s29 }
0x17af   : > { %3712 = vrot.lane.b32.xlu1 %v7835_v10, %s8549_s30 }
0x17b0   : > { %3706 = vrot.lane.b32.xlu0 %v7824_v55, %s8549_s30 }
0x17b3   : > { %3708 = vrot.lane.b32.xlu1 %v7844_v26, %s8549_s30 }
0x181f   : > { %v3629_v2 = vpop.xlane.xlu0 %3628 }
0x1820   : > { %6550 = vrcp.f32 %v3629_v2 }
0x1823   : > { %v3632_v28 = vpop.xlane.xlu0 %3631  ;;  %v3635_v6 = vpop.xlane.xlu1 %3634 }
0x1824   : > { %6552 = vrcp.f32 %v3632_v28 }
0x1825   : > { %6554 = vrcp.f32 %v3635_v6 }
0x1827   : > { %v3645_v35 = vpop.permute.xlu0 %3644  ;;  %v3647_v53 = vpop.permute.xlu1 %3646 }
0x1828   : > { %5987 = vmatprep.subr.bf16.mxu1 %v3645_v35  ;;  %v3656_v10 = vsel %vm1268_vm4, %v3647_v53, 0 }
0x1829   : > { %5988 = vmatpush3.bf16.msra.mxu1 %v3645_v35 }
0x182a   : > { %6071 = vmatprep.subr.msk.bf16.mxu1 %vm1268_vm4, %v3647_v53  ;;  %v6551_v17 = vpop.eup %6550 }
0x182b   : > { %v3711_v18 = vpop.permute.xlu1 %3710  ;;  %v3639_v59 = vmul.f32 %v6551_v17, %v6545_v8  ;;  %v3707_v42 = vpop.permute.xlu0 %3706 }
0x182c   : > { %v3721_v45 = vsel %vm1157_vm3, %v3711_v18, 0 }
0x182d   : > { %5990 = vmatpush3.bf16.msra.mxu1 %v3656_v10 }
0x182e   : > { %v6553_v55 = vpop.eup %6552  ;;  %6072 = vmatprep.subr.msk.bf16.mxu1 %vm1157_vm3, %v3711_v18 }
0x182f   : > { %v6555_v26 = vpop.eup %6554  ;;  %v3640_v50 = vmul.f32 %v6553_v55, %v6547_v12  ;;  %v3713_v54 = vpop.permute.xlu1 %3712 }
0x1830   : > { %v3641_v38 = vmul.f32 %v6555_v26, %v6549_v23  ;;  %v3724_v20 = vsel %vm1157_vm3, %v3713_v54, 0 }
0x1831   : > { %v3642_v4 = vpack.c.bf16 %v3640_v50, %v3639_v59 }
0x1832   : > { %v3643_v39 = vpack.c.bf16 %v3641_v38, %v3641_v38 }
0x1833   : > { %5991 = vmatprep.mubr.msk.bf16.mxu1 %vm1224_vm6, %v3642_v4  ;;  %v3709_v46 = vpop.permute.xlu1 %3708 }
0x1834   : > { %5992 = vmatmul.mubr.msk.bf16.vlgmr.msra.gmra.mrb[60].mxu1 %vm1224_vm6, %v3643_v39 }
0x1835   : > { %5999 = vmatprep.mubr.msk.bf16.mxu1 %vm1157_vm3, %v3707_v42 }
0x1836   : > { %5996 = vmatpush3.bf16.xpose.msra.mxu1 %v3721_v45  ;;  %v6334_v45 = vld [vmem:[%s8472_s9 + $0x40] sm:$0xff]  }
0x1837   : > { %6073 = vmatprep.subr.msk.bf16.mxu1 %vm1157_vm3, %v3713_v54  ;;  %v6335_v54 = vld [vmem:[%s8472_s9 + $0x48] sm:$0xff]  }
0x183e   : > { %5998 = vmatpush3.bf16.xpose.msra.mxu1 %v3724_v20  ;;  %v6336_v20 = vld [vmem:[%s8472_s9 + $0x50] sm:$0xff]  }
0x1845   : > { %6000 = vmatmul.mubr.msk.bf16.vlgmr.msra.gmra.mrb[64].mxu1 %vm1157_vm3, %v3709_v46  ;;  %v6337_v46 = vld [vmem:[%s8472_s9 + $0x58] sm:$0xff]  }
0x1846   : > { %4353 = vmatprep.mubr.bf16.mxu1 %v6766_v58 }
0x1907   : > { %v5993_v11 = vpop.f32.mrb[60].mxu1 }
0x1908   : > { %v3692_v15 = vpop.f32.mrb[61].mxu1 }
0x1909   : > { %v5994_v47 = vpop.f32.mrb[62].mxu1 }
0x190a   : > { %v3695_v48 = vpop.f32.mrb[63].mxu1  ;;  %v6340_v47 = vld [vmem:[%s8472_s9 + $0x70] sm:$0xff]  }
0x190b   : > { %v6169_v25 = vpack.i.bf16 %v3695_v48, %v3692_v15  ;;  %v6339_v15 = vld [vmem:[%s8472_s9 + $0x68] sm:$0xff]   ;;  %v6341_v48 = vld [vmem:[%s8472_s9 + $0x78] sm:$0xff]  }
0x1918   : > { %v6001_v49 = vpop.f32.mrb[64].mxu1 }
0x1919   : > { %v3760_v13 = vpop.f32.mrb[65].mxu1  ;;  %v3776_v51 = vmul.f32 0.17677669, %v6001_v49 }
0x191a   : > { %v3774_v61 = vmul.f32 0.17677669, %v3760_v13  ;;  %v6002_v21 = vpop.f32.mrb[66].mxu1 }
0x191b   : > { %v3763_v7 = vpop.f32.mrb[67].mxu1  ;;  %v3779_v22 = vadd.f32 %v3776_v51, %v7209_v14 }
0x191c   : > { %v3777_v52 = vadd.f32 %v3774_v61, %v7209_v14  ;;  %v3775_v62 = vmul.f32 0.17677669, %v3763_v7 }
0x191d   : > { %v3786_v9 = vsel %vm1224_vm6, %v3779_v22, -inf }
0x191e   : > { %v3778_v5 = vadd.f32 %v3775_v62, %v7209_v14  ;;  %v3780_v3 = vsel %vm1224_vm6, %v3777_v52, -inf }
0x191f   : > { %3781 = vmax.xlane.f32.xlu0 %v3780_v3 }
0x1920   : > { %v3783_v56 = vsel %vm1224_vm6, %v3778_v5, -inf }
0x1921   : > { %3784 = vmax.xlane.f32.xlu1 %v3783_v56 }
0x1923   : > { %3787 = vmax.xlane.f32.xlu0 %v3786_v9 }
0x19ac   : > { %v3782_v8 = vpop.xlane.xlu0 %3781 }
0x19ad   : > { %v3789_v24 = vsub.f32 %v3777_v52, %v3782_v8 }
0x19ae   : > { %v3785_v12 = vpop.xlane.xlu1 %3784 }
0x19af   : > { %v3792_v23 = vmul.f32 1.442695, %v3789_v24  ;;  %v3790_v1 = vsub.f32 %v3778_v5, %v3785_v12 }
0x19b0   : > { %v3788_v34 = vpop.xlane.xlu0 %3787 }
0x19b1   : > { %6556 = vpow2.f32 %v3792_v23  ;;  %v3794_v2 = vmul.f32 1.442695, %v3790_v1  ;;  %v3791_v28 = vsub.f32 %v3779_v22, %v3788_v34 }
0x19b3   : > { %6558 = vpow2.f32 %v3794_v2  ;;  %v3796_v14 = vmul.f32 1.442695, %v3791_v28 }
0x19b5   : > { %6560 = vpow2.f32 %v3796_v14 }
0x19bb   : > { %v6557_v6 = vpop.eup %6556 }
0x19bc   : > { %v3798_v35 = vsel %vm1224_vm6, %v6557_v6, 0.0 }
0x19bd   : > { %v6559_v53 = vpop.eup %6558  ;;  %3799 = vadd.xlane.f32.xlu0 %v3798_v35 }
0x19be   : > { %v3801_v18 = vsel %vm1224_vm6, %v6559_v53, 0.0 }
0x19bf   : > { %v6561_v17 = vpop.eup %6560 }
0x19c0   : > { %v3804_v10 = vsel %vm1224_vm6, %v6561_v17, 0.0 }
0x19c1   : > { %3805 = vadd.xlane.f32.xlu1 %v3804_v10  ;;  %3802 = vadd.xlane.f32.xlu0 %v3801_v18 }
0x19d2   : > { %3817 = vrot.lane.b32.xlu1 %v7846_v27, %s8549_s30 }
0x19d6   : > { %6165 = vrot.lane.b32.xlu1 %v6164_v44, %s8549_s30 }
0x19d7   : > { %3815 = vrot.lane.b32.xlu0 %v7837_v16, %s8549_s30 }
0x19da   : > { %3884 = vrot.lane.b32.xlu1 %v7917_v40, %s8549_s30  ;;  %s8509_s30 = sshll.u32 %s6909_s4, 4 }
0x19db   : > { %6170 = vrot.lane.b32.xlu0 %v6169_v25, %s8548_s29  ;;  %s8391_s2 = scalar_lea.hbm %s8484_s21, %s8509_s30 }
0x19de   : > { %3896 = vrot.lane.b32.xlu1 %v5993_v11, %s8548_s29  ;;  %v6338_v11 = vld [vmem:[%s8472_s9 + $0x60] sm:$0xff]  }
0x1a4a   : > { %v3800_v55 = vpop.xlane.xlu0 %3799 }
0x1a4b   : > { %6562 = vrcp.f32 %v3800_v55 }
0x1a4e   : > { %v3803_v26 = vpop.xlane.xlu0 %3802  ;;  %v3806_v59 = vpop.xlane.xlu1 %3805 }
0x1a4f   : > { %6564 = vrcp.f32 %v3803_v26 }
0x1a50   : > { %6566 = vrcp.f32 %v3806_v59 }
0x1a52   : > { %v3816_v27 = vpop.permute.xlu0 %3815  ;;  %v3818_v41 = vpop.permute.xlu1 %3817 }
0x1a53   : > { %6003 = vmatprep.subr.bf16.mxu0 %v3816_v27  ;;  %v3827_v43 = vsel %vm1268_vm4, %v3818_v41, 0 }
0x1a54   : > { %6004 = vmatpush3.bf16.msra.mxu0 %v3816_v27 }
0x1a55   : > { %6074 = vmatprep.subr.msk.bf16.mxu0 %vm1268_vm4, %v3818_v41  ;;  %v6563_v16 = vpop.eup %6562 }
0x1a56   : > { %v3810_v50 = vmul.f32 %v6563_v16, %v6557_v6  ;;  %v6166_v21 = vpop.permute.xlu1 %6165  ;;  %v6171_v52 = vpop.permute.xlu0 %6170 }
0x1a57   : > { %v6168_v62 = vunpack.i.h.bf16 %v6166_v21  ;;  %v6167_v22 = vunpack.i.l.bf16 %v6166_v21  ;;  %v6173_v3 = vunpack.i.h.bf16 %v6171_v52  ;;  %v6172_v56 = vunpack.i.l.bf16 %v6171_v52  ;;  %v6363_v21 = vld [vmem:[%s8476_s13 + $0x168] ss:$16 sps:$4 sm:$0xff]   ;;  %v6371_v52 = vld [vmem:[%s8476_s13 + $0x18c] ss:$16 sps:$4 sm:$0xff]  }
0x1a58   : > { %6006 = vmatpush3.bf16.msra.mxu0 %v3827_v43  ;;  %v6342_v43 = vld [vmem:[%s8476_s13 + $0x100] ss:$16 sps:$4 sm:$0xff]  }
0x1a59   : > { %v6565_v40 = vpop.eup %6564  ;;  %6011 = vmatprep.subr.bf16.mxu0 %v6334_v45  ;;  %v3914_v9 = vsel %vm1157_vm3, %v7884_v37, %v6168_v62  ;;  %v3913_v8 = vsel %vm1157_vm3, %v7882_v31, %v6167_v22  ;;  %v6366_v62 = vld [vmem:[%s8476_s13 + $0x180] ss:$16 sps:$4 sm:$0xff]   ;;  %v6369_v22 = vld [vmem:[%s8476_s13 + $0x188] ss:$16 sps:$4 sm:$0xff]  }
0x1a5a   : > { %v6567_v44 = vpop.eup %6566  ;;  %v3811_v38 = vmul.f32 %v6565_v40, %v6559_v53  ;;  %v3885_v7 = vpop.permute.xlu1 %3884  ;;  %v3916_v14 = vsel %vm1878_vm7, %v3913_v8, %v6172_v56  ;;  %v3917_v6 = vsel %vm1878_vm7, %v3914_v9, %v6173_v3  ;;  %v6344_v40 = vld [vmem:[%s8476_s13 + $0x104] ss:$16 sps:$4 sm:$0xff]   ;;  %v6377_v3 = vld [vmem:[%s8476_s13 + $0x1ac] ss:$16 sps:$4 sm:$0xff]   ;;  %v6372_v56 = vld [vmem:[%s8476_s13 + $0x1a0] ss:$16 sps:$4 sm:$0xff]  }
0x1a5b   : > { %v3812_v4 = vmul.f32 %v6567_v44, %v6561_v17  ;;  %v3915_v12 = vsel %vm1157_vm3, %v7880_v19, %v3885_v7  ;;  %v5394_v19 = vld [vmem:[%s8473_s10 + $0x1] ss:$0 sm:$0xff]  ;;  %v6345_v44 = vld [vmem:[%s8476_s13 + $0x108] ss:$16 sps:$4 sm:$0xff]   ;;  %4321 = vmatprep.subr.bf16.mxu1 %v6344_v40  ;;  %v6368_v7 = vld [vmem:[%s8476_s13 + $0x184] ss:$16 sps:$4 sm:$0xff]  }
0x1a5c   : > { %v3813_v39 = vpack.c.bf16 %v3811_v38, %v3810_v50  ;;  %v6353_v50 = vld [vmem:[%s8476_s13 + $0x12c] ss:$16 sps:$4 sm:$0xff]   ;;  %4322 = vmatpush1.bf16.msra.mxu1 %v6342_v43  ;;  %v6348_v38 = vld [vmem:[%s8476_s13 + $0x120] ss:$16 sps:$4 sm:$0xff]   ;;  %v6375_v9 = vld [vmem:[%s8476_s13 + $0x1a8] ss:$16 sps:$4 sm:$0xff]  }
0x1a5d   : > { %v3814_v42 = vpack.c.bf16 %v3812_v4, %v3812_v4  ;;  %v6351_v4 = vld [vmem:[%s8476_s13 + $0x128] ss:$16 sps:$4 sm:$0xff]   ;;  %v6378_v8 = vld [vmem:[%s8476_s13 + $0x1c0] ss:$16 sps:$4 sm:$0xff]  }
0x1a5e   : > { %6007 = vmatprep.mubr.msk.bf16.mxu0 %vm1224_vm6, %v3813_v39  ;;  %v3897_v5 = vpop.permute.xlu1 %3896  ;;  %v8150_v40 = vld [vmem:[%s8475_s12 + $0x1] ss:$0 sm:$0xff] }
0x1a5f   : > { %6008 = vmatmul.mubr.msk.bf16.vlgmr.msra.gmra.mrb[56].mxu0 %vm1224_vm6, %v3814_v42  ;;  %v3918_v1 = vsel %vm1878_vm7, %v3915_v12, %v3897_v5  ;;  %v6374_v5 = vld [vmem:[%s8476_s13 + $0x1a4] ss:$16 sps:$4 sm:$0xff]   ;;  %v6381_v12 = vld [vmem:[%s8476_s13 + $0x1c8] ss:$16 sps:$4 sm:$0xff]  }
0x1a60   : > { %6012 = vmatpush3.bf16.msra.mxu0 %v6334_v45 }
0x1a61   : > { %6013 = vmatprep.subr.bf16.mxu0 %v6335_v54 }
0x1a64   : > { %6014 = vmatpush3.bf16.msra.mxu0 %v6335_v54 }
0x1a65   : > { %6015 = vmatprep.subr.bf16.mxu0 %v6336_v20 }
0x1a68   : > { %6016 = vmatpush3.bf16.msra.mxu0 %v6336_v20 }
0x1a69   : > { %6017 = vmatprep.subr.bf16.mxu0 %v6337_v46 }
0x1a6c   : > { %6018 = vmatpush3.bf16.msra.mxu0 %v6337_v46 }
0x1a6d   : > { %6019 = vmatprep.subr.bf16.mxu0 %v6338_v11 }
0x1a70   : > { %6020 = vmatpush3.bf16.msra.mxu0 %v6338_v11 }
0x1a71   : > { %6021 = vmatprep.subr.bf16.mxu0 %v6339_v15 }
0x1a74   : > { %6022 = vmatpush3.bf16.msra.mxu0 %v6339_v15 }
0x1a75   : > { %6023 = vmatprep.subr.bf16.mxu0 %v6340_v47 }
0x1a78   : > { %6024 = vmatpush3.bf16.msra.mxu0 %v6340_v47 }
0x1a79   : > { %6025 = vmatprep.subr.bf16.mxu0 %v6341_v48 }
0x1a7c   : > { %6026 = vmatpush3.bf16.msra.mxu0 %v6341_v48  ;;  %v6356_v48 = vld [vmem:[%s8476_s13 + $0x144] ss:$16 sps:$4 sm:$0xff]  }
0x1b32   : > { %v6009_v25 = vpop.f32.mrb[56].mxu0 }
0x1b33   : > { %3908 = vrot.lane.b32.xlu1 %v6009_v25, %s8547_s27  ;;  %v3863_v49 = vpop.f32.mrb[57].mxu0  ;;  %v6359_v25 = vld [vmem:[%s8476_s13 + $0x14c] ss:$16 sps:$4 sm:$0xff]  }
0x1b34   : > { %v6010_v13 = vpop.f32.mrb[58].mxu0 }
0x1b35   : > { %v3866_v51 = vpop.f32.mrb[59].mxu0  ;;  %v6357_v13 = vld [vmem:[%s8476_s13 + $0x148] ss:$16 sps:$4 sm:$0xff]  }
0x1b36   : > { %v6174_v61 = vpack.i.bf16 %v3866_v51, %v3863_v49  ;;  %v6354_v49 = vld [vmem:[%s8476_s13 + $0x140] ss:$16 sps:$4 sm:$0xff]   ;;  %v6365_v51 = vld [vmem:[%s8476_s13 + $0x16c] ss:$16 sps:$4 sm:$0xff]  }
0x1b38   : > { %6175 = vrot.lane.b32.xlu0 %v6174_v61, %s8547_s27  ;;  %v6360_v61 = vld [vmem:[%s8476_s13 + $0x160] ss:$16 sps:$4 sm:$0xff]   ;;  %s8379_s27 = sand.u32 1, %s6750_s28  }
0x1b39   : > { %s707_s29 = scalar_lea.vmem [#allocation7], %s8379_s27  ;;  %s5033_s1 = scalar_lea.sflag [#allocation4], %s8379_s27 }
0x1b3a   : > { %s5049_s24 = sshll.u32 %s707_s29, 4  ;;  %s5050_s24 = int_to_ptr.vmem [resolvable:$true] %s5049_s24 }
0x1b3b   : > { %s6656_s5 = scalar_lea.vmem %s5050_s24, 16  ;;  %p6663_p4 = scmp.lt.s32.totalorder %s5050_s24, %s6661_s3 }
0x1b3c   : > { %p6657_p12 = scmp.ne.s32.totalorder %s5050_s24, %s6656_s5  ;;  %p6664_p7 = scmp.lt.s32.totalorder %s6662_s0, %s6656_s5 }
0x1b3e   : > { %p6658_p2 = pnand %p6657_p12, %p8550_p1  ;;  %p6665_p8 = por %p6664_p7, %p6663_p4 }
0x1b40   : > { %p6659_p3 = pneg %p6658_p2 }
0x1b42   : > { %p6666_p11 = pnand %p6665_p8, %p6659_p3 }
0x1ba5   : > { %v3909_v24 = vpop.permute.xlu1 %3908 }
0x1ba6   : > { %v3921_v28 = vsel %vm1882_vm8, %v3918_v1, %v3909_v24  ;;  %v6380_v24 = vld [vmem:[%s8476_s13 + $0x1c4] ss:$16 sps:$4 sm:$0xff]  }
0x1ba7   : > { %v3942_v53 = vpack.c.bf16 %v3921_v28, %v3921_v28  ;;  %v6386_v1 = vld [vmem:[%s8476_s13 + $0x1e4] ss:$16 sps:$4 sm:$0xff]   ;;  %v6387_v28 = vld [vmem:[%s8476_s13 + $0x1e8] ss:$16 sps:$4 sm:$0xff]  }
0x1baa   : > { %v6176_v23 = vpop.permute.xlu0 %6175 }
0x1bab   : > { %v6178_v34 = vunpack.i.h.bf16 %v6176_v23  ;;  %v6177_v2 = vunpack.i.l.bf16 %v6176_v23  ;;  %v6383_v23 = vld [vmem:[%s8476_s13 + $0x1cc] ss:$16 sps:$4 sm:$0xff]  }
0x1bad   : > { %v3919_v37 = vsel %vm1882_vm8, %v3916_v14, %v6177_v2  ;;  %v3920_v35 = vsel %vm1882_vm8, %v3917_v6, %v6178_v34  ;;  %v6389_v34 = vld [vmem:[%s8476_s13 + $0x1ec] ss:$16 sps:$4 sm:$0xff]   ;;  %v6384_v2 = vld [vmem:[%s8476_s13 + $0x1e0] ss:$16 sps:$4 sm:$0xff]  }
0x1bae   : > { %v3941_v31 = vpack.c.bf16 %v3920_v35, %v3919_v37 }
0x1bb0   : > { %6027 = vmatprep.mubr.bf16.mxu0 %v3941_v31 }
0x1bb1   : > { %6028 = vmatmul.mubr.bf16.vlgmr.msra.gmra.mrb[60].mxu0 %v3942_v53 }
0x1bb2   : > { %4404 = vmatprep.mubr.bf16.mxu0 %v6766_v58 }
0x1c84   : > { %v6029_v17 = vpop.f32.mrb[60].mxu0 }
0x1c85   : > { %v4040_v10 = vadd.f32 %v6029_v17, %v5394_v19  ;;  %v4031_v18 = vpop.f32.mrb[61].mxu0 }
0x1c86   : > { %v4032_v55 = vadd.f32 %v5394_v19, %v4031_v18  ;;  %v6030_v26 = vpop.f32.mrb[62].mxu0 }
0x1c87   : > { %v4034_v59 = vpop.f32.mrb[63].mxu0  ;;  %v4047_v47 = vadd.f32 %v4040_v10, %v7719_v57  ;;  %v6362_v57 = vld [vmem:[%s8476_s13 + $0x164] ss:$16 sps:$4 sm:$0xff]  }
0x1c88   : > { %v8025_v27 = vadd.f32 %v4032_v55, %v7711_v36  ;;  %v4035_v41 = vadd.f32 %v5394_v19, %v4034_v59  ;;  %v6347_v36 = vld [vmem:[%s8476_s13 + $0x10c] ss:$16 sps:$4 sm:$0xff]   ;;  %v8143_v59 = vld [vmem:[%s8474_s11 + $0x1] ss:$0 sm:$0xff] }
0x1c89   : > { %4372 = vmatprep.subr.bf16.mxu0 %v6347_v36 }
0x1c8a   : > { %v4046_v16 = vadd.f32 %v4035_v41, %v7715_v60  ;;  %4052 = vadd.xlane.f32.xlu0 %v8025_v27  ;;  %v6350_v60 = vld [vmem:[%s8476_s13 + $0x124] ss:$16 sps:$4 sm:$0xff]   ;;  %4373 = vmatpush1.bf16.msra.mxu0 %v6345_v44 }
0x1c8b   : > { %4323 = vmatprep.subr.bf16.mxu1 %v6350_v60  ;;  %4374 = vmatprep.subr.bf16.mxu0 %v6353_v50 }
0x1c8c   : > { %4054 = vadd.xlane.f32.xlu1 %v4046_v16  ;;  %4324 = vmatpush1.bf16.msra.mxu1 %v6348_v38  ;;  %v6390_v38 = vld [vmem:[%s8478_s15 + $0x140] sm:$0xff]  }
0x1c8d   : > { %4325 = vmatprep.subr.bf16.mxu1 %v6356_v48  ;;  %v6402_v48 = vld [vmem:[%s8478_s15 + $0x158] sm:$0xff]  }
0x1c8e   : > { %4375 = vmatpush1.bf16.msra.mxu0 %v6351_v4  ;;  %v6391_v4 = vld [vmem:[%s8478_s15 + $0x1c0] sm:$0xff]  }
0x1c8f   : > { %4376 = vmatprep.subr.bf16.mxu0 %v6359_v25  ;;  %v6403_v25 = vld [vmem:[%s8478_s15 + $0x1d8] sm:$0xff]  }
0x1c90   : > { %4326 = vmatpush1.bf16.msra.mxu1 %v6354_v49  ;;  %v6404_v49 = vld [vmem:[%s8478_s15 + $0x118] sm:$0xff]  }
0x1c91   : > { %4327 = vmatprep.subr.bf16.mxu1 %v6362_v57  ;;  %v6406_v57 = vld [vmem:[%s8478_s15 + $0x160] sm:$0xff]  }
0x1c92   : > { %4377 = vmatpush1.bf16.msra.mxu0 %v6357_v13  ;;  %v6405_v13 = vld [vmem:[%s8478_s15 + $0x198] sm:$0xff]  }
0x1c93   : > { %4378 = vmatprep.subr.bf16.mxu0 %v6365_v51  ;;  %v6407_v51 = vld [vmem:[%s8478_s15 + $0x1e0] sm:$0xff]  }
0x1c94   : > { %4328 = vmatpush1.bf16.msra.mxu1 %v6360_v61  ;;  %v6408_v61 = vld [vmem:[%s8478_s15 + $0x120] sm:$0xff]  }
0x1c95   : > { %4329 = vmatprep.subr.bf16.mxu1 %v6368_v7  ;;  %v6410_v7 = vld [vmem:[%s8478_s15 + $0x168] sm:$0xff]  }
0x1c96   : > { %4379 = vmatpush1.bf16.msra.mxu0 %v6363_v21  ;;  %v6409_v21 = vld [vmem:[%s8478_s15 + $0x1a0] sm:$0xff]  }
0x1c97   : > { %4380 = vmatprep.subr.bf16.mxu0 %v6371_v52  ;;  %v6411_v52 = vld [vmem:[%s8478_s15 + $0x1e8] sm:$0xff]  }
0x1c98   : > { %4330 = vmatpush1.bf16.msra.mxu1 %v6366_v62  ;;  %v6412_v62 = vld [vmem:[%s8478_s15 + $0x128] sm:$0xff]  }
0x1c99   : > { %4331 = vmatprep.subr.bf16.mxu1 %v6374_v5  ;;  %v6414_v5 = vld [vmem:[%s8478_s15 + $0x170] sm:$0xff]  }
0x1c9a   : > { %4381 = vmatpush1.bf16.msra.mxu0 %v6369_v22  ;;  %v6413_v22 = vld [vmem:[%s8478_s15 + $0x1a8] sm:$0xff]  }
0x1c9b   : > { %4382 = vmatprep.subr.bf16.mxu0 %v6377_v3  ;;  %v6415_v3 = vld [vmem:[%s8478_s15 + $0x1f0] sm:$0xff]  }
0x1c9c   : > { %4332 = vmatpush1.bf16.msra.mxu1 %v6372_v56  ;;  %v6416_v56 = vld [vmem:[%s8478_s15 + $0x130] sm:$0xff]  }
0x1c9d   : > { %4333 = vmatprep.subr.bf16.mxu1 %v6380_v24  ;;  %v6419_v24 = vld [vmem:[%s8478_s15 + $0x1f8] sm:$0xff]  }
0x1c9e   : > { %4383 = vmatpush1.bf16.msra.mxu0 %v6375_v9  ;;  %v6417_v9 = vld [vmem:[%s8478_s15 + $0x1b0] sm:$0xff]  }
0x1c9f   : > { %4384 = vmatprep.subr.bf16.mxu0 %v6383_v23  ;;  %v6421_v23 = vld [vmem:[%s8478_s15 + $0x1b8] sm:$0xff]  }
0x1ca0   : > { %4334 = vmatpush1.bf16.msra.mxu1 %v6378_v8  ;;  %v6418_v8 = vld [vmem:[%s8478_s15 + $0x178] sm:$0xff]  }
0x1ca1   : > { %4335 = vmatprep.subr.bf16.mxu1 %v6386_v1 }
0x1ca2   : > { %4385 = vmatpush1.bf16.msra.mxu0 %v6381_v12  ;;  %v6420_v12 = vld [vmem:[%s8478_s15 + $0x138] sm:$0xff]  }
0x1ca3   : > { %4386 = vmatprep.subr.bf16.mxu0 %v6389_v34 }
0x1ca4   : > { %4336 = vmatpush1.bf16.msra.mxu1 %v6384_v2 }
0x1ca5   : > { %5748 = vmatprep.subr.bf16.mxu1 %v6390_v38 }
0x1ca6   : > { %4387 = vmatpush1.bf16.msra.mxu0 %v6387_v28 }
0x1ca7   : > { %5776 = vmatprep.subr.bf16.mxu0 %v6391_v4 }
0x1d17   : > { %v4053_v39 = vpop.xlane.xlu0 %4052 }
0x1d18   : > { %v4058_v42 = vmul.f32 0.0078125, %v4053_v39  ;;  %v6392_v39 = vld [vmem:[%s8478_s15 + $0x100] sm:$0xff]  }
0x1d19   : > { %v4055_v45 = vpop.xlane.xlu1 %4054 }
0x1d1a   : > { %v8054_v54 = vsub.f32 %v8025_v27, %v4058_v42  ;;  %v4059_v20 = vmul.f32 0.0078125, %v4055_v45  ;;  %v6393_v42 = vld [vmem:[%s8478_s15 + $0x180] sm:$0xff]   ;;  %v6395_v45 = vld [vmem:[%s8478_s15 + $0x1c8] sm:$0xff]  }
0x1d1c   : > { %v8056_v46 = vsub.f32 %v4046_v16, %v4059_v20  ;;  %v4064_v11 = vmul.f32 %v8054_v54, %v8054_v54  ;;  %v6397_v20 = vld [vmem:[%s8478_s15 + $0x188] sm:$0xff]  }
0x1d1e   : > { %4067 = vadd.xlane.f32.xlu0 %v4064_v11  ;;  %v4065_v15 = vmul.f32 %v8056_v46, %v8056_v46  ;;  %v6399_v11 = vld [vmem:[%s8478_s15 + $0x1d0] sm:$0xff]  }
0x1d22   : > { %4069 = vadd.xlane.f32.xlu0 %v4065_v15  ;;  %v6400_v15 = vld [vmem:[%s8478_s15 + $0x110] sm:$0xff]  }
0x1d26   : > { %4056 = vadd.xlane.f32.xlu0 %v4047_v47 }
0x1dab   : > { %v4068_v14 = vpop.xlane.xlu0 %4067 }
0x1dac   : > { %v4073_v6 = vmul.f32 0.0078125, %v4068_v14 }
0x1dae   : > { %v4076_v37 = vadd.f32 1e-06, %v4073_v6 }
0x1daf   : > { %v4070_v35 = vpop.xlane.xlu0 %4069 }
0x1db0   : > { %6568 = vrsqrt.f32 %v4076_v37  ;;  %v4074_v31 = vmul.f32 0.0078125, %v4070_v35 }
0x1db2   : > { %v4077_v53 = vadd.f32 1e-06, %v4074_v31  ;;  %v5439_v31 = vld [vmem:[%s8477_s14 + $0x4] sm:$0xf] }
0x1db3   : > { %v4057_v19 = vpop.xlane.xlu0 %4056 }
0x1db4   : > { %6570 = vrsqrt.f32 %v4077_v53  ;;  %v4060_v17 = vmul.f32 0.0078125, %v4057_v19  ;;  %v8261_v53 = vrot.slane %v5439_v31, %v7150_v30  ;;  %v8264_v19 = vrot.slane %v5439_v31, %v7159_v33 }
0x1db6   : > { %v8135_v10 = vsub.f32 %v4047_v47, %v4060_v17  ;;  %v6401_v47 = vld [vmem:[%s8478_s15 + $0x190] sm:$0xff]   ;;  %v8267_v17 = vrot.slane %v5439_v31, %v7156_v32 }
0x1db8   : > { %v4066_v18 = vmul.f32 %v8135_v10, %v8135_v10 }
0x1dba   : > { %v6569_v55 = vpop.eup %6568  ;;  %4071 = vadd.xlane.f32.xlu1 %v4066_v18 }
0x1dbb   : > { %v4082_v26 = vmul.f32 %v6569_v55, %v8054_v54  ;;  %v6396_v54 = vld [vmem:[%s8478_s15 + $0x108] sm:$0xff]  }
0x1dbd   : > { %v4091_v43 = vmul.f32 %v8143_v59, %v4082_v26 }
0x1dbe   : > { %v6571_v41 = vpop.eup %6570 }
0x1dbf   : > { %v4083_v16 = vmul.f32 %v6571_v41, %v8056_v46  ;;  %v4100_v36 = vadd.f32 %v8150_v40, %v4091_v43  ;;  %v6398_v46 = vld [vmem:[%s8478_s15 + $0x150] sm:$0xff]  }
0x1dc1   : > { %v4092_v44 = vmul.f32 %v8143_v59, %v4083_v16 }
0x1dc3   : > { %v4101_v60 = vadd.f32 %v8150_v40, %v4092_v44 }
0x1dc5   : > { %v4138_v50 = vpack.c.bf16 %v4101_v60, %v4100_v36 }
0x1dc7   : > { %4354 = vmatmul.mubr.bf16.vlgmr.msra.gmra.mrb[68].mxu1 %v4138_v50  ;;  %4405 = vmatmul.mubr.bf16.vlgmr.msra.gmra.mrb[64].mxu0 %v4138_v50 }
0x1dc8   : > { %4363 = vmatprep.mubr.bf16.mxu1 %v6766_v58  ;;  %4414 = vmatprep.mubr.bf16.mxu0 %v6766_v58  ;;  %v6394_v58 = vld [vmem:[%s8478_s15 + $0x148] sm:$0xff]  }
0x1dc9   : > { %5749 = vmatpush3.bf16.msra.mxu1 %v6392_v39  ;;  %5777 = vmatpush3.bf16.msra.mxu0 %v6393_v42 }
0x1dca   : > { %5750 = vmatprep.subr.bf16.mxu1 %v6394_v58  ;;  %5778 = vmatprep.subr.bf16.mxu0 %v6395_v45 }
0x1dcd   : > { %5751 = vmatpush3.bf16.msra.mxu1 %v6396_v54  ;;  %5779 = vmatpush3.bf16.msra.mxu0 %v6397_v20 }
0x1dce   : > { %5752 = vmatprep.subr.bf16.mxu1 %v6398_v46  ;;  %5780 = vmatprep.subr.bf16.mxu0 %v6399_v11 }
0x1dd1   : > { %5753 = vmatpush3.bf16.msra.mxu1 %v6400_v15  ;;  %5781 = vmatpush3.bf16.msra.mxu0 %v6401_v47 }
0x1dd2   : > { %5754 = vmatprep.subr.bf16.mxu1 %v6402_v48  ;;  %5782 = vmatprep.subr.bf16.mxu0 %v6403_v25 }
0x1dd5   : > { %5755 = vmatpush3.bf16.msra.mxu1 %v6404_v49  ;;  %5783 = vmatpush3.bf16.msra.mxu0 %v6405_v13 }
0x1dd6   : > { %5756 = vmatprep.subr.bf16.mxu1 %v6406_v57  ;;  %5784 = vmatprep.subr.bf16.mxu0 %v6407_v51 }
0x1dd9   : > { %5757 = vmatpush3.bf16.msra.mxu1 %v6408_v61  ;;  %5785 = vmatpush3.bf16.msra.mxu0 %v6409_v21 }
0x1dda   : > { %5758 = vmatprep.subr.bf16.mxu1 %v6410_v7  ;;  %5786 = vmatprep.subr.bf16.mxu0 %v6411_v52 }
0x1ddd   : > { %5759 = vmatpush3.bf16.msra.mxu1 %v6412_v62  ;;  %5787 = vmatpush3.bf16.msra.mxu0 %v6413_v22 }
0x1dde   : > { %5760 = vmatprep.subr.bf16.mxu1 %v6414_v5  ;;  %5788 = vmatprep.subr.bf16.mxu0 %v6415_v3 }
0x1de1   : > { %5761 = vmatpush3.bf16.msra.mxu1 %v6416_v56  ;;  %5789 = vmatpush3.bf16.msra.mxu0 %v6417_v9 }
0x1de2   : > { %5762 = vmatprep.subr.bf16.mxu1 %v6418_v8  ;;  %5790 = vmatprep.subr.bf16.mxu0 %v6419_v24 }
0x1de5   : > { %5763 = vmatpush3.bf16.msra.mxu1 %v6420_v12  ;;  %5791 = vmatpush3.bf16.msra.mxu0 %v6421_v23 }
0x1de6   : > { %6031 = vmatprep.subr.bf16.mxu1 %v6764_v0 }
0x1e47   : > { %v4072_v1 = vpop.xlane.xlu1 %4071 }
0x1e48   : > { %v4075_v34 = vmul.f32 0.0078125, %v4072_v1 }
0x1e4a   : > { %v4078_v2 = vadd.f32 1e-06, %v4075_v34 }
0x1e4c   : > { %6572 = vrsqrt.f32 %v4078_v2 }
0x1e56   : > { %v6573_v28 = vpop.eup %6572 }
0x1e57   : > { %v4084_v14 = vmul.f32 %v6573_v28, %v8135_v10  ;;  %v8271_v10 = vrot.slane %v5439_v31, %v2113_v63 }
0x1e59   : > { %v4093_v6 = vmul.f32 %v8143_v59, %v4084_v14 }
0x1e5b   : > { %v4102_v37 = vadd.f32 %v8150_v40, %v4093_v6 }
0x1e5d   : > { %v4139_v35 = vpack.c.bf16 %v4102_v37, %v4102_v37 }
0x1e5f   : > { %4364 = vmatmul.mubr.bf16.gmra.mrb[72].mxu1 %v4139_v35  ;;  %4415 = vmatmul.mubr.bf16.gmra.mrb[68].mxu0 %v4139_v35 }
0x1e9a   : > { %v4355_v18 = vpop.f32.mrb[68].mxu1  ;;  %v4406_v55 = vpop.f32.mrb[64].mxu0 }
0x1e9b   : > { %v8274_v26 = vadd.f32 %v4355_v18, %v8261_v53  ;;  %v8277_v59 = vadd.f32 %v4406_v55, %v8264_v19  ;;  %v4357_v30 = vpop.f32.mrb[69].mxu1  ;;  %v4408_v41 = vpop.f32.mrb[65].mxu0 }
0x1e9c   : > { %v8280_v33 = vadd.f32 %v4357_v30, %v8267_v17  ;;  %v8283_v32 = vadd.f32 %v4408_v41, %v8271_v10  ;;  %v4359_v16 = vpop.f32.mrb[70].mxu1  ;;  %v4410_v29 = vpop.f32.mrb[66].mxu0 }
0x1e9d   : > { %v4423_v63 = vmul.f32 %v8274_v26, %v8274_v26  ;;  %v4425_v43 = vmul.f32 %v8277_v59, %v8277_v59  ;;  %v8290_v40 = vadd.f32 %v4359_v16, %v8261_v53  ;;  %v8293_v44 = vadd.f32 %v4410_v29, %v8264_v19  ;;  %v4361_v36 = vpop.f32.mrb[71].mxu1  ;;  %v4412_v60 = vpop.f32.mrb[67].mxu0 }
0x1e9e   : > { %v4424_v50 = vmul.f32 %v8280_v33, %v8280_v33  ;;  %v4426_v38 = vmul.f32 %v8283_v32, %v8283_v32  ;;  %v8300_v4 = vadd.f32 %v4361_v36, %v8267_v17  ;;  %v8303_v39 = vadd.f32 %v4412_v60, %v8271_v10 }
0x1e9f   : > { %v4435_v42 = vmul.f32 %v4423_v63, %v8274_v26  ;;  %v4437_v58 = vmul.f32 %v4425_v43, %v8277_v59  ;;  %v4427_v45 = vmul.f32 %v8290_v40, %v8290_v40  ;;  %v4429_v54 = vmul.f32 %v8293_v44, %v8293_v44 }
0x1ea0   : > { %v4436_v20 = vmul.f32 %v4424_v50, %v8280_v33  ;;  %v4438_v46 = vmul.f32 %v4426_v38, %v8283_v32  ;;  %v4428_v11 = vmul.f32 %v8300_v4, %v8300_v4  ;;  %v4430_v15 = vmul.f32 %v8303_v39, %v8303_v39 }
0x1ea1   : > { %v4447_v47 = vmul.f32 0.044715, %v4435_v42  ;;  %v4449_v48 = vmul.f32 0.044715, %v4437_v58  ;;  %v4439_v25 = vmul.f32 %v4427_v45, %v8290_v40  ;;  %v4441_v49 = vmul.f32 %v4429_v54, %v8293_v44 }
0x1ea2   : > { %v4448_v13 = vmul.f32 0.044715, %v4436_v20  ;;  %v4450_v57 = vmul.f32 0.044715, %v4438_v46  ;;  %v4440_v51 = vmul.f32 %v4428_v11, %v8300_v4  ;;  %v4442_v61 = vmul.f32 %v4430_v15, %v8303_v39 }
0x1ea3   : > { %v4459_v21 = vadd.f32 %v4447_v47, %v8274_v26  ;;  %v4461_v7 = vadd.f32 %v4449_v48, %v8277_v59  ;;  %v4451_v52 = vmul.f32 0.044715, %v4439_v25  ;;  %v4453_v62 = vmul.f32 0.044715, %v4441_v49 }
0x1ea4   : > { %v4460_v22 = vadd.f32 %v4448_v13, %v8280_v33  ;;  %v4462_v5 = vadd.f32 %v4450_v57, %v8283_v32  ;;  %v4452_v3 = vmul.f32 0.044715, %v4440_v51  ;;  %v4454_v56 = vmul.f32 0.044715, %v4442_v61 }
0x1ea5   : > { %v4471_v9 = vmul.f32 0.7978846, %v4459_v21  ;;  %v4473_v8 = vmul.f32 0.7978846, %v4461_v7  ;;  %v4463_v24 = vadd.f32 %v4451_v52, %v8290_v40  ;;  %v4465_v12 = vadd.f32 %v4453_v62, %v8293_v44 }
0x1ea6   : > { %v4472_v23 = vmul.f32 0.7978846, %v4460_v22  ;;  %v4474_v1 = vmul.f32 0.7978846, %v4462_v5  ;;  %v4464_v34 = vadd.f32 %v4452_v3, %v8300_v4  ;;  %v4466_v2 = vadd.f32 %v4454_v56, %v8303_v39 }
0x1ea7   : > { %6574 = vtanh.f32 %v4471_v9  ;;  %v4475_v28 = vmul.f32 0.7978846, %v4463_v24  ;;  %v4477_v14 = vmul.f32 0.7978846, %v4465_v12 }
0x1ea8   : > { %6576 = vtanh.f32 %v4473_v8  ;;  %v4476_v6 = vmul.f32 0.7978846, %v4464_v34  ;;  %v4478_v37 = vmul.f32 0.7978846, %v4466_v2 }
0x1ea9   : > { %6578 = vtanh.f32 %v4472_v23 }
0x1eaa   : > { %6580 = vtanh.f32 %v4474_v1 }
0x1eab   : > { %6582 = vtanh.f32 %v4475_v28 }
0x1eac   : > { %6584 = vtanh.f32 %v4477_v14 }
0x1ead   : > { %6586 = vtanh.f32 %v4476_v6 }
0x1eae   : > { %6588 = vtanh.f32 %v4478_v37 }
0x1eb1   : > { %v6575_v35 = vpop.eup %6574 }
0x1eb2   : > { %v6577_v31 = vpop.eup %6576  ;;  %v4495_v18 = vadd.f32 1.0, %v6575_v35 }
0x1eb3   : > { %v6579_v55 = vpop.eup %6578  ;;  %v4497_v30 = vadd.f32 1.0, %v6577_v31 }
0x1eb4   : > { %v6581_v41 = vpop.eup %6580  ;;  %v4496_v16 = vadd.f32 1.0, %v6579_v55  ;;  %v4507_v36 = vmul.f32 0.5, %v4495_v18 }
0x1eb5   : > { %v6583_v29 = vpop.eup %6582  ;;  %v4498_v63 = vadd.f32 1.0, %v6581_v41  ;;  %v4509_v38 = vmul.f32 0.5, %v4497_v30 }
0x1eb6   : > { %v6585_v43 = vpop.eup %6584  ;;  %v4499_v60 = vadd.f32 1.0, %v6583_v29  ;;  %v4508_v20 = vmul.f32 0.5, %v4496_v16  ;;  %v4519_v47 = vmul.f32 %v4507_v36, %v8274_v26 }
0x1eb7   : > { %v6587_v50 = vpop.eup %6586  ;;  %v4501_v42 = vadd.f32 1.0, %v6585_v43  ;;  %v4510_v15 = vmul.f32 0.5, %v4498_v63  ;;  %v4521_v49 = vmul.f32 %v4509_v38, %v8277_v59 }
0x1eb8   : > { %v6589_v58 = vpop.eup %6588  ;;  %v4511_v45 = vmul.f32 0.5, %v4499_v60  ;;  %v4500_v54 = vadd.f32 1.0, %v6587_v50  ;;  %v4520_v61 = vmul.f32 %v4508_v20, %v8280_v33 }
0x1eb9   : > { %v4513_v46 = vmul.f32 0.5, %v4501_v42  ;;  %v4502_v11 = vadd.f32 1.0, %v6589_v58  ;;  %v4522_v52 = vmul.f32 %v4510_v15, %v8283_v32 }
0x1eba   : > { %v4523_v48 = vmul.f32 %v4511_v45, %v8290_v40  ;;  %v4512_v25 = vmul.f32 0.5, %v4500_v54 }
0x1ebb   : > { %v4525_v13 = vmul.f32 %v4513_v46, %v8293_v44  ;;  %v4514_v57 = vmul.f32 0.5, %v4502_v11 }
0x1ebc   : > { %v4598_v51 = vpack.c.bf16 %v4523_v48, %v4519_v47  ;;  %v4524_v21 = vmul.f32 %v4512_v25, %v8300_v4 }
0x1ebd   : > { %v4600_v7 = vpack.c.bf16 %v4525_v13, %v4521_v49  ;;  %v4526_v62 = vmul.f32 %v4514_v57, %v8303_v39 }
0x1ebe   : > { %v4599_v22 = vpack.c.bf16 %v4524_v21, %v4520_v61 }
0x1ebf   : > { %v4601_v26 = vpack.c.bf16 %v4526_v62, %v4522_v52 }
0x1ec0   : > { %4836 = vmatprep.mubr.bf16.mxu1 %v4599_v22 }
0x1ec1   : > { %4882 = vmatprep.mubr.bf16.mxu0 %v4601_v26  ;;  %4837 = vmatmul.mubr.bf16.vlgmr.msra.gmra.mrb[76].mxu1 %v4598_v51  ;;  %v5536_v51 = vld [vmem:[#allocation5 + $0x1] ss:$0 sm:$0xff] }
0x1ec2   : > { %4883 = vmatmul.mubr.bf16.vlgmr.msra.gmra.mrb[72].mxu0 %v4600_v7 }
0x1f32   : > { %v4365_v59 = vpop.f32.mrb[72].mxu1  ;;  %v4416_v40 = vpop.f32.mrb[68].mxu0 }
0x1f33   : > { %v4366_v44 = vadd.f32 %v4365_v59, %v8261_v53  ;;  %v4417_v5 = vadd.f32 %v4416_v40, %v8264_v19  ;;  %v4367_v33 = vpop.f32.mrb[73].mxu1  ;;  %v4418_v3 = vpop.f32.mrb[69].mxu0 }
0x1f34   : > { %v4368_v4 = vadd.f32 %v4367_v33, %v8267_v17  ;;  %v4419_v32 = vadd.f32 %v4418_v3, %v8271_v10  ;;  %v4369_v56 = vpop.f32.mrb[74].mxu1  ;;  %v4420_v39 = vpop.f32.mrb[70].mxu0  ;;  %v6422_v33 = vld [vmem:[%s8482_s19] sm:$0xff]   ;;  %v6423_v3 = vld [vmem:[%s8482_s19 + $0x8] sm:$0xff]  }
0x1f35   : > { %v4431_v9 = vmul.f32 %v4366_v44, %v4366_v44  ;;  %v4433_v8 = vmul.f32 %v4417_v5, %v4417_v5  ;;  %v4370_v24 = vpop.f32.mrb[75].mxu1  ;;  %v4421_v12 = vpop.f32.mrb[71].mxu0  ;;  %6032 = vmatpush3.bf16.msra.mxu1 %v6422_v33 }
0x1f36   : > { %v4432_v23 = vmul.f32 %v4368_v4, %v4368_v4  ;;  %v4434_v1 = vmul.f32 %v4419_v32, %v4419_v32  ;;  %6033 = vmatprep.subr.bf16.mxu1 %v6764_v0 }
0x1f37   : > { %v4443_v34 = vmul.f32 %v4431_v9, %v4366_v44  ;;  %v4445_v2 = vmul.f32 %v4433_v8, %v4417_v5 }
0x1f38   : > { %v4444_v28 = vmul.f32 %v4432_v23, %v4368_v4  ;;  %v4446_v53 = vmul.f32 %v4434_v1, %v4419_v32 }
0x1f39   : > { %v4455_v14 = vmul.f32 0.044715, %v4443_v34  ;;  %v4457_v19 = vmul.f32 0.044715, %v4445_v2  ;;  %6034 = vmatpush3.bf16.msra.mxu1 %v6423_v3  ;;  %v6424_v2 = vld [vmem:[%s8482_s19 + $0x10] sm:$0xff]  }
0x1f3a   : > { %v4456_v6 = vmul.f32 0.044715, %v4444_v28  ;;  %v4458_v37 = vmul.f32 0.044715, %v4446_v53  ;;  %6035 = vmatprep.subr.bf16.mxu1 %v6764_v0  ;;  %v6425_v28 = vld [vmem:[%s8482_s19 + $0x18] sm:$0xff]   ;;  %v6426_v53 = vld [vmem:[%s8482_s19 + $0x20] sm:$0xff]  }
0x1f3b   : > { %v4467_v35 = vadd.f32 %v4455_v14, %v4366_v44  ;;  %v4469_v17 = vadd.f32 %v4457_v19, %v4417_v5  ;;  %v6427_v14 = vld [vmem:[%s8482_s19 + $0x28] sm:$0xff]   ;;  %v6428_v19 = vld [vmem:[%s8482_s19 + $0x30] sm:$0xff]  }
0x1f3c   : > { %v4468_v31 = vadd.f32 %v4456_v6, %v4368_v4  ;;  %v4470_v10 = vadd.f32 %v4458_v37, %v4419_v32  ;;  %v6429_v6 = vld [vmem:[%s8482_s19 + $0x38] sm:$0xff]  }
0x1f3d   : > { %v4479_v18 = vmul.f32 0.7978846, %v4467_v35  ;;  %v4481_v55 = vmul.f32 0.7978846, %v4469_v17  ;;  %6036 = vmatpush3.bf16.msra.mxu1 %v6424_v2 }
0x1f3e   : > { %v4480_v30 = vmul.f32 0.7978846, %v4468_v31  ;;  %v4482_v41 = vmul.f32 0.7978846, %v4470_v10  ;;  %6037 = vmatprep.subr.bf16.mxu1 %v6764_v0  ;;  %v5569_v10 = vld [vmem:[%s8480_s17] ss:$0 sm:$0xff] }
0x1f3f   : > { %6590 = vtanh.f32 %v4479_v18 }
0x1f40   : > { %6592 = vtanh.f32 %v4481_v55 }
0x1f41   : > { %6594 = vtanh.f32 %v4480_v30  ;;  %6038 = vmatpush3.bf16.msra.mxu1 %v6425_v28 }
0x1f42   : > { %6596 = vtanh.f32 %v4482_v41  ;;  %6039 = vmatprep.subr.bf16.mxu1 %v6764_v0 }
0x1f45   : > { %6040 = vmatpush3.bf16.msra.mxu1 %v6426_v53 }
0x1f46   : > { %6041 = vmatprep.subr.bf16.mxu1 %v6764_v0 }
0x1f49   : > { %v6591_v16 = vpop.eup %6590  ;;  %6042 = vmatpush3.bf16.msra.mxu1 %v6427_v14 }
0x1f4a   : > { %v6593_v29 = vpop.eup %6592  ;;  %v4503_v63 = vadd.f32 1.0, %v6591_v16  ;;  %6043 = vmatprep.subr.bf16.mxu1 %v6764_v0 }
0x1f4b   : > { %v6595_v43 = vpop.eup %6594  ;;  %v4505_v36 = vadd.f32 1.0, %v6593_v29 }
0x1f4c   : > { %v6597_v60 = vpop.eup %6596  ;;  %v4504_v50 = vadd.f32 1.0, %v6595_v43  ;;  %v4515_v38 = vmul.f32 0.5, %v4503_v63 }
0x1f4d   : > { %v4506_v42 = vadd.f32 1.0, %v6597_v60  ;;  %v4517_v58 = vmul.f32 0.5, %v4505_v36  ;;  %6044 = vmatpush3.bf16.msra.mxu1 %v6428_v19 }
0x1f4e   : > { %v4516_v45 = vmul.f32 0.5, %v4504_v50  ;;  %v4527_v20 = vmul.f32 %v4515_v38, %v4366_v44  ;;  %6045 = vmatprep.subr.bf16.mxu1 %v6764_v0 }
0x1f4f   : > { %v4518_v54 = vmul.f32 0.5, %v4506_v42  ;;  %v4529_v11 = vmul.f32 %v4517_v58, %v4417_v5 }
0x1f50   : > { %v4528_v46 = vmul.f32 %v4516_v45, %v4368_v4  ;;  %v4602_v25 = vpack.c.bf16 %v4527_v20, %v4527_v20 }
0x1f51   : > { %v4530_v15 = vmul.f32 %v4518_v54, %v4419_v32  ;;  %v4604_v49 = vpack.c.bf16 %v4529_v11, %v4529_v11  ;;  %6046 = vmatpush3.bf16.msra.mxu1 %v6429_v6 }
0x1f52   : > { %v4603_v47 = vpack.c.bf16 %v4528_v46, %v4528_v46 }
0x1f53   : > { %v4605_v48 = vpack.c.bf16 %v4530_v15, %v4530_v15 }
0x1f54   : > { %4843 = vmatprep.mubr.bf16.mxu1 %v4603_v47 }
0x1f55   : > { %4889 = vmatprep.mubr.bf16.mxu0 %v4605_v48  ;;  %4844 = vmatmul.mubr.bf16.gmra.mrb[80].mxu1 %v4602_v25 }
0x1f56   : > { %4890 = vmatmul.mubr.bf16.gmra.mrb[76].mxu0 %v4604_v49  ;;  %6047 = vmatprep.mubr.msk.bf16.mxu1 %vm6765_vm0, %v6764_v0  ;;  %v5570_v0 = vld [vmem:[%s8481_s18] ss:$0 sm:$0xff] }
0x1f94   : > { %v5764_v13 = vpop.f32.mrb[76].mxu1 }
0x1f95   : > { %v5792_v57 = vpop.f32.mrb[72].mxu0  ;;  %v5765_v61 = vpop.f32.mrb[77].mxu1 }
0x1f96   : > { %v5766_v21 = vadd.f32 %v5765_v61, %v5764_v13  ;;  %v5793_v7 = vpop.f32.mrb[73].mxu0  ;;  %v5767_v52 = vpop.f32.mrb[78].mxu1 }
0x1f97   : > { %v5794_v62 = vadd.f32 %v5793_v7, %v5792_v57  ;;  %v5795_v22 = vpop.f32.mrb[74].mxu0  ;;  %v5768_v26 = vpop.f32.mrb[79].mxu1 }
0x1f98   : > { %v4839_v59 = vadd.f32 %v5766_v21, %v5536_v51  ;;  %v5796_v40 = vpop.f32.mrb[75].mxu0 }
0x1f9a   : > { %v4885_v44 = vadd.f32 %v5794_v62, %v4839_v59 }
0x1f9c   : > { %v4896_v5 = vadd.f32 %v4885_v44, %v8025_v27 }
0x1f9e   : > { %4899 = vadd.xlane.f32.xlu0 %v4896_v5 }
0x2028   : > { %v5770_v4 = vpop.f32.mrb[80].mxu1 }
0x2029   : > { %v5798_v32 = vpop.f32.mrb[76].mxu0  ;;  %v5771_v56 = vpop.f32.mrb[81].mxu1 }
0x202a   : > { %v5799_v39 = vpop.f32.mrb[77].mxu0  ;;  %v5773_v27 = vpop.f32.mrb[82].mxu1 }
0x202b   : > { %v4900_v9 = vpop.xlane.xlu0 %4899  ;;  %v5801_v8 = vpop.f32.mrb[78].mxu0 }
0x202c   : > { %v4901_v24 = vmul.f32 0.0078125, %v4900_v9  ;;  %v5774_v12 = vpop.f32.mrb[83].mxu1  ;;  %v5802_v23 = vpop.f32.mrb[79].mxu0 }
0x202e   : > { %v4902_v1 = vsub.f32 %v4896_v5, %v4901_v24 }
0x2030   : > { %v4903_v34 = vmul.f32 %v4902_v1, %v4902_v1 }
0x2032   : > { %4904 = vadd.xlane.f32.xlu1 %v4903_v34 }
0x20bf   : > { %v4905_v37 = vpop.xlane.xlu1 %4904 }
0x20c0   : > { %v4906_v35 = vmul.f32 0.0078125, %v4905_v37 }
0x20c2   : > { %v4907_v17 = vadd.f32 1e-06, %v4906_v35 }
0x20c4   : > { %6598 = vrsqrt.f32 %v4907_v17 }
0x20ce   : > { %v6599_v31 = vpop.eup %6598 }
0x20cf   : > { %v4909_v18 = vmul.f32 %v6599_v31, %v4902_v1 }
0x20d1   : > { %v4916_v55 = vmul.f32 %v5569_v10, %v4909_v18 }
0x20d3   : > { %v4923_v30 = vadd.f32 %v5570_v0, %v4916_v55 }
0x20d5   : > { %v4942_v41 = vpack.c.bf16 %v4923_v30, %v4923_v30  ;;  %4924 = vst [vmem:[%s707_s29] sm:$0x1] %v4923_v30 }
0x20d7   : > { %6048 = vmatmul.mubr.bf16.vlgmr.msra.gmra.mrb[84].mxu1 %v4942_v41 }
0x20d8   : > { %6669 = shalt.err (!%p6666_p11)
}
0x20d9   : > { %s6670_s29 = scalar_lea.hbm %s8391_s2, 16  ;;  %s6674_s25 = scalar_lea.hbm %s8484_s21, 32 }
0x20da   : > { %p6671_p13 = scmp.ne.s32.totalorder %s8391_s2, %s6670_s29  ;;  %p6675_p5 = scmp.lt.u32.totalorder %s8391_s2, %s8484_s21 }
0x20db   : > { %p6676_p9 = scmp.lt.u32.totalorder %s6674_s25, %s6670_s29  ;;  %p6678_p12 = scmp.lt.u32.totalorder %s6670_s29, %s8391_s2 }
0x20dc   : > { %p6672_p0 = pnand %p6671_p13, %p8550_p1 }
0x20dd   : > { %p6677_p10 = por %p6676_p9, %p6675_p5 }
0x20de   : > { %p6673_p6 = pneg %p6672_p0 }
0x20df   : > { %p6679_p2 = por %p6678_p12, %p6677_p10 }
0x20e1   : > { %p6680_p3 = pnand %p6679_p2, %p6673_p6 }
0x20e3   : > { %6683 = shalt.err (!%p6680_p3)
}
0x20e4   : > { %6083 = dma.vmem_to_hbm [thread:$0]  (%p8550_p1), %s5050_s24, 16, %s8391_s2, %s5033_s1  }
0x20e5   : > { %s8551_s26 = sld [smem:[#allocation30_spill]]  ;;  %s713_s30 = scalar_lea.vmem [#allocation8], %s8379_s27 }
0x20e6   : > { %s5062_s16 = sshll.u32 %s713_s30, 4  ;;  %s8552_s29 = sshll.u32 %s6909_s4, 4  ;;  %s8422_s16 = int_to_ptr.vmem [resolvable:$true] %s5062_s16 }
0x20e7   : > { %s8553_s7 = sld [smem:[#allocation31_spill]]  ;;  %s5037_s2 = scalar_lea.sflag [#allocation9], %s8379_s27 }
0x20e8   : > { %s6684_s24 = scalar_lea.vmem %s8422_s16, 16  ;;  %s6772_s4 = smov [#allocation8]  }
0x20e9   : > { %p6685_p4 = scmp.ne.s32.totalorder %s8422_s16, %s6684_s24  ;;  %s6688_s1 = sshll.u32 %s6772_s4, 4  ;;  %s6689_s1 = int_to_ptr.vmem [resolvable:$false] %s6688_s1 }
0x20ea   : > { %s6690_s0 = scalar_lea.vmem %s6689_s1, 32  ;;  %p6691_p11 = scmp.lt.s32.totalorder %s8422_s16, %s6689_s1 }
0x20eb   : > { %v4941_v16 = vld [vmem:[%s8551_s26] sm:$0x1]  ;;  %p6686_p7 = pnand %p6685_p4, %p8550_p1  ;;  %p6692_p13 = scmp.lt.s32.totalorder %s6690_s0, %s6684_s24 }
0x20ed   : > { %s8420_s8 = scalar_lea.hbm %s8553_s7, %s8552_s29  ;;  %p6687_p8 = pneg %p6686_p7 }
0x20ee   : > { %p6693_p0 = por %p6692_p13, %p6691_p11 }
0x20f0   : > { %p6694_p6 = pnand %p6693_p0, %p6687_p8 }
0x21aa   : > { %v5025_v29 = vpop.f32.mrb[84].mxu1 }
0x21ab   : > { %v5026_v63 = vadd.f32 %v5025_v29, %v4941_v16  ;;  %v6049_v43 = vpop.f32.mrb[85].mxu1 }
0x21ac   : > { %v5028_v36 = vpop.f32.mrb[86].mxu1 }
0x21ad   : > { %5031 = vst [vmem:[%s713_s30] sm:$0x1] %v5026_v63  ;;  %v6050_v60 = vpop.f32.mrb[87].mxu1 }
0x21ae   : > { %6697 = shalt.err (!%p6694_p6)
}
0x21af   : > { %s6698_s27 = scalar_lea.hbm %s8420_s8, 16  ;;  %s6702_s30 = scalar_lea.hbm %s8553_s7, 32 }
0x21b0   : > { %p6699_p5 = scmp.ne.s32.totalorder %s8420_s8, %s6698_s27  ;;  %p6703_p12 = scmp.lt.u32.totalorder %s8420_s8, %s8553_s7 }
0x21b1   : > { %p6704_p2 = scmp.lt.u32.totalorder %s6702_s30, %s6698_s27  ;;  %p6706_p4 = scmp.lt.u32.totalorder %s6698_s27, %s8420_s8 }
0x21b2   : > { %p6700_p9 = pnand %p6699_p5, %p8550_p1 }
0x21b3   : > { %p6705_p3 = por %p6704_p2, %p6703_p12 }
0x21b4   : > { %p6701_p10 = pneg %p6700_p9 }
0x21b5   : > { %p6707_p7 = por %p6706_p4, %p6705_p3 }
0x21b7   : > { %p6708_p8 = pnand %p6707_p7, %p6701_p10 }
0x21b9   : > { %6711 = shalt.err (!%p6708_p8)
}
0x21ba   : > { %6084 = dma.vmem_to_hbm [thread:$0]  (%p8550_p1), %s8422_s16, 16, %s8420_s8, %s5037_s2  }
0x21bb PF: > { %s8554_s3 = sld [smem:[#allocation16_spill]]  ;;  %s8555_s24 = sld [smem:[#allocation14_spill]] }
0x21bc   : > { %s8556_s4 = sld [smem:[#allocation19_spill]] }
0x21c1   : > { %p6105_p11 = scmp.ge.s32.totalorder %s8554_s3, 2  ;;  %s5074_s1 = sand.u32 1, %s8555_s24  }
0x21c2   : > { %p8557_p13 = scmp.ne.s32.totalorder %s8556_s4, 0  ;;  %s5075_s0 = scalar_lea.sflag [#allocation4], %s5074_s1 }
0x21c4   : > { %p6095_p0 = pnand %p6105_p11, %p8557_p13 }
0x21c6   : > { %6737 = dma.done.wait (!%p6095_p0), %s5075_s0, 16  }
0x21c7   : > { %6739 = vsyncadd (!%p6095_p0), %s5075_s0, 4294967280  ;;  %s5083_s27 = scalar_lea.sflag [#allocation9], %s5074_s1 }
0x21c8   : > { %6741 = dma.done.wait (!%p6095_p0), %s5083_s27, 16  }
0x21c9   : > { %6743 = vsyncadd (!%p6095_p0), %s5083_s27, 4294967280  ;;  %s8558_s30 = sld [smem:[#allocation17_spill]]  ;;  %s8559_s6 = sld [smem:[#allocation15_spill]] }
0x21ca   : > { %s8560_s29 = sld [smem:[#allocation18_spill]]  ;;  %s8561_s3 = smov %s6750_s28 }
0x21cf   : > { %p38_p1 = scmp.ge.s32.totalorder %s8558_s30, 4   ;;  %s8562_s28 = smov %s8559_s6 }
0x21d1   :  { %40 = sbr.rel (!%p38_p1) target bundleno = 20 (0x14), region = 177 }
0x21d8   :  { %5087 = vsyncpa [#allocation3], 1 }
0x21d9   :  { %5089 = vsyncpa [#allocation3 + $0x1], 1 }
0x21da   :  { %5090 = vsyncpa [#allocation6], 1 }
0x21db   :  { %5091 = vsyncpa [#allocation4], 1 }
0x21dc   :  { %5093 = vsyncpa [#allocation4 + $0x1], 1 }
0x21dd   :  { %5094 = vsyncpa [#allocation9], 1 }
0x21de   :  { %5096 = vsyncpa [#allocation9 + $0x1], 1 }

</bundles_post_ra>
